<compile_context>
chip_gen: v7x
topology: tpu7x:2x2x1
jax: 0.10.0
libtpu: 0.0.40
codegen_flags: <defaults>
</compile_context>

<pallas_src>
import functools
import math

import numpy as np
import jax
import jax.numpy as jnp
from jax import lax
from jax.experimental import pallas as pl
from jax.experimental.pallas import tpu as pltpu

_VMEM_LIMIT = 32 * 1024 * 1024     # explicit scoped-VMEM limit, safe on v5e/v6e/v7x
_NEG = -1e9                        # finite masked fill (NaN-safe vs reference -inf)


def _pick_tile(n, target):
    """Largest tile <= target that divides n and is sublane aligned (mult. of 8);
    falls back to the full extent (full-dim blocks are always legal)."""
    if n <= target:
        return n
    for t in range(target, 7, -1):
        if n % t == 0 and t % 8 == 0:
            return t
    return n


def _pick_v_tile(vp, target):
    t = min(vp, target)
    while vp % t != 0:
        t -= 128
    return max(t, 128)


def _bytes_of(arrays, out_shapes):
    tot = 0
    for a in arrays:
        tot += int(np.prod(a.shape)) * np.dtype(a.dtype).itemsize
    for s in out_shapes:
        tot += int(np.prod(s.shape)) * np.dtype(s.dtype).itemsize
    return int(tot)


# --------------------- fused multi-head attention block ---------------------

def _make_mha_kernel(n_head, d_k, d_v, inv_temp, mask_kind, causal, fuse_qkv, tq):
    hdk = n_head * d_k

    def kernel(*refs):
        if fuse_qkv:
            (m_ref, np_ref, x_ref, wqkv_ref, bqkv_ref,
             wfc_ref, bfc_ref, g_ref, b_ref, o_ref) = refs
            q_in = x_ref[...]                                  # (Lq, D) bf16
            qkv = jnp.dot(q_in, wqkv_ref[...],
                          preferred_element_type=jnp.float32) + bqkv_ref[...]
            qp, kp, vp = qkv[:, :hdk], qkv[:, hdk:2 * hdk], qkv[:, 2 * hdk:]
        else:
            (m_ref, np_ref, q_ref, kv_ref, wqkv_ref, bqkv_ref,
             wfc_ref, bfc_ref, g_ref, b_ref, o_ref) = refs
            q_in = q_ref[...]                                  # (tq, D) bf16
            wqkv = wqkv_ref[...]
            bqkv = bqkv_ref[...]
            qp = jnp.dot(q_in, wqkv[:, :hdk],
                         preferred_element_type=jnp.float32) + bqkv[:, :hdk]
            kvp = jnp.dot(kv_ref[...], wqkv[:, hdk:],
                          preferred_element_type=jnp.float32) + bqkv[:, hdk:]
            kp, vp = kvp[:, :hdk], kvp[:, hdk:]

        lq, lk = qp.shape[0], kp.shape[0]

        # mask: either a full bf16 graph mask, or key-pad vector (+ causal iota)
        if mask_kind == "full":
            masked = m_ref[...] > 0.5                          # (lq, lk)
        else:
            masked = m_ref[...] > 0                            # (1, lk) int32
        if causal:
            row = (lax.broadcasted_iota(jnp.int32, (lq, lk), 0)
                   + pl.program_id(1) * tq)
            col = lax.broadcasted_iota(jnp.int32, (lq, lk), 1)
            masked = jnp.logical_or(masked, col > row)

        wfc = wfc_ref[...]                                     # (H*dv, D) bf16
        acc = jnp.zeros((lq, wfc.shape[1]), jnp.float32)
        for h in range(n_head):                                # static unroll
            qh = qp[:, h * d_k:(h + 1) * d_k].astype(jnp.bfloat16)
            kh = kp[:, h * d_k:(h + 1) * d_k].astype(jnp.bfloat16)
            vh = vp[:, h * d_v:(h + 1) * d_v].astype(jnp.bfloat16)
            s = lax.dot_general(qh, kh, (((1,), (1,)), ((), ())),
                                preferred_element_type=jnp.float32) * inv_temp
            s = jnp.where(masked, _NEG, s)
            s = s - jnp.max(s, axis=-1, keepdims=True)
            e = jnp.exp(s)
            p = e * pl.reciprocal(jnp.sum(e, axis=-1, keepdims=True), approx=True)
            oh = jnp.dot(p.astype(jnp.bfloat16), vh,
                         preferred_element_type=jnp.float32)
            # accumulate this head's output-projection contribution (no concat)
            acc = acc + jnp.dot(oh.astype(jnp.bfloat16),
                                wfc[h * d_v:(h + 1) * d_v, :],
                                preferred_element_type=jnp.float32)

        y = acc + bfc_ref[...] + q_in.astype(jnp.float32)      # bias + residual
        mu = jnp.mean(y, axis=-1, keepdims=True)
        var = jnp.mean((y - mu) ** 2, axis=-1, keepdims=True)
        y = (y - mu) * lax.rsqrt(var + 1e-5) * g_ref[...] + b_ref[...]
        o_ref[...] = (y * np_ref[...]).astype(o_ref.dtype)     # non-pad epilogue

    return kernel


def mha_block(q_in, kv_in, mask, nonpad, p, n_head, d_k, d_v, *,
              mask_kind, causal=False, q_tile=256):
    """Fused MHA + residual + LayerNorm + non-pad mask.

    mask_kind == "full":   mask is (B, Lq, Lk) bf16 (graph masks, >0.5 == masked)
    mask_kind == "keypad": mask is (B, 1, Lk) int32 key-pad vector
    """
    B, Lq, D = q_in.shape
    Lk = kv_in.shape[1]
    hdk, hdv = n_head * d_k, n_head * d_v
    tq = _pick_tile(Lq, q_tile)
    nq = Lq // tq
    fuse_qkv = (q_in is kv_in) and nq == 1

    kern = _make_mha_kernel(n_head, d_k, d_v, 1.0 / float(np.sqrt(d_k)),
                            mask_kind, causal, fuse_qkv, tq)

    if mask_kind == "full":
        mask_spec = pl.BlockSpec((None, tq, Lk), lambda b, qi: (b, qi, 0))
    else:
        mask_spec = pl.BlockSpec((None, 1, Lk), lambda b, qi: (b, 0, 0))

    in_specs = [mask_spec,
                pl.BlockSpec((None, tq, 1), lambda b, qi: (b, qi, 0))]
    args = [mask, nonpad]
    if fuse_qkv:
        in_specs += [pl.BlockSpec((None, Lq, D), lambda b, qi: (b, 0, 0))]
        args += [q_in]
    else:
        in_specs += [pl.BlockSpec((None, tq, D), lambda b, qi: (b, qi, 0)),
                     pl.BlockSpec((None, Lk, D), lambda b, qi: (b, 0, 0))]
        args += [q_in, kv_in]
    in_specs += [pl.BlockSpec((D, 2 * hdk + hdv), lambda b, qi: (0, 0)),
                 pl.BlockSpec((1, 2 * hdk + hdv), lambda b, qi: (0, 0)),
                 pl.BlockSpec((hdv, D), lambda b, qi: (0, 0)),
                 pl.BlockSpec((1, D), lambda b, qi: (0, 0)),
                 pl.BlockSpec((1, D), lambda b, qi: (0, 0)),
                 pl.BlockSpec((1, D), lambda b, qi: (0, 0))]
    args += [p["wqkv"], p["bqkv"], p["wfc"], p["bfc"], p["ln_g"], p["ln_b"]]

    out_shape = jax.ShapeDtypeStruct((B, Lq, D), jnp.bfloat16)
    flops = 2 * B * (Lq * D * hdk + Lk * D * (hdk + hdv)
                     + n_head * Lq * Lk * (d_k + d_v) + Lq * hdv * D)
    cost = pl.CostEstimate(flops=int(flops),
                           transcendentals=int(B * n_head * Lq * Lk),
                           bytes_accessed=_bytes_of(args, [out_shape]))
    return pl.pallas_call(
        kern,
        out_shape=out_shape,
        grid=(B, nq),
        in_specs=in_specs,
        out_specs=pl.BlockSpec((None, tq, D), lambda b, qi: (b, qi, 0)),
        compiler_params=pltpu.CompilerParams(
            dimension_semantics=("parallel", "parallel"),
            vmem_limit_bytes=_VMEM_LIMIT),
        cost_estimate=cost,
    )(*args)


# -------------------------- fused feed-forward block -------------------------

def _ffn_kernel(x_ref, np_ref, w1_ref, b1_ref, w2_ref, b2_ref, g_ref, be_ref,
                o_ref):
    x = x_ref[...]                                             # (tl, D) bf16
    h = jnp.dot(x, w1_ref[...], preferred_element_type=jnp.float32) + b1_ref[...]
    h = jnp.maximum(h, 0.0).astype(jnp.bfloat16)
    y = jnp.dot(h, w2_ref[...], preferred_element_type=jnp.float32) + b2_ref[...]
    y = y + x.astype(jnp.float32)                              # residual
    mu = jnp.mean(y, axis=-1, keepdims=True)
    var = jnp.mean((y - mu) ** 2, axis=-1, keepdims=True)
    y = (y - mu) * lax.rsqrt(var + 1e-5) * g_ref[...] + be_ref[...]
    o_ref[...] = (y * np_ref[...]).astype(o_ref.dtype)


def ffn_block(x, nonpad, p, *, q_tile=256):
    B, L, D = x.shape
    Dh = p["w1"].shape[1]
    tl = _pick_tile(L, q_tile)
    nl = L // tl
    args = [x, nonpad, p["w1"], p["b1"], p["w2"], p["b2"], p["ln_g"], p["ln_b"]]
    out_shape = jax.ShapeDtypeStruct((B, L, D), jnp.bfloat16)
    cost = pl.CostEstimate(flops=int(4 * B * L * D * Dh), transcendentals=0,
                           bytes_accessed=_bytes_of(args, [out_shape]))
    return pl.pallas_call(
        _ffn_kernel,
        out_shape=out_shape,
        grid=(B, nl),
        in_specs=[pl.BlockSpec((None, tl, D), lambda b, i: (b, i, 0)),
                  pl.BlockSpec((None, tl, 1), lambda b, i: (b, i, 0)),
                  pl.BlockSpec((D, Dh), lambda b, i: (0, 0)),
                  pl.BlockSpec((1, Dh), lambda b, i: (0, 0)),
                  pl.BlockSpec((Dh, D), lambda b, i: (0, 0)),
                  pl.BlockSpec((1, D), lambda b, i: (0, 0)),
                  pl.BlockSpec((1, D), lambda b, i: (0, 0)),
                  pl.BlockSpec((1, D), lambda b, i: (0, 0))],
        out_specs=pl.BlockSpec((None, tl, D), lambda b, i: (b, i, 0)),
        compiler_params=pltpu.CompilerParams(
            dimension_semantics=("parallel", "parallel"),
            vmem_limit_bytes=_VMEM_LIMIT),
        cost_estimate=cost,
    )(*args)


# ----------------------------- gated copy head -------------------------------

def _copy_prep_kernel(kp_ref, dec_ref, enc_ref, gw_ref, gb_ref, cw_ref, gate_ref):
    dec = dec_ref[...]                                         # (Lq, D) bf16
    enc = enc_ref[...]                                         # (Lk, D) bf16
    # copy gate: VPU reduction (avoids a 1-lane MXU matmul)
    gl = jnp.sum(dec.astype(jnp.float32) * gw_ref[...], axis=-1,
                 keepdims=True) + gb_ref[...]
    gate = jax.nn.sigmoid(gl)                                  # (Lq, 1)
    # copy attention over encoder positions (reference: no 1/sqrt(D) scaling)
    s = lax.dot_general(dec, enc, (((1,), (1,)), ((), ())),
                        preferred_element_type=jnp.float32)    # (Lq, Lk)
    s = jnp.where(kp_ref[...] > 0, _NEG, s)
    s = s - jnp.max(s, axis=-1, keepdims=True)
    e = jnp.exp(s)
    oov = e / jnp.sum(e, axis=-1, keepdims=True)               # exact reciprocal
    cw_ref[...] = oov * gate
    gate_ref[...] = gate


def _vocab_lse_kernel(dec_ref, wp_ref, bp_ref, lse_ref, m_sc, l_sc):
    v = pl.program_id(1)

    @pl.when(v == 0)
    def _():
        m_sc[...] = jnp.full_like(m_sc, -1e30)
        l_sc[...] = jnp.zeros_like(l_sc)

    logits = jnp.dot(dec_ref[...], wp_ref[...],
                     preferred_element_type=jnp.float32) + bp_ref[...]
    m_prev = m_sc[...]
    m_new = jnp.maximum(m_prev, jnp.max(logits, axis=-1, keepdims=True))
    l_sc[...] = (l_sc[...] * jnp.exp(m_prev - m_new)
                 + jnp.sum(jnp.exp(logits - m_new), axis=-1, keepdims=True))
    m_sc[...] = m_new

    @pl.when(v == pl.num_programs(1) - 1)
    def _():
        lse_ref[...] = m_sc[...] + jnp.log(l_sc[...])


def _copy_out_kernel(ids_ref, dec_ref, lse_ref, gate_ref, cw_ref, wp_ref, bp_ref,
                     o_ref, *, tile_v):
    logits = jnp.dot(dec_ref[...], wp_ref[...],
                     preferred_element_type=jnp.float32) + bp_ref[...]
    in_prob = jnp.exp(logits - lse_ref[...])                   # exact softmax tile
    # one-hot(input_ids) scatter matrix for this vocab tile, built in VMEM
    v_start = pl.program_id(1) * tile_v
    ids = ids_ref[...]                                         # (Lk, 1) int32
    cols = lax.broadcasted_iota(jnp.int32, (ids.shape[0], tile_v), 1) + v_start
    onehot = (ids == cols).astype(jnp.float32)                 # (Lk, TV)
    copy = jnp.dot(cw_ref[...], onehot, preferred_element_type=jnp.float32)
    o_ref[...] = jnp.log((1.0 - gate_ref[...]) * in_prob + copy + 1e-8)


def copy_head(dec, enc, input_ids, keypad_src, params, vocab_size, *, v_tile=1024):
    B, Lq, D = dec.shape
    Lk = enc.shape[1]
    Vp = params["proj_w"].shape[1]                             # padded to 128-mult
    tv = _pick_v_tile(Vp, v_tile)
    nv = Vp // tv
    ids = input_ids.astype(jnp.int32).reshape(B, Lk, 1)

    # 1) gate + gated copy-attention weights                         grid=(B,)
    copy_w, gate = pl.pallas_call(
        _copy_prep_kernel,
        out_shape=(jax.ShapeDtypeStruct((B, Lq, Lk), jnp.float32),
                   jax.ShapeDtypeStruct((B, Lq, 1), jnp.float32)),
        grid=(B,),
        in_specs=[pl.BlockSpec((None, 1, Lk), lambda b: (b, 0, 0)),
                  pl.BlockSpec((None, Lq, D), lambda b: (b, 0, 0)),
                  pl.BlockSpec((None, Lk, D), lambda b: (b, 0, 0)),
                  pl.BlockSpec((1, D), lambda b: (0, 0)),
                  pl.BlockSpec((1, 1), lambda b: (0, 0))],
        out_specs=(pl.BlockSpec((None, Lq, Lk), lambda b: (b, 0, 0)),
                   pl.BlockSpec((None, Lq, 1), lambda b: (b, 0, 0))),
        compiler_params=pltpu.CompilerParams(
            dimension_semantics=("parallel",), vmem_limit_bytes=_VMEM_LIMIT),
        cost_estimate=pl.CostEstimate(
            flops=int(2 * B * Lq * Lk * D),
            transcendentals=int(B * Lq * (Lk + 1)),
            bytes_accessed=_bytes_of([keypad_src, dec, enc], [])),
    )(keypad_src, dec, enc, params["gate_w"], params["gate_b"])

    # 2) logsumexp of in-vocab logits, online over vocab tiles       grid=(B,nV)
    lse = pl.pallas_call(
        _vocab_lse_kernel,
        out_shape=jax.ShapeDtypeStruct((B, Lq, 1), jnp.float32),
        grid=(B, nv),
        in_specs=[pl.BlockSpec((None, Lq, D), lambda b, v: (b, 0, 0)),
                  pl.BlockSpec((D, tv), lambda b, v: (0, v)),
                  pl.BlockSpec((1, tv), lambda b, v: (0, v))],
        out_specs=pl.BlockSpec((None, Lq, 1), lambda b, v: (b, 0, 0)),
        scratch_shapes=[pltpu.VMEM((Lq, 1), jnp.float32),
                        pltpu.VMEM((Lq, 1), jnp.float32)],
        compiler_params=pltpu.CompilerParams(
            dimension_semantics=("parallel", "arbitrary"),
            vmem_limit_bytes=_VMEM_LIMIT),
        cost_estimate=pl.CostEstimate(
            flops=int(2 * B * Lq * D * Vp), transcendentals=int(B * Lq * Vp),
            bytes_accessed=_bytes_of([dec, params["proj_w"], params["proj_b"]],
                                     [])),
    )(dec, params["proj_w"], params["proj_b"])

    # 3) per-vocab-tile gated mixture + log                          grid=(B,nV)
    out_shape = jax.ShapeDtypeStruct((B, Lq, Vp), jnp.float32)
    kern = functools.partial(_copy_out_kernel, tile_v=tv)
    out = pl.pallas_call(
        kern,
        out_shape=out_shape,
        grid=(B, nv),
        in_specs=[pl.BlockSpec((None, Lk, 1), lambda b, v: (b, 0, 0)),
                  pl.BlockSpec((None, Lq, D), lambda b, v: (b, 0, 0)),
                  pl.BlockSpec((None, Lq, 1), lambda b, v: (b, 0, 0)),
                  pl.BlockSpec((None, Lq, 1), lambda b, v: (b, 0, 0)),
                  pl.BlockSpec((None, Lq, Lk), lambda b, v: (b, 0, 0)),
                  pl.BlockSpec((D, tv), lambda b, v: (0, v)),
                  pl.BlockSpec((1, tv), lambda b, v: (0, v))],
        out_specs=pl.BlockSpec((None, Lq, tv), lambda b, v: (b, 0, v)),
        compiler_params=pltpu.CompilerParams(
            dimension_semantics=("parallel", "parallel"),
            vmem_limit_bytes=_VMEM_LIMIT),
        cost_estimate=pl.CostEstimate(
            flops=int(2 * B * Lq * Vp * (D + Lk)),
            transcendentals=int(2 * B * Lq * Vp),
            bytes_accessed=_bytes_of([ids, dec, lse, gate, copy_w,
                                      params["proj_w"], params["proj_b"]],
                                     [out_shape])),
    )(ids, dec, lse, gate, copy_w, params["proj_w"], params["proj_b"])
    return out[:, :, :vocab_size]


# ------------------------------- JAX glue ------------------------------------

def positional_embedding(L, D):
    position = np.arange(L, dtype=np.float32)[:, None]
    div = np.exp(np.arange(0, D, 2, dtype=np.float32) * -(math.log(10000.0) / D))
    pe = np.zeros((L, D), np.float32)
    pe[:, 0::2] = np.sin(position * div)
    pe[:, 1::2] = np.cos(position * div)
    return jnp.asarray(pe)


def forward(params, input_ids, term_m, trip_m, ent_m, fact_m, gath_m, tgt_seq,
            cfg):
    B, Ls = input_ids.shape
    Lt = tgt_seq.shape[1]
    D = cfg["hidden_size"]
    H = cfg["n_head"]
    dk = dv = D // H
    pad = cfg["pad_idx"]
    emb = params["embedding"]

    # ----- encode -----
    enc = (emb[input_ids] + positional_embedding(Ls, D)[None]).astype(jnp.bfloat16)
    enc_nonpad = (input_ids != pad).astype(jnp.float32)[:, :, None]
    enc_masks = [term_m, term_m, trip_m, ent_m, fact_m, gath_m]   # layer routing
    for li, lp in enumerate(params["enc_layers"]):
        m = enc_masks[li].astype(jnp.bfloat16)                    # graph mask
        enc = mha_block(enc, enc, m, enc_nonpad, lp["slf"], H, dk, dv,
                        mask_kind="full")
        enc = ffn_block(enc, enc_nonpad, lp["ffn"])

    # ----- decoder masks (causal/key-pad built in-kernel from these vectors) ---
    nonpad_t = (tgt_seq != pad).astype(jnp.float32)[:, :, None]
    keypad_t = (tgt_seq == pad).astype(jnp.int32)[:, None, :]      # (B,1,Lt)
    keypad_s = (input_ids == pad).astype(jnp.int32)[:, None, :]    # (B,1,Ls)

    # ----- decode -----
    dec = (emb[tgt_seq] + positional_embedding(Lt, D)[None]).astype(jnp.bfloat16)
    for lp in params["dec_layers"]:
        dec = mha_block(dec, dec, keypad_t, nonpad_t, lp["slf"], H, dk, dv,
                        mask_kind="keypad", causal=True)
        dec = mha_block(dec, enc, keypad_s, nonpad_t, lp["enc"], H, dk, dv,
                        mask_kind="keypad")
        dec = ffn_block(dec, nonpad_t, lp["ffn"])

    # ----- gated copy head -----
    return copy_head(dec, enc, input_ids, keypad_s, params, cfg["vocab_size"])


# ---------------------------- parameter init ----------------------------------

def init_params(key, cfg):
    D = cfg["hidden_size"]
    V = cfg["vocab_size"]
    H = cfg["n_head"]
    dk = dv = D // H
    Dh = D * 4
    Vp = ((V + 127) // 128) * 128
    keys = iter(jax.random.split(key, 1024))

    def lin(din, dout, scale):
        w = jax.random.normal(next(keys), (din, dout), jnp.float32) * scale
        b = jax.random.normal(next(keys), (dout,), jnp.float32) * 0.01
        return w, b

    def mha_p():
        wq, bq = lin(D, H * dk, np.sqrt(2.0 / (D + dk)))
        wk, bk = lin(D, H * dk, np.sqrt(2.0 / (D + dk)))
        wv, bv = lin(D, H * dv, np.sqrt(2.0 / (D + dv)))
        wfc, bfc = lin(H * dv, D, np.sqrt(2.0 / (H * dv + D)))
        return dict(
            wqkv=jnp.concatenate([wq, wk, wv], axis=1).astype(jnp.bfloat16),
            bqkv=jnp.concatenate([bq, bk, bv]).reshape(1, -1),
            wfc=wfc.astype(jnp.bfloat16),
            bfc=bfc.reshape(1, D),
            ln_g=jnp.ones((1, D), jnp.float32),
            ln_b=jnp.zeros((1, D), jnp.float32))

    def ffn_p():
        w1, b1 = lin(D, Dh, 0.1)
        w2, b2 = lin(Dh, D, 0.1)
        return dict(w1=w1.astype(jnp.bfloat16), b1=b1.reshape(1, Dh),
                    w2=w2.astype(jnp.bfloat16), b2=b2.reshape(1, D),
                    ln_g=jnp.ones((1, D), jnp.float32),
                    ln_b=jnp.zeros((1, D), jnp.float32))

    enc_layers = [dict(slf=mha_p(), ffn=ffn_p()) for _ in range(cfg["n_layers"])]
    dec_layers = [dict(slf=mha_p(), enc=mha_p(), ffn=ffn_p())
                  for _ in range(cfg["n_layers"])]
    embedding = jax.random.normal(next(keys), (V, D), jnp.float32) * 0.1

    gate_w, gate_b = lin(D, 1, 0.1)
    proj_w, proj_b = lin(D, V, 0.1)
    # pad vocab to a lane-dense 128 multiple; padded columns get a -1e30 bias so
    # they contribute nothing to the softmax and are sliced off afterwards.
    proj_w_p = jnp.zeros((D, Vp), jnp.float32).at[:, :V].set(proj_w)
    proj_b_p = jnp.full((1, Vp), -1e30, jnp.float32).at[0, :V].set(proj_b)
    return dict(embedding=embedding, enc_layers=enc_layers, dec_layers=dec_layers,
                gate_w=gate_w.reshape(1, D), gate_b=gate_b.reshape(1, 1),
                proj_w=proj_w_p.astype(jnp.bfloat16), proj_b=proj_b_p)


# --------------------------------- main ---------------------------------------

if __name__ == "__main__":
    cfg = dict(vocab_size=50, hidden_size=32, n_head=4, n_layers=6, pad_idx=0,
               sos_idx=1, eos_idx=2)
    B, Ls, Lt = 2, 10, 8

    master = jax.random.PRNGKey(0)
    k_par, k_src, k_tgt = jax.random.split(master, 3)
    params = init_params(k_par, cfg)

    input_ids = jax.random.randint(k_src, (B, Ls), 3, cfg["vocab_size"],
                                   dtype=jnp.int32)
    input_ids = input_ids.at[0, 8:].set(cfg["pad_idx"])
    input_ids = input_ids.at[1, 9:].set(cfg["pad_idx"])

    tgt_seq = jax.random.randint(k_tgt, (B, Lt), 3, cfg["vocab_size"],
                                 dtype=jnp.int32)
    tgt_seq = tgt_seq.at[:, 0].set(cfg["sos_idx"])
    tgt_seq = tgt_seq.at[0, 6:].set(cfg["pad_idx"])

    # graph-level encoder self-attention masks (key-padding style booleans)
    keypad_src = jnp.broadcast_to((input_ids == cfg["pad_idx"])[:, None, :],
                                  (B, Ls, Ls))
    term_m = keypad_src
    trip_m = keypad_src
    ent_m = keypad_src
    fact_m = keypad_src
    gath_m = keypad_src

    fwd = jax.jit(functools.partial(forward, cfg=cfg))
    out = fwd(params, input_ids, term_m, trip_m, ent_m, fact_m, gath_m, tgt_seq)
    out = jax.block_until_ready(out)
    assert out.shape == (B, Lt, cfg["vocab_size"])
    assert bool(jnp.all(jnp.isfinite(out)))
    print("KERNEL_OK")
</pallas_src>

<mosaic_0001>
module attributes {stable_mosaic.version = 11 : i64} {
  func.func @kernel(%arg0: i32, %arg1: i32, %arg2: memref<1x10x10xbf16, #tpu.memory_space<vmem>>, %arg3: memref<1x10x1xf32, #tpu.memory_space<vmem>>, %arg4: memref<1x10x32xbf16, #tpu.memory_space<vmem>>, %arg5: memref<32x96xbf16, #tpu.memory_space<vmem>>, %arg6: memref<1x96xf32, #tpu.memory_space<vmem>>, %arg7: memref<32x32xbf16, #tpu.memory_space<vmem>>, %arg8: memref<1x32xf32, #tpu.memory_space<vmem>>, %arg9: memref<1x32xf32, #tpu.memory_space<vmem>>, %arg10: memref<1x32xf32, #tpu.memory_space<vmem>>, %arg11: memref<1x10x32xbf16, #tpu.memory_space<vmem>>) attributes {dimension_semantics = [#tpu.dimension_semantics<parallel>, #tpu.dimension_semantics<parallel>], iteration_bounds = array<i64: 2, 1>, scalar_prefetch = 0 : i64, scratch_operands = 0 : i64, tpu.core_type = #tpu.core_type<tc>, window_params = [{transform_indices = @transform_0, window_bounds = array<i64: 1, 10, 10>}, {transform_indices = @transform_1, window_bounds = array<i64: 1, 10, 1>}, {transform_indices = @transform_2, window_bounds = array<i64: 1, 10, 32>}, {pipeline_mode = #tpu.pipeline_mode<synchronous>, transform_indices = @transform_3, window_bounds = array<i64: 32, 96>}, {pipeline_mode = #tpu.pipeline_mode<synchronous>, transform_indices = @transform_4, window_bounds = array<i64: 1, 96>}, {pipeline_mode = #tpu.pipeline_mode<synchronous>, transform_indices = @transform_5, window_bounds = array<i64: 32, 32>}, {pipeline_mode = #tpu.pipeline_mode<synchronous>, transform_indices = @transform_6, window_bounds = array<i64: 1, 32>}, {pipeline_mode = #tpu.pipeline_mode<synchronous>, transform_indices = @transform_7, window_bounds = array<i64: 1, 32>}, {pipeline_mode = #tpu.pipeline_mode<synchronous>, transform_indices = @transform_8, window_bounds = array<i64: 1, 32>}, {transform_indices = @transform_9, window_bounds = array<i64: 1, 10, 32>}]} {
    %c0 = arith.constant 0 : index
    %c0_0 = arith.constant 0 : index
    %c0_1 = arith.constant 0 : index
    %0 = vector.load %arg4[%c0, %c0_0, %c0_1] : memref<1x10x32xbf16, #tpu.memory_space<vmem>>, vector<1x10x32xbf16>
    %1 = vector.shape_cast %0 : vector<1x10x32xbf16> to vector<10x32xbf16>
    %c0_2 = arith.constant 0 : index
    %c0_3 = arith.constant 0 : index
    %2 = vector.load %arg5[%c0_2, %c0_3] : memref<32x96xbf16, #tpu.memory_space<vmem>>, vector<32x96xbf16>
    %cst = arith.constant dense<0.000000e+00> : vector<10x96xf32>
    %3 = tpu.matmul %1, %2, %cst {dimension_numbers = #tpu.dot_dimension_numbers<[1], [0], [0], [1], [0, 0, 1, 1], [], []>} : vector<10x32xbf16>, vector<32x96xbf16>, vector<10x96xf32> -> vector<10x96xf32>
    %c0_4 = arith.constant 0 : index
    %c0_5 = arith.constant 0 : index
    %4 = vector.load %arg6[%c0_4, %c0_5] : memref<1x96xf32, #tpu.memory_space<vmem>>, vector<1x96xf32>
    %5 = vector.broadcast %4 : vector<1x96xf32> to vector<10x96xf32>
    %6 = arith.addf %3, %5 : vector<10x96xf32>
    %7 = vector.extract_strided_slice %6 {offsets = [0, 0], sizes = [10, 32], strides = [1, 1]} : vector<10x96xf32> to vector<10x32xf32>
    %8 = vector.extract_strided_slice %6 {offsets = [0, 32], sizes = [10, 32], strides = [1, 1]} : vector<10x96xf32> to vector<10x32xf32>
    %9 = vector.extract_strided_slice %6 {offsets = [0, 64], sizes = [10, 32], strides = [1, 1]} : vector<10x96xf32> to vector<10x32xf32>
    %c0_6 = arith.constant 0 : index
    %c0_7 = arith.constant 0 : index
    %c0_8 = arith.constant 0 : index
    %10 = vector.load %arg2[%c0_6, %c0_7, %c0_8] : memref<1x10x10xbf16, #tpu.memory_space<vmem>>, vector<1x10x10xbf16>
    %11 = vector.shape_cast %10 : vector<1x10x10xbf16> to vector<10x10xbf16>
    %cst_9 = arith.constant 5.000000e-01 : bf16
    %12 = vector.broadcast %cst_9 : bf16 to vector<10x10xbf16>
    %13 = arith.cmpf ogt, %11, %12 : vector<10x10xbf16>
    %c0_10 = arith.constant 0 : index
    %c0_11 = arith.constant 0 : index
    %14 = vector.load %arg7[%c0_10, %c0_11] : memref<32x32xbf16, #tpu.memory_space<vmem>>, vector<32x32xbf16>
    %cst_12 = arith.constant 0.000000e+00 : f32
    %15 = vector.broadcast %cst_12 : f32 to vector<10x32xf32>
    %16 = vector.extract_strided_slice %7 {offsets = [0, 0], sizes = [10, 8], strides = [1, 1]} : vector<10x32xf32> to vector<10x8xf32>
    %17 = arith.truncf %16 : vector<10x8xf32> to vector<10x8xbf16>
    %18 = vector.extract_strided_slice %8 {offsets = [0, 0], sizes = [10, 8], strides = [1, 1]} : vector<10x32xf32> to vector<10x8xf32>
    %19 = arith.truncf %18 : vector<10x8xf32> to vector<10x8xbf16>
    %20 = vector.extract_strided_slice %9 {offsets = [0, 0], sizes = [10, 8], strides = [1, 1]} : vector<10x32xf32> to vector<10x8xf32>
    %21 = arith.truncf %20 : vector<10x8xf32> to vector<10x8xbf16>
    %cst_13 = arith.constant dense<0.000000e+00> : vector<10x10xf32>
    %22 = tpu.matmul %17, %19, %cst_13 {dimension_numbers = #tpu.dot_dimension_numbers<[1], [1], [0], [0], [0, 0, 1, 0], [], []>} : vector<10x8xbf16>, vector<10x8xbf16>, vector<10x10xf32> -> vector<10x10xf32>
    %cst_14 = arith.constant 0.353553385 : f32
    %23 = vector.broadcast %cst_14 : f32 to vector<10x10xf32>
    %24 = arith.mulf %22, %23 : vector<10x10xf32>
    %cst_15 = arith.constant -1.000000e+09 : f32
    %25 = vector.broadcast %cst_15 : f32 to vector<10x10xf32>
    %26 = arith.select %13, %25, %24 : vector<10x10xi1>, vector<10x10xf32>
    %cst_16 = arith.constant dense<0xFF800000> : vector<10xf32>
    %27 = vector.multi_reduction <maximumf>, %26, %cst_16 [1] : vector<10x10xf32> to vector<10xf32>
    %28 = vector.shape_cast %27 : vector<10xf32> to vector<10x1xf32>
    %29 = vector.broadcast %28 : vector<10x1xf32> to vector<10x10xf32>
    %30 = arith.subf %26, %29 : vector<10x10xf32>
    %31 = math.exp %30 : vector<10x10xf32>
    %cst_17 = arith.constant dense<0.000000e+00> : vector<10xf32>
    %32 = vector.multi_reduction <add>, %31, %cst_17 [1] : vector<10x10xf32> to vector<10xf32>
    %33 = vector.shape_cast %32 : vector<10xf32> to vector<10x1xf32>
    %34 = tpu.reciprocal %33 {approx = true} : vector<10x1xf32> -> vector<10x1xf32>
    %35 = vector.broadcast %34 : vector<10x1xf32> to vector<10x10xf32>
    %36 = arith.mulf %31, %35 : vector<10x10xf32>
    %37 = arith.truncf %36 : vector<10x10xf32> to vector<10x10xbf16>
    %cst_18 = arith.constant dense<0.000000e+00> : vector<10x8xf32>
    %38 = tpu.matmul %37, %21, %cst_18 {dimension_numbers = #tpu.dot_dimension_numbers<[1], [0], [0], [1], [0, 0, 1, 1], [], []>} : vector<10x10xbf16>, vector<10x8xbf16>, vector<10x8xf32> -> vector<10x8xf32>
    %39 = arith.truncf %38 : vector<10x8xf32> to vector<10x8xbf16>
    %40 = vector.extract_strided_slice %14 {offsets = [0, 0], sizes = [8, 32], strides = [1, 1]} : vector<32x32xbf16> to vector<8x32xbf16>
    %cst_19 = arith.constant dense<0.000000e+00> : vector<10x32xf32>
    %41 = tpu.matmul %39, %40, %cst_19 {dimension_numbers = #tpu.dot_dimension_numbers<[1], [0], [0], [1], [0, 0, 1, 1], [], []>} : vector<10x8xbf16>, vector<8x32xbf16>, vector<10x32xf32> -> vector<10x32xf32>
    %42 = arith.addf %15, %41 : vector<10x32xf32>
    %43 = vector.extract_strided_slice %7 {offsets = [0, 8], sizes = [10, 8], strides = [1, 1]} : vector<10x32xf32> to vector<10x8xf32>
    %44 = arith.truncf %43 : vector<10x8xf32> to vector<10x8xbf16>
    %45 = vector.extract_strided_slice %8 {offsets = [0, 8], sizes = [10, 8], strides = [1, 1]} : vector<10x32xf32> to vector<10x8xf32>
    %46 = arith.truncf %45 : vector<10x8xf32> to vector<10x8xbf16>
    %47 = vector.extract_strided_slice %9 {offsets = [0, 8], sizes = [10, 8], strides = [1, 1]} : vector<10x32xf32> to vector<10x8xf32>
    %48 = arith.truncf %47 : vector<10x8xf32> to vector<10x8xbf16>
    %cst_20 = arith.constant dense<0.000000e+00> : vector<10x10xf32>
    %49 = tpu.matmul %44, %46, %cst_20 {dimension_numbers = #tpu.dot_dimension_numbers<[1], [1], [0], [0], [0, 0, 1, 0], [], []>} : vector<10x8xbf16>, vector<10x8xbf16>, vector<10x10xf32> -> vector<10x10xf32>
    %cst_21 = arith.constant 0.353553385 : f32
    %50 = vector.broadcast %cst_21 : f32 to vector<10x10xf32>
    %51 = arith.mulf %49, %50 : vector<10x10xf32>
    %cst_22 = arith.constant -1.000000e+09 : f32
    %52 = vector.broadcast %cst_22 : f32 to vector<10x10xf32>
    %53 = arith.select %13, %52, %51 : vector<10x10xi1>, vector<10x10xf32>
    %cst_23 = arith.constant dense<0xFF800000> : vector<10xf32>
    %54 = vector.multi_reduction <maximumf>, %53, %cst_23 [1] : vector<10x10xf32> to vector<10xf32>
    %55 = vector.shape_cast %54 : vector<10xf32> to vector<10x1xf32>
    %56 = vector.broadcast %55 : vector<10x1xf32> to vector<10x10xf32>
    %57 = arith.subf %53, %56 : vector<10x10xf32>
    %58 = math.exp %57 : vector<10x10xf32>
    %cst_24 = arith.constant dense<0.000000e+00> : vector<10xf32>
    %59 = vector.multi_reduction <add>, %58, %cst_24 [1] : vector<10x10xf32> to vector<10xf32>
    %60 = vector.shape_cast %59 : vector<10xf32> to vector<10x1xf32>
    %61 = tpu.reciprocal %60 {approx = true} : vector<10x1xf32> -> vector<10x1xf32>
    %62 = vector.broadcast %61 : vector<10x1xf32> to vector<10x10xf32>
    %63 = arith.mulf %58, %62 : vector<10x10xf32>
    %64 = arith.truncf %63 : vector<10x10xf32> to vector<10x10xbf16>
    %cst_25 = arith.constant dense<0.000000e+00> : vector<10x8xf32>
    %65 = tpu.matmul %64, %48, %cst_25 {dimension_numbers = #tpu.dot_dimension_numbers<[1], [0], [0], [1], [0, 0, 1, 1], [], []>} : vector<10x10xbf16>, vector<10x8xbf16>, vector<10x8xf32> -> vector<10x8xf32>
    %66 = arith.truncf %65 : vector<10x8xf32> to vector<10x8xbf16>
    %67 = vector.extract_strided_slice %14 {offsets = [8, 0], sizes = [8, 32], strides = [1, 1]} : vector<32x32xbf16> to vector<8x32xbf16>
    %cst_26 = arith.constant dense<0.000000e+00> : vector<10x32xf32>
    %68 = tpu.matmul %66, %67, %cst_26 {dimension_numbers = #tpu.dot_dimension_numbers<[1], [0], [0], [1], [0, 0, 1, 1], [], []>} : vector<10x8xbf16>, vector<8x32xbf16>, vector<10x32xf32> -> vector<10x32xf32>
    %69 = arith.addf %42, %68 : vector<10x32xf32>
    %70 = vector.extract_strided_slice %7 {offsets = [0, 16], sizes = [10, 8], strides = [1, 1]} : vector<10x32xf32> to vector<10x8xf32>
    %71 = arith.truncf %70 : vector<10x8xf32> to vector<10x8xbf16>
    %72 = vector.extract_strided_slice %8 {offsets = [0, 16], sizes = [10, 8], strides = [1, 1]} : vector<10x32xf32> to vector<10x8xf32>
    %73 = arith.truncf %72 : vector<10x8xf32> to vector<10x8xbf16>
    %74 = vector.extract_strided_slice %9 {offsets = [0, 16], sizes = [10, 8], strides = [1, 1]} : vector<10x32xf32> to vector<10x8xf32>
    %75 = arith.truncf %74 : vector<10x8xf32> to vector<10x8xbf16>
    %cst_27 = arith.constant dense<0.000000e+00> : vector<10x10xf32>
    %76 = tpu.matmul %71, %73, %cst_27 {dimension_numbers = #tpu.dot_dimension_numbers<[1], [1], [0], [0], [0, 0, 1, 0], [], []>} : vector<10x8xbf16>, vector<10x8xbf16>, vector<10x10xf32> -> vector<10x10xf32>
    %cst_28 = arith.constant 0.353553385 : f32
    %77 = vector.broadcast %cst_28 : f32 to vector<10x10xf32>
    %78 = arith.mulf %76, %77 : vector<10x10xf32>
    %cst_29 = arith.constant -1.000000e+09 : f32
    %79 = vector.broadcast %cst_29 : f32 to vector<10x10xf32>
    %80 = arith.select %13, %79, %78 : vector<10x10xi1>, vector<10x10xf32>
    %cst_30 = arith.constant dense<0xFF800000> : vector<10xf32>
    %81 = vector.multi_reduction <maximumf>, %80, %cst_30 [1] : vector<10x10xf32> to vector<10xf32>
    %82 = vector.shape_cast %81 : vector<10xf32> to vector<10x1xf32>
    %83 = vector.broadcast %82 : vector<10x1xf32> to vector<10x10xf32>
    %84 = arith.subf %80, %83 : vector<10x10xf32>
    %85 = math.exp %84 : vector<10x10xf32>
    %cst_31 = arith.constant dense<0.000000e+00> : vector<10xf32>
    %86 = vector.multi_reduction <add>, %85, %cst_31 [1] : vector<10x10xf32> to vector<10xf32>
    %87 = vector.shape_cast %86 : vector<10xf32> to vector<10x1xf32>
    %88 = tpu.reciprocal %87 {approx = true} : vector<10x1xf32> -> vector<10x1xf32>
    %89 = vector.broadcast %88 : vector<10x1xf32> to vector<10x10xf32>
    %90 = arith.mulf %85, %89 : vector<10x10xf32>
    %91 = arith.truncf %90 : vector<10x10xf32> to vector<10x10xbf16>
    %cst_32 = arith.constant dense<0.000000e+00> : vector<10x8xf32>
    %92 = tpu.matmul %91, %75, %cst_32 {dimension_numbers = #tpu.dot_dimension_numbers<[1], [0], [0], [1], [0, 0, 1, 1], [], []>} : vector<10x10xbf16>, vector<10x8xbf16>, vector<10x8xf32> -> vector<10x8xf32>
    %93 = arith.truncf %92 : vector<10x8xf32> to vector<10x8xbf16>
    %94 = vector.extract_strided_slice %14 {offsets = [16, 0], sizes = [8, 32], strides = [1, 1]} : vector<32x32xbf16> to vector<8x32xbf16>
    %cst_33 = arith.constant dense<0.000000e+00> : vector<10x32xf32>
    %95 = tpu.matmul %93, %94, %cst_33 {dimension_numbers = #tpu.dot_dimension_numbers<[1], [0], [0], [1], [0, 0, 1, 1], [], []>} : vector<10x8xbf16>, vector<8x32xbf16>, vector<10x32xf32> -> vector<10x32xf32>
    %96 = arith.addf %69, %95 : vector<10x32xf32>
    %97 = vector.extract_strided_slice %7 {offsets = [0, 24], sizes = [10, 8], strides = [1, 1]} : vector<10x32xf32> to vector<10x8xf32>
    %98 = arith.truncf %97 : vector<10x8xf32> to vector<10x8xbf16>
    %99 = vector.extract_strided_slice %8 {offsets = [0, 24], sizes = [10, 8], strides = [1, 1]} : vector<10x32xf32> to vector<10x8xf32>
    %100 = arith.truncf %99 : vector<10x8xf32> to vector<10x8xbf16>
    %101 = vector.extract_strided_slice %9 {offsets = [0, 24], sizes = [10, 8], strides = [1, 1]} : vector<10x32xf32> to vector<10x8xf32>
    %102 = arith.truncf %101 : vector<10x8xf32> to vector<10x8xbf16>
    %cst_34 = arith.constant dense<0.000000e+00> : vector<10x10xf32>
    %103 = tpu.matmul %98, %100, %cst_34 {dimension_numbers = #tpu.dot_dimension_numbers<[1], [1], [0], [0], [0, 0, 1, 0], [], []>} : vector<10x8xbf16>, vector<10x8xbf16>, vector<10x10xf32> -> vector<10x10xf32>
    %cst_35 = arith.constant 0.353553385 : f32
    %104 = vector.broadcast %cst_35 : f32 to vector<10x10xf32>
    %105 = arith.mulf %103, %104 : vector<10x10xf32>
    %cst_36 = arith.constant -1.000000e+09 : f32
    %106 = vector.broadcast %cst_36 : f32 to vector<10x10xf32>
    %107 = arith.select %13, %106, %105 : vector<10x10xi1>, vector<10x10xf32>
    %cst_37 = arith.constant dense<0xFF800000> : vector<10xf32>
    %108 = vector.multi_reduction <maximumf>, %107, %cst_37 [1] : vector<10x10xf32> to vector<10xf32>
    %109 = vector.shape_cast %108 : vector<10xf32> to vector<10x1xf32>
    %110 = vector.broadcast %109 : vector<10x1xf32> to vector<10x10xf32>
    %111 = arith.subf %107, %110 : vector<10x10xf32>
    %112 = math.exp %111 : vector<10x10xf32>
    %cst_38 = arith.constant dense<0.000000e+00> : vector<10xf32>
    %113 = vector.multi_reduction <add>, %112, %cst_38 [1] : vector<10x10xf32> to vector<10xf32>
    %114 = vector.shape_cast %113 : vector<10xf32> to vector<10x1xf32>
    %115 = tpu.reciprocal %114 {approx = true} : vector<10x1xf32> -> vector<10x1xf32>
    %116 = vector.broadcast %115 : vector<10x1xf32> to vector<10x10xf32>
    %117 = arith.mulf %112, %116 : vector<10x10xf32>
    %118 = arith.truncf %117 : vector<10x10xf32> to vector<10x10xbf16>
    %cst_39 = arith.constant dense<0.000000e+00> : vector<10x8xf32>
    %119 = tpu.matmul %118, %102, %cst_39 {dimension_numbers = #tpu.dot_dimension_numbers<[1], [0], [0], [1], [0, 0, 1, 1], [], []>} : vector<10x10xbf16>, vector<10x8xbf16>, vector<10x8xf32> -> vector<10x8xf32>
    %120 = arith.truncf %119 : vector<10x8xf32> to vector<10x8xbf16>
    %121 = vector.extract_strided_slice %14 {offsets = [24, 0], sizes = [8, 32], strides = [1, 1]} : vector<32x32xbf16> to vector<8x32xbf16>
    %cst_40 = arith.constant dense<0.000000e+00> : vector<10x32xf32>
    %122 = tpu.matmul %120, %121, %cst_40 {dimension_numbers = #tpu.dot_dimension_numbers<[1], [0], [0], [1], [0, 0, 1, 1], [], []>} : vector<10x8xbf16>, vector<8x32xbf16>, vector<10x32xf32> -> vector<10x32xf32>
    %123 = arith.addf %96, %122 : vector<10x32xf32>
    %c0_41 = arith.constant 0 : index
    %c0_42 = arith.constant 0 : index
    %124 = vector.load %arg8[%c0_41, %c0_42] : memref<1x32xf32, #tpu.memory_space<vmem>>, vector<1x32xf32>
    %125 = vector.broadcast %124 : vector<1x32xf32> to vector<10x32xf32>
    %126 = arith.addf %123, %125 : vector<10x32xf32>
    %127 = arith.extf %1 : vector<10x32xbf16> to vector<10x32xf32>
    %128 = arith.addf %126, %127 : vector<10x32xf32>
    %cst_43 = arith.constant dense<0.000000e+00> : vector<10xf32>
    %129 = vector.multi_reduction <add>, %128, %cst_43 [1] : vector<10x32xf32> to vector<10xf32>
    %130 = vector.shape_cast %129 : vector<10xf32> to vector<10x1xf32>
    %cst_44 = arith.constant 3.200000e+01 : f32
    %131 = vector.broadcast %cst_44 : f32 to vector<10x1xf32>
    %132 = arith.divf %130, %131 : vector<10x1xf32>
    %133 = vector.broadcast %132 : vector<10x1xf32> to vector<10x32xf32>
    %134 = arith.subf %128, %133 : vector<10x32xf32>
    %135 = arith.mulf %134, %134 : vector<10x32xf32>
    %cst_45 = arith.constant dense<0.000000e+00> : vector<10xf32>
    %136 = vector.multi_reduction <add>, %135, %cst_45 [1] : vector<10x32xf32> to vector<10xf32>
    %137 = vector.shape_cast %136 : vector<10xf32> to vector<10x1xf32>
    %cst_46 = arith.constant 3.200000e+01 : f32
    %138 = vector.broadcast %cst_46 : f32 to vector<10x1xf32>
    %139 = arith.divf %137, %138 : vector<10x1xf32>
    %140 = vector.broadcast %132 : vector<10x1xf32> to vector<10x32xf32>
    %141 = arith.subf %128, %140 : vector<10x32xf32>
    %cst_47 = arith.constant 9.99999974E-6 : f32
    %142 = vector.broadcast %cst_47 : f32 to vector<10x1xf32>
    %143 = arith.addf %139, %142 : vector<10x1xf32>
    %144 = math.rsqrt %143 : vector<10x1xf32>
    %145 = vector.broadcast %144 : vector<10x1xf32> to vector<10x32xf32>
    %146 = arith.mulf %141, %145 : vector<10x32xf32>
    %c0_48 = arith.constant 0 : index
    %c0_49 = arith.constant 0 : index
    %147 = vector.load %arg9[%c0_48, %c0_49] : memref<1x32xf32, #tpu.memory_space<vmem>>, vector<1x32xf32>
    %148 = vector.broadcast %147 : vector<1x32xf32> to vector<10x32xf32>
    %149 = arith.mulf %146, %148 : vector<10x32xf32>
    %c0_50 = arith.constant 0 : index
    %c0_51 = arith.constant 0 : index
    %150 = vector.load %arg10[%c0_50, %c0_51] : memref<1x32xf32, #tpu.memory_space<vmem>>, vector<1x32xf32>
    %151 = vector.broadcast %150 : vector<1x32xf32> to vector<10x32xf32>
    %152 = arith.addf %149, %151 : vector<10x32xf32>
    %c0_52 = arith.constant 0 : index
    %c0_53 = arith.constant 0 : index
    %c0_54 = arith.constant 0 : index
    %153 = vector.load %arg3[%c0_52, %c0_53, %c0_54] : memref<1x10x1xf32, #tpu.memory_space<vmem>>, vector<1x10x1xf32>
    %154 = vector.shape_cast %153 : vector<1x10x1xf32> to vector<10x1xf32>
    %155 = vector.broadcast %154 : vector<10x1xf32> to vector<10x32xf32>
    %156 = arith.mulf %152, %155 : vector<10x32xf32>
    %157 = arith.truncf %156 : vector<10x32xf32> to vector<10x32xbf16>
    %c0_55 = arith.constant 0 : index
    %c0_56 = arith.constant 0 : index
    %c0_57 = arith.constant 0 : index
    %158 = vector.load %arg11[%c0_55, %c0_56, %c0_57] : memref<1x10x32xbf16, #tpu.memory_space<vmem>>, vector<1x10x32xbf16>
    %159 = vector.shape_cast %158 : vector<1x10x32xbf16> to vector<10x32xbf16>
    %160 = vector.shape_cast %157 : vector<10x32xbf16> to vector<1x10x32xbf16>
    tpu.vector_store %arg11[%c0_55, %c0_56, %c0_57], %160 {strides = array<i32>} : memref<1x10x32xbf16, #tpu.memory_space<vmem>>, vector<1x10x32xbf16>,
    return
  }
  func.func @transform_0(%arg0: i32, %arg1: i32) -> (i32, i32, i32) {
    %c0_i32 = arith.constant 0 : i32
    %c0_i32_0 = arith.constant 0 : i32
    return %arg0, %arg1, %c0_i32 : i32, i32, i32
  }
  func.func @transform_1(%arg0: i32, %arg1: i32) -> (i32, i32, i32) {
    %c0_i32 = arith.constant 0 : i32
    %c0_i32_0 = arith.constant 0 : i32
    return %arg0, %arg1, %c0_i32 : i32, i32, i32
  }
  func.func @transform_2(%arg0: i32, %arg1: i32) -> (i32, i32, i32) {
    %c0_i32 = arith.constant 0 : i32
    %c0_i32_0 = arith.constant 0 : i32
    %c0_i32_1 = arith.constant 0 : i32
    return %arg0, %c0_i32, %c0_i32_0 : i32, i32, i32
  }
  func.func @transform_3(%arg0: i32, %arg1: i32) -> (i32, i32) {
    %c0_i32 = arith.constant 0 : i32
    %c0_i32_0 = arith.constant 0 : i32
    %c0_i32_1 = arith.constant 0 : i32
    return %c0_i32, %c0_i32_0 : i32, i32
  }
  func.func @transform_4(%arg0: i32, %arg1: i32) -> (i32, i32) {
    %c0_i32 = arith.constant 0 : i32
    %c0_i32_0 = arith.constant 0 : i32
    %c0_i32_1 = arith.constant 0 : i32
    return %c0_i32, %c0_i32_0 : i32, i32
  }
  func.func @transform_5(%arg0: i32, %arg1: i32) -> (i32, i32) {
    %c0_i32 = arith.constant 0 : i32
    %c0_i32_0 = arith.constant 0 : i32
    %c0_i32_1 = arith.constant 0 : i32
    return %c0_i32, %c0_i32_0 : i32, i32
  }
  func.func @transform_6(%arg0: i32, %arg1: i32) -> (i32, i32) {
    %c0_i32 = arith.constant 0 : i32
    %c0_i32_0 = arith.constant 0 : i32
    %c0_i32_1 = arith.constant 0 : i32
    return %c0_i32, %c0_i32_0 : i32, i32
  }
  func.func @transform_7(%arg0: i32, %arg1: i32) -> (i32, i32) {
    %c0_i32 = arith.constant 0 : i32
    %c0_i32_0 = arith.constant 0 : i32
    %c0_i32_1 = arith.constant 0 : i32
    return %c0_i32, %c0_i32_0 : i32, i32
  }
  func.func @transform_8(%arg0: i32, %arg1: i32) -> (i32, i32) {
    %c0_i32 = arith.constant 0 : i32
    %c0_i32_0 = arith.constant 0 : i32
    %c0_i32_1 = arith.constant 0 : i32
    return %c0_i32, %c0_i32_0 : i32, i32
  }
  func.func @transform_9(%arg0: i32, %arg1: i32) -> (i32, i32, i32) {
    %c0_i32 = arith.constant 0 : i32
    %c0_i32_0 = arith.constant 0 : i32
    return %arg0, %arg1, %c0_i32 : i32, i32, i32
  }
}

module attributes {stable_mosaic.version = 11 : i64} {
  func.func @_ffn_kernel(%arg0: i32, %arg1: i32, %arg2: memref<1x10x32xbf16, #tpu.memory_space<vmem>>, %arg3: memref<1x10x1xf32, #tpu.memory_space<vmem>>, %arg4: memref<32x128xbf16, #tpu.memory_space<vmem>>, %arg5: memref<1x128xf32, #tpu.memory_space<vmem>>, %arg6: memref<128x32xbf16, #tpu.memory_space<vmem>>, %arg7: memref<1x32xf32, #tpu.memory_space<vmem>>, %arg8: memref<1x32xf32, #tpu.memory_space<vmem>>, %arg9: memref<1x32xf32, #tpu.memory_space<vmem>>, %arg10: memref<1x10x32xbf16, #tpu.memory_space<vmem>>) attributes {dimension_semantics = [#tpu.dimension_semantics<parallel>, #tpu.dimension_semantics<parallel>], iteration_bounds = array<i64: 2, 1>, scalar_prefetch = 0 : i64, scratch_operands = 0 : i64, tpu.core_type = #tpu.core_type<tc>, window_params = [{transform_indices = @transform_0, window_bounds = array<i64: 1, 10, 32>}, {transform_indices = @transform_1, window_bounds = array<i64: 1, 10, 1>}, {pipeline_mode = #tpu.pipeline_mode<synchronous>, transform_indices = @transform_2, window_bounds = array<i64: 32, 128>}, {pipeline_mode = #tpu.pipeline_mode<synchronous>, transform_indices = @transform_3, window_bounds = array<i64: 1, 128>}, {pipeline_mode = #tpu.pipeline_mode<synchronous>, transform_indices = @transform_4, window_bounds = array<i64: 128, 32>}, {pipeline_mode = #tpu.pipeline_mode<synchronous>, transform_indices = @transform_5, window_bounds = array<i64: 1, 32>}, {pipeline_mode = #tpu.pipeline_mode<synchronous>, transform_indices = @transform_6, window_bounds = array<i64: 1, 32>}, {pipeline_mode = #tpu.pipeline_mode<synchronous>, transform_indices = @transform_7, window_bounds = array<i64: 1, 32>}, {transform_indices = @transform_8, window_bounds = array<i64: 1, 10, 32>}]} {
    %c0 = arith.constant 0 : index
    %c0_0 = arith.constant 0 : index
    %c0_1 = arith.constant 0 : index
    %0 = vector.load %arg2[%c0, %c0_0, %c0_1] : memref<1x10x32xbf16, #tpu.memory_space<vmem>>, vector<1x10x32xbf16>
    %1 = vector.shape_cast %0 : vector<1x10x32xbf16> to vector<10x32xbf16>
    %c0_2 = arith.constant 0 : index
    %c0_3 = arith.constant 0 : index
    %2 = vector.load %arg4[%c0_2, %c0_3] : memref<32x128xbf16, #tpu.memory_space<vmem>>, vector<32x128xbf16>
    %cst = arith.constant dense<0.000000e+00> : vector<10x128xf32>
    %3 = tpu.matmul %1, %2, %cst {dimension_numbers = #tpu.dot_dimension_numbers<[1], [0], [0], [1], [0, 0, 1, 1], [], []>} : vector<10x32xbf16>, vector<32x128xbf16>, vector<10x128xf32> -> vector<10x128xf32>
    %c0_4 = arith.constant 0 : index
    %c0_5 = arith.constant 0 : index
    %4 = vector.load %arg5[%c0_4, %c0_5] : memref<1x128xf32, #tpu.memory_space<vmem>>, vector<1x128xf32>
    %5 = vector.broadcast %4 : vector<1x128xf32> to vector<10x128xf32>
    %6 = arith.addf %3, %5 : vector<10x128xf32>
    %cst_6 = arith.constant 0.000000e+00 : f32
    %7 = vector.broadcast %cst_6 : f32 to vector<10x128xf32>
    %8 = arith.maximumf %6, %7 : vector<10x128xf32>
    %9 = arith.truncf %8 : vector<10x128xf32> to vector<10x128xbf16>
    %c0_7 = arith.constant 0 : index
    %c0_8 = arith.constant 0 : index
    %10 = vector.load %arg6[%c0_7, %c0_8] : memref<128x32xbf16, #tpu.memory_space<vmem>>, vector<128x32xbf16>
    %cst_9 = arith.constant dense<0.000000e+00> : vector<10x32xf32>
    %11 = tpu.matmul %9, %10, %cst_9 {dimension_numbers = #tpu.dot_dimension_numbers<[1], [0], [0], [1], [0, 0, 1, 1], [], []>} : vector<10x128xbf16>, vector<128x32xbf16>, vector<10x32xf32> -> vector<10x32xf32>
    %c0_10 = arith.constant 0 : index
    %c0_11 = arith.constant 0 : index
    %12 = vector.load %arg7[%c0_10, %c0_11] : memref<1x32xf32, #tpu.memory_space<vmem>>, vector<1x32xf32>
    %13 = vector.broadcast %12 : vector<1x32xf32> to vector<10x32xf32>
    %14 = arith.addf %11, %13 : vector<10x32xf32>
    %15 = arith.extf %1 : vector<10x32xbf16> to vector<10x32xf32>
    %16 = arith.addf %14, %15 : vector<10x32xf32>
    %cst_12 = arith.constant dense<0.000000e+00> : vector<10xf32>
    %17 = vector.multi_reduction <add>, %16, %cst_12 [1] : vector<10x32xf32> to vector<10xf32>
    %18 = vector.shape_cast %17 : vector<10xf32> to vector<10x1xf32>
    %cst_13 = arith.constant 3.200000e+01 : f32
    %19 = vector.broadcast %cst_13 : f32 to vector<10x1xf32>
    %20 = arith.divf %18, %19 : vector<10x1xf32>
    %21 = vector.broadcast %20 : vector<10x1xf32> to vector<10x32xf32>
    %22 = arith.subf %16, %21 : vector<10x32xf32>
    %23 = arith.mulf %22, %22 : vector<10x32xf32>
    %cst_14 = arith.constant dense<0.000000e+00> : vector<10xf32>
    %24 = vector.multi_reduction <add>, %23, %cst_14 [1] : vector<10x32xf32> to vector<10xf32>
    %25 = vector.shape_cast %24 : vector<10xf32> to vector<10x1xf32>
    %cst_15 = arith.constant 3.200000e+01 : f32
    %26 = vector.broadcast %cst_15 : f32 to vector<10x1xf32>
    %27 = arith.divf %25, %26 : vector<10x1xf32>
    %28 = vector.broadcast %20 : vector<10x1xf32> to vector<10x32xf32>
    %29 = arith.subf %16, %28 : vector<10x32xf32>
    %cst_16 = arith.constant 9.99999974E-6 : f32
    %30 = vector.broadcast %cst_16 : f32 to vector<10x1xf32>
    %31 = arith.addf %27, %30 : vector<10x1xf32>
    %32 = math.rsqrt %31 : vector<10x1xf32>
    %33 = vector.broadcast %32 : vector<10x1xf32> to vector<10x32xf32>
    %34 = arith.mulf %29, %33 : vector<10x32xf32>
    %c0_17 = arith.constant 0 : index
    %c0_18 = arith.constant 0 : index
    %35 = vector.load %arg8[%c0_17, %c0_18] : memref<1x32xf32, #tpu.memory_space<vmem>>, vector<1x32xf32>
    %36 = vector.broadcast %35 : vector<1x32xf32> to vector<10x32xf32>
    %37 = arith.mulf %34, %36 : vector<10x32xf32>
    %c0_19 = arith.constant 0 : index
    %c0_20 = arith.constant 0 : index
    %38 = vector.load %arg9[%c0_19, %c0_20] : memref<1x32xf32, #tpu.memory_space<vmem>>, vector<1x32xf32>
    %39 = vector.broadcast %38 : vector<1x32xf32> to vector<10x32xf32>
    %40 = arith.addf %37, %39 : vector<10x32xf32>
    %c0_21 = arith.constant 0 : index
    %c0_22 = arith.constant 0 : index
    %c0_23 = arith.constant 0 : index
    %41 = vector.load %arg3[%c0_21, %c0_22, %c0_23] : memref<1x10x1xf32, #tpu.memory_space<vmem>>, vector<1x10x1xf32>
    %42 = vector.shape_cast %41 : vector<1x10x1xf32> to vector<10x1xf32>
    %43 = vector.broadcast %42 : vector<10x1xf32> to vector<10x32xf32>
    %44 = arith.mulf %40, %43 : vector<10x32xf32>
    %45 = arith.truncf %44 : vector<10x32xf32> to vector<10x32xbf16>
    %c0_24 = arith.constant 0 : index
    %c0_25 = arith.constant 0 : index
    %c0_26 = arith.constant 0 : index
    %46 = vector.load %arg10[%c0_24, %c0_25, %c0_26] : memref<1x10x32xbf16, #tpu.memory_space<vmem>>, vector<1x10x32xbf16>
    %47 = vector.shape_cast %46 : vector<1x10x32xbf16> to vector<10x32xbf16>
    %48 = vector.shape_cast %45 : vector<10x32xbf16> to vector<1x10x32xbf16>
    tpu.vector_store %arg10[%c0_24, %c0_25, %c0_26], %48 {strides = array<i32>} : memref<1x10x32xbf16, #tpu.memory_space<vmem>>, vector<1x10x32xbf16>,
    return
  }
  func.func @transform_0(%arg0: i32, %arg1: i32) -> (i32, i32, i32) {
    %c0_i32 = arith.constant 0 : i32
    %c0_i32_0 = arith.constant 0 : i32
    return %arg0, %arg1, %c0_i32 : i32, i32, i32
  }
  func.func @transform_1(%arg0: i32, %arg1: i32) -> (i32, i32, i32) {
    %c0_i32 = arith.constant 0 : i32
    %c0_i32_0 = arith.constant 0 : i32
    return %arg0, %arg1, %c0_i32 : i32, i32, i32
  }
  func.func @transform_2(%arg0: i32, %arg1: i32) -> (i32, i32) {
    %c0_i32 = arith.constant 0 : i32
    %c0_i32_0 = arith.constant 0 : i32
    %c0_i32_1 = arith.constant 0 : i32
    return %c0_i32, %c0_i32_0 : i32, i32
  }
  func.func @transform_3(%arg0: i32, %arg1: i32) -> (i32, i32) {
    %c0_i32 = arith.constant 0 : i32
    %c0_i32_0 = arith.constant 0 : i32
    %c0_i32_1 = arith.constant 0 : i32
    return %c0_i32, %c0_i32_0 : i32, i32
  }
  func.func @transform_4(%arg0: i32, %arg1: i32) -> (i32, i32) {
    %c0_i32 = arith.constant 0 : i32
    %c0_i32_0 = arith.constant 0 : i32
    %c0_i32_1 = arith.constant 0 : i32
    return %c0_i32, %c0_i32_0 : i32, i32
  }
  func.func @transform_5(%arg0: i32, %arg1: i32) -> (i32, i32) {
    %c0_i32 = arith.constant 0 : i32
    %c0_i32_0 = arith.constant 0 : i32
    %c0_i32_1 = arith.constant 0 : i32
    return %c0_i32, %c0_i32_0 : i32, i32
  }
  func.func @transform_6(%arg0: i32, %arg1: i32) -> (i32, i32) {
    %c0_i32 = arith.constant 0 : i32
    %c0_i32_0 = arith.constant 0 : i32
    %c0_i32_1 = arith.constant 0 : i32
    return %c0_i32, %c0_i32_0 : i32, i32
  }
  func.func @transform_7(%arg0: i32, %arg1: i32) -> (i32, i32) {
    %c0_i32 = arith.constant 0 : i32
    %c0_i32_0 = arith.constant 0 : i32
    %c0_i32_1 = arith.constant 0 : i32
    return %c0_i32, %c0_i32_0 : i32, i32
  }
  func.func @transform_8(%arg0: i32, %arg1: i32) -> (i32, i32, i32) {
    %c0_i32 = arith.constant 0 : i32
    %c0_i32_0 = arith.constant 0 : i32
    return %arg0, %arg1, %c0_i32 : i32, i32, i32
  }
}

module attributes {stable_mosaic.version = 11 : i64} {
  func.func @kernel(%arg0: i32, %arg1: i32, %arg2: memref<1x1x8xi32, #tpu.memory_space<vmem>>, %arg3: memref<1x8x1xf32, #tpu.memory_space<vmem>>, %arg4: memref<1x8x32xbf16, #tpu.memory_space<vmem>>, %arg5: memref<32x96xbf16, #tpu.memory_space<vmem>>, %arg6: memref<1x96xf32, #tpu.memory_space<vmem>>, %arg7: memref<32x32xbf16, #tpu.memory_space<vmem>>, %arg8: memref<1x32xf32, #tpu.memory_space<vmem>>, %arg9: memref<1x32xf32, #tpu.memory_space<vmem>>, %arg10: memref<1x32xf32, #tpu.memory_space<vmem>>, %arg11: memref<1x8x32xbf16, #tpu.memory_space<vmem>>) attributes {dimension_semantics = [#tpu.dimension_semantics<parallel>, #tpu.dimension_semantics<parallel>], iteration_bounds = array<i64: 2, 1>, scalar_prefetch = 0 : i64, scratch_operands = 0 : i64, tpu.core_type = #tpu.core_type<tc>, window_params = [{transform_indices = @transform_0, window_bounds = array<i64: 1, 1, 8>}, {transform_indices = @transform_1, window_bounds = array<i64: 1, 8, 1>}, {transform_indices = @transform_2, window_bounds = array<i64: 1, 8, 32>}, {pipeline_mode = #tpu.pipeline_mode<synchronous>, transform_indices = @transform_3, window_bounds = array<i64: 32, 96>}, {pipeline_mode = #tpu.pipeline_mode<synchronous>, transform_indices = @transform_4, window_bounds = array<i64: 1, 96>}, {pipeline_mode = #tpu.pipeline_mode<synchronous>, transform_indices = @transform_5, window_bounds = array<i64: 32, 32>}, {pipeline_mode = #tpu.pipeline_mode<synchronous>, transform_indices = @transform_6, window_bounds = array<i64: 1, 32>}, {pipeline_mode = #tpu.pipeline_mode<synchronous>, transform_indices = @transform_7, window_bounds = array<i64: 1, 32>}, {pipeline_mode = #tpu.pipeline_mode<synchronous>, transform_indices = @transform_8, window_bounds = array<i64: 1, 32>}, {transform_indices = @transform_9, window_bounds = array<i64: 1, 8, 32>}]} {
    %c0 = arith.constant 0 : index
    %c0_0 = arith.constant 0 : index
    %c0_1 = arith.constant 0 : index
    %0 = vector.load %arg4[%c0, %c0_0, %c0_1] : memref<1x8x32xbf16, #tpu.memory_space<vmem>>, vector<1x8x32xbf16>
    %1 = vector.shape_cast %0 : vector<1x8x32xbf16> to vector<8x32xbf16>
    %c0_2 = arith.constant 0 : index
    %c0_3 = arith.constant 0 : index
    %2 = vector.load %arg5[%c0_2, %c0_3] : memref<32x96xbf16, #tpu.memory_space<vmem>>, vector<32x96xbf16>
    %cst = arith.constant dense<0.000000e+00> : vector<8x96xf32>
    %3 = tpu.matmul %1, %2, %cst {dimension_numbers = #tpu.dot_dimension_numbers<[1], [0], [0], [1], [0, 0, 1, 1], [], []>} : vector<8x32xbf16>, vector<32x96xbf16>, vector<8x96xf32> -> vector<8x96xf32>
    %c0_4 = arith.constant 0 : index
    %c0_5 = arith.constant 0 : index
    %4 = vector.load %arg6[%c0_4, %c0_5] : memref<1x96xf32, #tpu.memory_space<vmem>>, vector<1x96xf32>
    %5 = vector.broadcast %4 : vector<1x96xf32> to vector<8x96xf32>
    %6 = arith.addf %3, %5 : vector<8x96xf32>
    %7 = vector.extract_strided_slice %6 {offsets = [0, 0], sizes = [8, 32], strides = [1, 1]} : vector<8x96xf32> to vector<8x32xf32>
    %8 = vector.extract_strided_slice %6 {offsets = [0, 32], sizes = [8, 32], strides = [1, 1]} : vector<8x96xf32> to vector<8x32xf32>
    %9 = vector.extract_strided_slice %6 {offsets = [0, 64], sizes = [8, 32], strides = [1, 1]} : vector<8x96xf32> to vector<8x32xf32>
    %c0_6 = arith.constant 0 : index
    %c0_7 = arith.constant 0 : index
    %c0_8 = arith.constant 0 : index
    %10 = vector.load %arg2[%c0_6, %c0_7, %c0_8] : memref<1x1x8xi32, #tpu.memory_space<vmem>>, vector<1x1x8xi32>
    %11 = vector.shape_cast %10 : vector<1x1x8xi32> to vector<1x8xi32>
    %c0_i32 = arith.constant 0 : i32
    %12 = vector.broadcast %c0_i32 : i32 to vector<1x8xi32>
    %13 = arith.cmpi sgt, %11, %12 : vector<1x8xi32>
    %14 = tpu.iota {dimensions = array<i32: 0>} : vector<8x8xi32>
    %c8_i32 = arith.constant 8 : i32
    %15 = arith.muli %arg1, %c8_i32 : i32
    %16 = vector.broadcast %15 : i32 to vector<8x8xi32>
    %17 = arith.addi %14, %16 : vector<8x8xi32>
    %18 = tpu.iota {dimensions = array<i32: 1>} : vector<8x8xi32>
    %19 = arith.cmpi sgt, %18, %17 : vector<8x8xi32>
    %20 = vector.broadcast %13 : vector<1x8xi1> to vector<8x8xi1>
    %21 = arith.ori %20, %19 : vector<8x8xi1>
    %c0_9 = arith.constant 0 : index
    %c0_10 = arith.constant 0 : index
    %22 = vector.load %arg7[%c0_9, %c0_10] : memref<32x32xbf16, #tpu.memory_space<vmem>>, vector<32x32xbf16>
    %cst_11 = arith.constant 0.000000e+00 : f32
    %23 = vector.broadcast %cst_11 : f32 to vector<8x32xf32>
    %24 = vector.extract_strided_slice %7 {offsets = [0, 0], sizes = [8, 8], strides = [1, 1]} : vector<8x32xf32> to vector<8x8xf32>
    %25 = arith.truncf %24 : vector<8x8xf32> to vector<8x8xbf16>
    %26 = vector.extract_strided_slice %8 {offsets = [0, 0], sizes = [8, 8], strides = [1, 1]} : vector<8x32xf32> to vector<8x8xf32>
    %27 = arith.truncf %26 : vector<8x8xf32> to vector<8x8xbf16>
    %28 = vector.extract_strided_slice %9 {offsets = [0, 0], sizes = [8, 8], strides = [1, 1]} : vector<8x32xf32> to vector<8x8xf32>
    %29 = arith.truncf %28 : vector<8x8xf32> to vector<8x8xbf16>
    %cst_12 = arith.constant dense<0.000000e+00> : vector<8x8xf32>
    %30 = tpu.matmul %25, %27, %cst_12 {dimension_numbers = #tpu.dot_dimension_numbers<[1], [1], [0], [0], [0, 0, 1, 0], [], []>} : vector<8x8xbf16>, vector<8x8xbf16>, vector<8x8xf32> -> vector<8x8xf32>
    %cst_13 = arith.constant 0.353553385 : f32
    %31 = vector.broadcast %cst_13 : f32 to vector<8x8xf32>
    %32 = arith.mulf %30, %31 : vector<8x8xf32>
    %cst_14 = arith.constant -1.000000e+09 : f32
    %33 = vector.broadcast %cst_14 : f32 to vector<8x8xf32>
    %34 = arith.select %21, %33, %32 : vector<8x8xi1>, vector<8x8xf32>
    %cst_15 = arith.constant dense<0xFF800000> : vector<8xf32>
    %35 = vector.multi_reduction <maximumf>, %34, %cst_15 [1] : vector<8x8xf32> to vector<8xf32>
    %36 = vector.shape_cast %35 : vector<8xf32> to vector<8x1xf32>
    %37 = vector.broadcast %36 : vector<8x1xf32> to vector<8x8xf32>
    %38 = arith.subf %34, %37 : vector<8x8xf32>
    %39 = math.exp %38 : vector<8x8xf32>
    %cst_16 = arith.constant dense<0.000000e+00> : vector<8xf32>
    %40 = vector.multi_reduction <add>, %39, %cst_16 [1] : vector<8x8xf32> to vector<8xf32>
    %41 = vector.shape_cast %40 : vector<8xf32> to vector<8x1xf32>
    %42 = tpu.reciprocal %41 {approx = true} : vector<8x1xf32> -> vector<8x1xf32>
    %43 = vector.broadcast %42 : vector<8x1xf32> to vector<8x8xf32>
    %44 = arith.mulf %39, %43 : vector<8x8xf32>
    %45 = arith.truncf %44 : vector<8x8xf32> to vector<8x8xbf16>
    %cst_17 = arith.constant dense<0.000000e+00> : vector<8x8xf32>
    %46 = tpu.matmul %45, %29, %cst_17 {dimension_numbers = #tpu.dot_dimension_numbers<[1], [0], [0], [1], [0, 0, 1, 1], [], []>} : vector<8x8xbf16>, vector<8x8xbf16>, vector<8x8xf32> -> vector<8x8xf32>
    %47 = arith.truncf %46 : vector<8x8xf32> to vector<8x8xbf16>
    %48 = vector.extract_strided_slice %22 {offsets = [0, 0], sizes = [8, 32], strides = [1, 1]} : vector<32x32xbf16> to vector<8x32xbf16>
    %cst_18 = arith.constant dense<0.000000e+00> : vector<8x32xf32>
    %49 = tpu.matmul %47, %48, %cst_18 {dimension_numbers = #tpu.dot_dimension_numbers<[1], [0], [0], [1], [0, 0, 1, 1], [], []>} : vector<8x8xbf16>, vector<8x32xbf16>, vector<8x32xf32> -> vector<8x32xf32>
    %50 = arith.addf %23, %49 : vector<8x32xf32>
    %51 = vector.extract_strided_slice %7 {offsets = [0, 8], sizes = [8, 8], strides = [1, 1]} : vector<8x32xf32> to vector<8x8xf32>
    %52 = arith.truncf %51 : vector<8x8xf32> to vector<8x8xbf16>
    %53 = vector.extract_strided_slice %8 {offsets = [0, 8], sizes = [8, 8], strides = [1, 1]} : vector<8x32xf32> to vector<8x8xf32>
    %54 = arith.truncf %53 : vector<8x8xf32> to vector<8x8xbf16>
    %55 = vector.extract_strided_slice %9 {offsets = [0, 8], sizes = [8, 8], strides = [1, 1]} : vector<8x32xf32> to vector<8x8xf32>
    %56 = arith.truncf %55 : vector<8x8xf32> to vector<8x8xbf16>
    %cst_19 = arith.constant dense<0.000000e+00> : vector<8x8xf32>
    %57 = tpu.matmul %52, %54, %cst_19 {dimension_numbers = #tpu.dot_dimension_numbers<[1], [1], [0], [0], [0, 0, 1, 0], [], []>} : vector<8x8xbf16>, vector<8x8xbf16>, vector<8x8xf32> -> vector<8x8xf32>
    %cst_20 = arith.constant 0.353553385 : f32
    %58 = vector.broadcast %cst_20 : f32 to vector<8x8xf32>
    %59 = arith.mulf %57, %58 : vector<8x8xf32>
    %cst_21 = arith.constant -1.000000e+09 : f32
    %60 = vector.broadcast %cst_21 : f32 to vector<8x8xf32>
    %61 = arith.select %21, %60, %59 : vector<8x8xi1>, vector<8x8xf32>
    %cst_22 = arith.constant dense<0xFF800000> : vector<8xf32>
    %62 = vector.multi_reduction <maximumf>, %61, %cst_22 [1] : vector<8x8xf32> to vector<8xf32>
    %63 = vector.shape_cast %62 : vector<8xf32> to vector<8x1xf32>
    %64 = vector.broadcast %63 : vector<8x1xf32> to vector<8x8xf32>
    %65 = arith.subf %61, %64 : vector<8x8xf32>
    %66 = math.exp %65 : vector<8x8xf32>
    %cst_23 = arith.constant dense<0.000000e+00> : vector<8xf32>
    %67 = vector.multi_reduction <add>, %66, %cst_23 [1] : vector<8x8xf32> to vector<8xf32>
    %68 = vector.shape_cast %67 : vector<8xf32> to vector<8x1xf32>
    %69 = tpu.reciprocal %68 {approx = true} : vector<8x1xf32> -> vector<8x1xf32>
    %70 = vector.broadcast %69 : vector<8x1xf32> to vector<8x8xf32>
    %71 = arith.mulf %66, %70 : vector<8x8xf32>
    %72 = arith.truncf %71 : vector<8x8xf32> to vector<8x8xbf16>
    %cst_24 = arith.constant dense<0.000000e+00> : vector<8x8xf32>
    %73 = tpu.matmul %72, %56, %cst_24 {dimension_numbers = #tpu.dot_dimension_numbers<[1], [0], [0], [1], [0, 0, 1, 1], [], []>} : vector<8x8xbf16>, vector<8x8xbf16>, vector<8x8xf32> -> vector<8x8xf32>
    %74 = arith.truncf %73 : vector<8x8xf32> to vector<8x8xbf16>
    %75 = vector.extract_strided_slice %22 {offsets = [8, 0], sizes = [8, 32], strides = [1, 1]} : vector<32x32xbf16> to vector<8x32xbf16>
    %cst_25 = arith.constant dense<0.000000e+00> : vector<8x32xf32>
    %76 = tpu.matmul %74, %75, %cst_25 {dimension_numbers = #tpu.dot_dimension_numbers<[1], [0], [0], [1], [0, 0, 1, 1], [], []>} : vector<8x8xbf16>, vector<8x32xbf16>, vector<8x32xf32> -> vector<8x32xf32>
    %77 = arith.addf %50, %76 : vector<8x32xf32>
    %78 = vector.extract_strided_slice %7 {offsets = [0, 16], sizes = [8, 8], strides = [1, 1]} : vector<8x32xf32> to vector<8x8xf32>
    %79 = arith.truncf %78 : vector<8x8xf32> to vector<8x8xbf16>
    %80 = vector.extract_strided_slice %8 {offsets = [0, 16], sizes = [8, 8], strides = [1, 1]} : vector<8x32xf32> to vector<8x8xf32>
    %81 = arith.truncf %80 : vector<8x8xf32> to vector<8x8xbf16>
    %82 = vector.extract_strided_slice %9 {offsets = [0, 16], sizes = [8, 8], strides = [1, 1]} : vector<8x32xf32> to vector<8x8xf32>
    %83 = arith.truncf %82 : vector<8x8xf32> to vector<8x8xbf16>
    %cst_26 = arith.constant dense<0.000000e+00> : vector<8x8xf32>
    %84 = tpu.matmul %79, %81, %cst_26 {dimension_numbers = #tpu.dot_dimension_numbers<[1], [1], [0], [0], [0, 0, 1, 0], [], []>} : vector<8x8xbf16>, vector<8x8xbf16>, vector<8x8xf32> -> vector<8x8xf32>
    %cst_27 = arith.constant 0.353553385 : f32
    %85 = vector.broadcast %cst_27 : f32 to vector<8x8xf32>
    %86 = arith.mulf %84, %85 : vector<8x8xf32>
    %cst_28 = arith.constant -1.000000e+09 : f32
    %87 = vector.broadcast %cst_28 : f32 to vector<8x8xf32>
    %88 = arith.select %21, %87, %86 : vector<8x8xi1>, vector<8x8xf32>
    %cst_29 = arith.constant dense<0xFF800000> : vector<8xf32>
    %89 = vector.multi_reduction <maximumf>, %88, %cst_29 [1] : vector<8x8xf32> to vector<8xf32>
    %90 = vector.shape_cast %89 : vector<8xf32> to vector<8x1xf32>
    %91 = vector.broadcast %90 : vector<8x1xf32> to vector<8x8xf32>
    %92 = arith.subf %88, %91 : vector<8x8xf32>
    %93 = math.exp %92 : vector<8x8xf32>
    %cst_30 = arith.constant dense<0.000000e+00> : vector<8xf32>
    %94 = vector.multi_reduction <add>, %93, %cst_30 [1] : vector<8x8xf32> to vector<8xf32>
    %95 = vector.shape_cast %94 : vector<8xf32> to vector<8x1xf32>
    %96 = tpu.reciprocal %95 {approx = true} : vector<8x1xf32> -> vector<8x1xf32>
    %97 = vector.broadcast %96 : vector<8x1xf32> to vector<8x8xf32>
    %98 = arith.mulf %93, %97 : vector<8x8xf32>
    %99 = arith.truncf %98 : vector<8x8xf32> to vector<8x8xbf16>
    %cst_31 = arith.constant dense<0.000000e+00> : vector<8x8xf32>
    %100 = tpu.matmul %99, %83, %cst_31 {dimension_numbers = #tpu.dot_dimension_numbers<[1], [0], [0], [1], [0, 0, 1, 1], [], []>} : vector<8x8xbf16>, vector<8x8xbf16>, vector<8x8xf32> -> vector<8x8xf32>
    %101 = arith.truncf %100 : vector<8x8xf32> to vector<8x8xbf16>
    %102 = vector.extract_strided_slice %22 {offsets = [16, 0], sizes = [8, 32], strides = [1, 1]} : vector<32x32xbf16> to vector<8x32xbf16>
    %cst_32 = arith.constant dense<0.000000e+00> : vector<8x32xf32>
    %103 = tpu.matmul %101, %102, %cst_32 {dimension_numbers = #tpu.dot_dimension_numbers<[1], [0], [0], [1], [0, 0, 1, 1], [], []>} : vector<8x8xbf16>, vector<8x32xbf16>, vector<8x32xf32> -> vector<8x32xf32>
    %104 = arith.addf %77, %103 : vector<8x32xf32>
    %105 = vector.extract_strided_slice %7 {offsets = [0, 24], sizes = [8, 8], strides = [1, 1]} : vector<8x32xf32> to vector<8x8xf32>
    %106 = arith.truncf %105 : vector<8x8xf32> to vector<8x8xbf16>
    %107 = vector.extract_strided_slice %8 {offsets = [0, 24], sizes = [8, 8], strides = [1, 1]} : vector<8x32xf32> to vector<8x8xf32>
    %108 = arith.truncf %107 : vector<8x8xf32> to vector<8x8xbf16>
    %109 = vector.extract_strided_slice %9 {offsets = [0, 24], sizes = [8, 8], strides = [1, 1]} : vector<8x32xf32> to vector<8x8xf32>
    %110 = arith.truncf %109 : vector<8x8xf32> to vector<8x8xbf16>
    %cst_33 = arith.constant dense<0.000000e+00> : vector<8x8xf32>
    %111 = tpu.matmul %106, %108, %cst_33 {dimension_numbers = #tpu.dot_dimension_numbers<[1], [1], [0], [0], [0, 0, 1, 0], [], []>} : vector<8x8xbf16>, vector<8x8xbf16>, vector<8x8xf32> -> vector<8x8xf32>
    %cst_34 = arith.constant 0.353553385 : f32
    %112 = vector.broadcast %cst_34 : f32 to vector<8x8xf32>
    %113 = arith.mulf %111, %112 : vector<8x8xf32>
    %cst_35 = arith.constant -1.000000e+09 : f32
    %114 = vector.broadcast %cst_35 : f32 to vector<8x8xf32>
    %115 = arith.select %21, %114, %113 : vector<8x8xi1>, vector<8x8xf32>
    %cst_36 = arith.constant dense<0xFF800000> : vector<8xf32>
    %116 = vector.multi_reduction <maximumf>, %115, %cst_36 [1] : vector<8x8xf32> to vector<8xf32>
    %117 = vector.shape_cast %116 : vector<8xf32> to vector<8x1xf32>
    %118 = vector.broadcast %117 : vector<8x1xf32> to vector<8x8xf32>
    %119 = arith.subf %115, %118 : vector<8x8xf32>
    %120 = math.exp %119 : vector<8x8xf32>
    %cst_37 = arith.constant dense<0.000000e+00> : vector<8xf32>
    %121 = vector.multi_reduction <add>, %120, %cst_37 [1] : vector<8x8xf32> to vector<8xf32>
    %122 = vector.shape_cast %121 : vector<8xf32> to vector<8x1xf32>
    %123 = tpu.reciprocal %122 {approx = true} : vector<8x1xf32> -> vector<8x1xf32>
    %124 = vector.broadcast %123 : vector<8x1xf32> to vector<8x8xf32>
    %125 = arith.mulf %120, %124 : vector<8x8xf32>
    %126 = arith.truncf %125 : vector<8x8xf32> to vector<8x8xbf16>
    %cst_38 = arith.constant dense<0.000000e+00> : vector<8x8xf32>
    %127 = tpu.matmul %126, %110, %cst_38 {dimension_numbers = #tpu.dot_dimension_numbers<[1], [0], [0], [1], [0, 0, 1, 1], [], []>} : vector<8x8xbf16>, vector<8x8xbf16>, vector<8x8xf32> -> vector<8x8xf32>
    %128 = arith.truncf %127 : vector<8x8xf32> to vector<8x8xbf16>
    %129 = vector.extract_strided_slice %22 {offsets = [24, 0], sizes = [8, 32], strides = [1, 1]} : vector<32x32xbf16> to vector<8x32xbf16>
    %cst_39 = arith.constant dense<0.000000e+00> : vector<8x32xf32>
    %130 = tpu.matmul %128, %129, %cst_39 {dimension_numbers = #tpu.dot_dimension_numbers<[1], [0], [0], [1], [0, 0, 1, 1], [], []>} : vector<8x8xbf16>, vector<8x32xbf16>, vector<8x32xf32> -> vector<8x32xf32>
    %131 = arith.addf %104, %130 : vector<8x32xf32>
    %c0_40 = arith.constant 0 : index
    %c0_41 = arith.constant 0 : index
    %132 = vector.load %arg8[%c0_40, %c0_41] : memref<1x32xf32, #tpu.memory_space<vmem>>, vector<1x32xf32>
    %133 = vector.broadcast %132 : vector<1x32xf32> to vector<8x32xf32>
    %134 = arith.addf %131, %133 : vector<8x32xf32>
    %135 = arith.extf %1 : vector<8x32xbf16> to vector<8x32xf32>
    %136 = arith.addf %134, %135 : vector<8x32xf32>
    %cst_42 = arith.constant dense<0.000000e+00> : vector<8xf32>
    %137 = vector.multi_reduction <add>, %136, %cst_42 [1] : vector<8x32xf32> to vector<8xf32>
    %138 = vector.shape_cast %137 : vector<8xf32> to vector<8x1xf32>
    %cst_43 = arith.constant 3.200000e+01 : f32
    %139 = vector.broadcast %cst_43 : f32 to vector<8x1xf32>
    %140 = arith.divf %138, %139 : vector<8x1xf32>
    %141 = vector.broadcast %140 : vector<8x1xf32> to vector<8x32xf32>
    %142 = arith.subf %136, %141 : vector<8x32xf32>
    %143 = arith.mulf %142, %142 : vector<8x32xf32>
    %cst_44 = arith.constant dense<0.000000e+00> : vector<8xf32>
    %144 = vector.multi_reduction <add>, %143, %cst_44 [1] : vector<8x32xf32> to vector<8xf32>
    %145 = vector.shape_cast %144 : vector<8xf32> to vector<8x1xf32>
    %cst_45 = arith.constant 3.200000e+01 : f32
    %146 = vector.broadcast %cst_45 : f32 to vector<8x1xf32>
    %147 = arith.divf %145, %146 : vector<8x1xf32>
    %148 = vector.broadcast %140 : vector<8x1xf32> to vector<8x32xf32>
    %149 = arith.subf %136, %148 : vector<8x32xf32>
    %cst_46 = arith.constant 9.99999974E-6 : f32
    %150 = vector.broadcast %cst_46 : f32 to vector<8x1xf32>
    %151 = arith.addf %147, %150 : vector<8x1xf32>
    %152 = math.rsqrt %151 : vector<8x1xf32>
    %153 = vector.broadcast %152 : vector<8x1xf32> to vector<8x32xf32>
    %154 = arith.mulf %149, %153 : vector<8x32xf32>
    %c0_47 = arith.constant 0 : index
    %c0_48 = arith.constant 0 : index
    %155 = vector.load %arg9[%c0_47, %c0_48] : memref<1x32xf32, #tpu.memory_space<vmem>>, vector<1x32xf32>
    %156 = vector.broadcast %155 : vector<1x32xf32> to vector<8x32xf32>
    %157 = arith.mulf %154, %156 : vector<8x32xf32>
    %c0_49 = arith.constant 0 : index
    %c0_50 = arith.constant 0 : index
    %158 = vector.load %arg10[%c0_49, %c0_50] : memref<1x32xf32, #tpu.memory_space<vmem>>, vector<1x32xf32>
    %159 = vector.broadcast %158 : vector<1x32xf32> to vector<8x32xf32>
    %160 = arith.addf %157, %159 : vector<8x32xf32>
    %c0_51 = arith.constant 0 : index
    %c0_52 = arith.constant 0 : index
    %c0_53 = arith.constant 0 : index
    %161 = vector.load %arg3[%c0_51, %c0_52, %c0_53] : memref<1x8x1xf32, #tpu.memory_space<vmem>>, vector<1x8x1xf32>
    %162 = vector.shape_cast %161 : vector<1x8x1xf32> to vector<8x1xf32>
    %163 = vector.broadcast %162 : vector<8x1xf32> to vector<8x32xf32>
    %164 = arith.mulf %160, %163 : vector<8x32xf32>
    %165 = arith.truncf %164 : vector<8x32xf32> to vector<8x32xbf16>
    %c0_54 = arith.constant 0 : index
    %c0_55 = arith.constant 0 : index
    %c0_56 = arith.constant 0 : index
    %166 = vector.load %arg11[%c0_54, %c0_55, %c0_56] : memref<1x8x32xbf16, #tpu.memory_space<vmem>>, vector<1x8x32xbf16>
    %167 = vector.shape_cast %166 : vector<1x8x32xbf16> to vector<8x32xbf16>
    %168 = vector.shape_cast %165 : vector<8x32xbf16> to vector<1x8x32xbf16>
    tpu.vector_store %arg11[%c0_54, %c0_55, %c0_56], %168 {strides = array<i32>} : memref<1x8x32xbf16, #tpu.memory_space<vmem>>, vector<1x8x32xbf16>,
    return
  }
  func.func @transform_0(%arg0: i32, %arg1: i32) -> (i32, i32, i32) {
    %c0_i32 = arith.constant 0 : i32
    %c0_i32_0 = arith.constant 0 : i32
    %c0_i32_1 = arith.constant 0 : i32
    return %arg0, %c0_i32, %c0_i32_0 : i32, i32, i32
  }
  func.func @transform_1(%arg0: i32, %arg1: i32) -> (i32, i32, i32) {
    %c0_i32 = arith.constant 0 : i32
    %c0_i32_0 = arith.constant 0 : i32
    return %arg0, %arg1, %c0_i32 : i32, i32, i32
  }
  func.func @transform_2(%arg0: i32, %arg1: i32) -> (i32, i32, i32) {
    %c0_i32 = arith.constant 0 : i32
    %c0_i32_0 = arith.constant 0 : i32
    %c0_i32_1 = arith.constant 0 : i32
    return %arg0, %c0_i32, %c0_i32_0 : i32, i32, i32
  }
  func.func @transform_3(%arg0: i32, %arg1: i32) -> (i32, i32) {
    %c0_i32 = arith.constant 0 : i32
    %c0_i32_0 = arith.constant 0 : i32
    %c0_i32_1 = arith.constant 0 : i32
    return %c0_i32, %c0_i32_0 : i32, i32
  }
  func.func @transform_4(%arg0: i32, %arg1: i32) -> (i32, i32) {
    %c0_i32 = arith.constant 0 : i32
    %c0_i32_0 = arith.constant 0 : i32
    %c0_i32_1 = arith.constant 0 : i32
    return %c0_i32, %c0_i32_0 : i32, i32
  }
  func.func @transform_5(%arg0: i32, %arg1: i32) -> (i32, i32) {
    %c0_i32 = arith.constant 0 : i32
    %c0_i32_0 = arith.constant 0 : i32
    %c0_i32_1 = arith.constant 0 : i32
    return %c0_i32, %c0_i32_0 : i32, i32
  }
  func.func @transform_6(%arg0: i32, %arg1: i32) -> (i32, i32) {
    %c0_i32 = arith.constant 0 : i32
    %c0_i32_0 = arith.constant 0 : i32
    %c0_i32_1 = arith.constant 0 : i32
    return %c0_i32, %c0_i32_0 : i32, i32
  }
  func.func @transform_7(%arg0: i32, %arg1: i32) -> (i32, i32) {
    %c0_i32 = arith.constant 0 : i32
    %c0_i32_0 = arith.constant 0 : i32
    %c0_i32_1 = arith.constant 0 : i32
    return %c0_i32, %c0_i32_0 : i32, i32
  }
  func.func @transform_8(%arg0: i32, %arg1: i32) -> (i32, i32) {
    %c0_i32 = arith.constant 0 : i32
    %c0_i32_0 = arith.constant 0 : i32
    %c0_i32_1 = arith.constant 0 : i32
    return %c0_i32, %c0_i32_0 : i32, i32
  }
  func.func @transform_9(%arg0: i32, %arg1: i32) -> (i32, i32, i32) {
    %c0_i32 = arith.constant 0 : i32
    %c0_i32_0 = arith.constant 0 : i32
    return %arg0, %arg1, %c0_i32 : i32, i32, i32
  }
}

module attributes {stable_mosaic.version = 11 : i64} {
  func.func @kernel(%arg0: i32, %arg1: i32, %arg2: memref<1x1x10xi32, #tpu.memory_space<vmem>>, %arg3: memref<1x8x1xf32, #tpu.memory_space<vmem>>, %arg4: memref<1x8x32xbf16, #tpu.memory_space<vmem>>, %arg5: memref<1x10x32xbf16, #tpu.memory_space<vmem>>, %arg6: memref<32x96xbf16, #tpu.memory_space<vmem>>, %arg7: memref<1x96xf32, #tpu.memory_space<vmem>>, %arg8: memref<32x32xbf16, #tpu.memory_space<vmem>>, %arg9: memref<1x32xf32, #tpu.memory_space<vmem>>, %arg10: memref<1x32xf32, #tpu.memory_space<vmem>>, %arg11: memref<1x32xf32, #tpu.memory_space<vmem>>, %arg12: memref<1x8x32xbf16, #tpu.memory_space<vmem>>) attributes {dimension_semantics = [#tpu.dimension_semantics<parallel>, #tpu.dimension_semantics<parallel>], iteration_bounds = array<i64: 2, 1>, scalar_prefetch = 0 : i64, scratch_operands = 0 : i64, tpu.core_type = #tpu.core_type<tc>, window_params = [{transform_indices = @transform_0, window_bounds = array<i64: 1, 1, 10>}, {transform_indices = @transform_1, window_bounds = array<i64: 1, 8, 1>}, {transform_indices = @transform_2, window_bounds = array<i64: 1, 8, 32>}, {transform_indices = @transform_3, window_bounds = array<i64: 1, 10, 32>}, {pipeline_mode = #tpu.pipeline_mode<synchronous>, transform_indices = @transform_4, window_bounds = array<i64: 32, 96>}, {pipeline_mode = #tpu.pipeline_mode<synchronous>, transform_indices = @transform_5, window_bounds = array<i64: 1, 96>}, {pipeline_mode = #tpu.pipeline_mode<synchronous>, transform_indices = @transform_6, window_bounds = array<i64: 32, 32>}, {pipeline_mode = #tpu.pipeline_mode<synchronous>, transform_indices = @transform_7, window_bounds = array<i64: 1, 32>}, {pipeline_mode = #tpu.pipeline_mode<synchronous>, transform_indices = @transform_8, window_bounds = array<i64: 1, 32>}, {pipeline_mode = #tpu.pipeline_mode<synchronous>, transform_indices = @transform_9, window_bounds = array<i64: 1, 32>}, {transform_indices = @transform_10, window_bounds = array<i64: 1, 8, 32>}]} {
    %c0 = arith.constant 0 : index
    %c0_0 = arith.constant 0 : index
    %c0_1 = arith.constant 0 : index
    %0 = vector.load %arg4[%c0, %c0_0, %c0_1] : memref<1x8x32xbf16, #tpu.memory_space<vmem>>, vector<1x8x32xbf16>
    %1 = vector.shape_cast %0 : vector<1x8x32xbf16> to vector<8x32xbf16>
    %c0_2 = arith.constant 0 : index
    %c0_3 = arith.constant 0 : index
    %2 = vector.load %arg6[%c0_2, %c0_3] : memref<32x96xbf16, #tpu.memory_space<vmem>>, vector<32x96xbf16>
    %c0_4 = arith.constant 0 : index
    %c0_5 = arith.constant 0 : index
    %3 = vector.load %arg7[%c0_4, %c0_5] : memref<1x96xf32, #tpu.memory_space<vmem>>, vector<1x96xf32>
    %4 = vector.extract_strided_slice %2 {offsets = [0, 0], sizes = [32, 32], strides = [1, 1]} : vector<32x96xbf16> to vector<32x32xbf16>
    %cst = arith.constant dense<0.000000e+00> : vector<8x32xf32>
    %5 = tpu.matmul %1, %4, %cst {dimension_numbers = #tpu.dot_dimension_numbers<[1], [0], [0], [1], [0, 0, 1, 1], [], []>} : vector<8x32xbf16>, vector<32x32xbf16>, vector<8x32xf32> -> vector<8x32xf32>
    %6 = vector.extract_strided_slice %3 {offsets = [0, 0], sizes = [1, 32], strides = [1, 1]} : vector<1x96xf32> to vector<1x32xf32>
    %7 = vector.broadcast %6 : vector<1x32xf32> to vector<8x32xf32>
    %8 = arith.addf %5, %7 : vector<8x32xf32>
    %c0_6 = arith.constant 0 : index
    %c0_7 = arith.constant 0 : index
    %c0_8 = arith.constant 0 : index
    %9 = vector.load %arg5[%c0_6, %c0_7, %c0_8] : memref<1x10x32xbf16, #tpu.memory_space<vmem>>, vector<1x10x32xbf16>
    %10 = vector.shape_cast %9 : vector<1x10x32xbf16> to vector<10x32xbf16>
    %11 = vector.extract_strided_slice %2 {offsets = [0, 32], sizes = [32, 64], strides = [1, 1]} : vector<32x96xbf16> to vector<32x64xbf16>
    %cst_9 = arith.constant dense<0.000000e+00> : vector<10x64xf32>
    %12 = tpu.matmul %10, %11, %cst_9 {dimension_numbers = #tpu.dot_dimension_numbers<[1], [0], [0], [1], [0, 0, 1, 1], [], []>} : vector<10x32xbf16>, vector<32x64xbf16>, vector<10x64xf32> -> vector<10x64xf32>
    %13 = vector.extract_strided_slice %3 {offsets = [0, 32], sizes = [1, 64], strides = [1, 1]} : vector<1x96xf32> to vector<1x64xf32>
    %14 = vector.broadcast %13 : vector<1x64xf32> to vector<10x64xf32>
    %15 = arith.addf %12, %14 : vector<10x64xf32>
    %16 = vector.extract_strided_slice %15 {offsets = [0, 0], sizes = [10, 32], strides = [1, 1]} : vector<10x64xf32> to vector<10x32xf32>
    %17 = vector.extract_strided_slice %15 {offsets = [0, 32], sizes = [10, 32], strides = [1, 1]} : vector<10x64xf32> to vector<10x32xf32>
    %c0_10 = arith.constant 0 : index
    %c0_11 = arith.constant 0 : index
    %c0_12 = arith.constant 0 : index
    %18 = vector.load %arg2[%c0_10, %c0_11, %c0_12] : memref<1x1x10xi32, #tpu.memory_space<vmem>>, vector<1x1x10xi32>
    %19 = vector.shape_cast %18 : vector<1x1x10xi32> to vector<1x10xi32>
    %c0_i32 = arith.constant 0 : i32
    %20 = vector.broadcast %c0_i32 : i32 to vector<1x10xi32>
    %21 = arith.cmpi sgt, %19, %20 : vector<1x10xi32>
    %c0_13 = arith.constant 0 : index
    %c0_14 = arith.constant 0 : index
    %22 = vector.load %arg8[%c0_13, %c0_14] : memref<32x32xbf16, #tpu.memory_space<vmem>>, vector<32x32xbf16>
    %cst_15 = arith.constant 0.000000e+00 : f32
    %23 = vector.broadcast %cst_15 : f32 to vector<8x32xf32>
    %24 = vector.extract_strided_slice %8 {offsets = [0, 0], sizes = [8, 8], strides = [1, 1]} : vector<8x32xf32> to vector<8x8xf32>
    %25 = arith.truncf %24 : vector<8x8xf32> to vector<8x8xbf16>
    %26 = vector.extract_strided_slice %16 {offsets = [0, 0], sizes = [10, 8], strides = [1, 1]} : vector<10x32xf32> to vector<10x8xf32>
    %27 = arith.truncf %26 : vector<10x8xf32> to vector<10x8xbf16>
    %28 = vector.extract_strided_slice %17 {offsets = [0, 0], sizes = [10, 8], strides = [1, 1]} : vector<10x32xf32> to vector<10x8xf32>
    %29 = arith.truncf %28 : vector<10x8xf32> to vector<10x8xbf16>
    %cst_16 = arith.constant dense<0.000000e+00> : vector<8x10xf32>
    %30 = tpu.matmul %25, %27, %cst_16 {dimension_numbers = #tpu.dot_dimension_numbers<[1], [1], [0], [0], [0, 0, 1, 0], [], []>} : vector<8x8xbf16>, vector<10x8xbf16>, vector<8x10xf32> -> vector<8x10xf32>
    %cst_17 = arith.constant 0.353553385 : f32
    %31 = vector.broadcast %cst_17 : f32 to vector<8x10xf32>
    %32 = arith.mulf %30, %31 : vector<8x10xf32>
    %cst_18 = arith.constant -1.000000e+09 : f32
    %33 = vector.shape_cast %21 : vector<1x10xi1> to vector<1x10xi1>
    %34 = vector.broadcast %33 : vector<1x10xi1> to vector<8x10xi1>
    %35 = vector.broadcast %cst_18 : f32 to vector<8x10xf32>
    %36 = arith.select %34, %35, %32 : vector<8x10xi1>, vector<8x10xf32>
    %cst_19 = arith.constant dense<0xFF800000> : vector<8xf32>
    %37 = vector.multi_reduction <maximumf>, %36, %cst_19 [1] : vector<8x10xf32> to vector<8xf32>
    %38 = vector.shape_cast %37 : vector<8xf32> to vector<8x1xf32>
    %39 = vector.broadcast %38 : vector<8x1xf32> to vector<8x10xf32>
    %40 = arith.subf %36, %39 : vector<8x10xf32>
    %41 = math.exp %40 : vector<8x10xf32>
    %cst_20 = arith.constant dense<0.000000e+00> : vector<8xf32>
    %42 = vector.multi_reduction <add>, %41, %cst_20 [1] : vector<8x10xf32> to vector<8xf32>
    %43 = vector.shape_cast %42 : vector<8xf32> to vector<8x1xf32>
    %44 = tpu.reciprocal %43 {approx = true} : vector<8x1xf32> -> vector<8x1xf32>
    %45 = vector.broadcast %44 : vector<8x1xf32> to vector<8x10xf32>
    %46 = arith.mulf %41, %45 : vector<8x10xf32>
    %47 = arith.truncf %46 : vector<8x10xf32> to vector<8x10xbf16>
    %cst_21 = arith.constant dense<0.000000e+00> : vector<8x8xf32>
    %48 = tpu.matmul %47, %29, %cst_21 {dimension_numbers = #tpu.dot_dimension_numbers<[1], [0], [0], [1], [0, 0, 1, 1], [], []>} : vector<8x10xbf16>, vector<10x8xbf16>, vector<8x8xf32> -> vector<8x8xf32>
    %49 = arith.truncf %48 : vector<8x8xf32> to vector<8x8xbf16>
    %50 = vector.extract_strided_slice %22 {offsets = [0, 0], sizes = [8, 32], strides = [1, 1]} : vector<32x32xbf16> to vector<8x32xbf16>
    %cst_22 = arith.constant dense<0.000000e+00> : vector<8x32xf32>
    %51 = tpu.matmul %49, %50, %cst_22 {dimension_numbers = #tpu.dot_dimension_numbers<[1], [0], [0], [1], [0, 0, 1, 1], [], []>} : vector<8x8xbf16>, vector<8x32xbf16>, vector<8x32xf32> -> vector<8x32xf32>
    %52 = arith.addf %23, %51 : vector<8x32xf32>
    %53 = vector.extract_strided_slice %8 {offsets = [0, 8], sizes = [8, 8], strides = [1, 1]} : vector<8x32xf32> to vector<8x8xf32>
    %54 = arith.truncf %53 : vector<8x8xf32> to vector<8x8xbf16>
    %55 = vector.extract_strided_slice %16 {offsets = [0, 8], sizes = [10, 8], strides = [1, 1]} : vector<10x32xf32> to vector<10x8xf32>
    %56 = arith.truncf %55 : vector<10x8xf32> to vector<10x8xbf16>
    %57 = vector.extract_strided_slice %17 {offsets = [0, 8], sizes = [10, 8], strides = [1, 1]} : vector<10x32xf32> to vector<10x8xf32>
    %58 = arith.truncf %57 : vector<10x8xf32> to vector<10x8xbf16>
    %cst_23 = arith.constant dense<0.000000e+00> : vector<8x10xf32>
    %59 = tpu.matmul %54, %56, %cst_23 {dimension_numbers = #tpu.dot_dimension_numbers<[1], [1], [0], [0], [0, 0, 1, 0], [], []>} : vector<8x8xbf16>, vector<10x8xbf16>, vector<8x10xf32> -> vector<8x10xf32>
    %cst_24 = arith.constant 0.353553385 : f32
    %60 = vector.broadcast %cst_24 : f32 to vector<8x10xf32>
    %61 = arith.mulf %59, %60 : vector<8x10xf32>
    %cst_25 = arith.constant -1.000000e+09 : f32
    %62 = vector.shape_cast %21 : vector<1x10xi1> to vector<1x10xi1>
    %63 = vector.broadcast %62 : vector<1x10xi1> to vector<8x10xi1>
    %64 = vector.broadcast %cst_25 : f32 to vector<8x10xf32>
    %65 = arith.select %63, %64, %61 : vector<8x10xi1>, vector<8x10xf32>
    %cst_26 = arith.constant dense<0xFF800000> : vector<8xf32>
    %66 = vector.multi_reduction <maximumf>, %65, %cst_26 [1] : vector<8x10xf32> to vector<8xf32>
    %67 = vector.shape_cast %66 : vector<8xf32> to vector<8x1xf32>
    %68 = vector.broadcast %67 : vector<8x1xf32> to vector<8x10xf32>
    %69 = arith.subf %65, %68 : vector<8x10xf32>
    %70 = math.exp %69 : vector<8x10xf32>
    %cst_27 = arith.constant dense<0.000000e+00> : vector<8xf32>
    %71 = vector.multi_reduction <add>, %70, %cst_27 [1] : vector<8x10xf32> to vector<8xf32>
    %72 = vector.shape_cast %71 : vector<8xf32> to vector<8x1xf32>
    %73 = tpu.reciprocal %72 {approx = true} : vector<8x1xf32> -> vector<8x1xf32>
    %74 = vector.broadcast %73 : vector<8x1xf32> to vector<8x10xf32>
    %75 = arith.mulf %70, %74 : vector<8x10xf32>
    %76 = arith.truncf %75 : vector<8x10xf32> to vector<8x10xbf16>
    %cst_28 = arith.constant dense<0.000000e+00> : vector<8x8xf32>
    %77 = tpu.matmul %76, %58, %cst_28 {dimension_numbers = #tpu.dot_dimension_numbers<[1], [0], [0], [1], [0, 0, 1, 1], [], []>} : vector<8x10xbf16>, vector<10x8xbf16>, vector<8x8xf32> -> vector<8x8xf32>
    %78 = arith.truncf %77 : vector<8x8xf32> to vector<8x8xbf16>
    %79 = vector.extract_strided_slice %22 {offsets = [8, 0], sizes = [8, 32], strides = [1, 1]} : vector<32x32xbf16> to vector<8x32xbf16>
    %cst_29 = arith.constant dense<0.000000e+00> : vector<8x32xf32>
    %80 = tpu.matmul %78, %79, %cst_29 {dimension_numbers = #tpu.dot_dimension_numbers<[1], [0], [0], [1], [0, 0, 1, 1], [], []>} : vector<8x8xbf16>, vector<8x32xbf16>, vector<8x32xf32> -> vector<8x32xf32>
    %81 = arith.addf %52, %80 : vector<8x32xf32>
    %82 = vector.extract_strided_slice %8 {offsets = [0, 16], sizes = [8, 8], strides = [1, 1]} : vector<8x32xf32> to vector<8x8xf32>
    %83 = arith.truncf %82 : vector<8x8xf32> to vector<8x8xbf16>
    %84 = vector.extract_strided_slice %16 {offsets = [0, 16], sizes = [10, 8], strides = [1, 1]} : vector<10x32xf32> to vector<10x8xf32>
    %85 = arith.truncf %84 : vector<10x8xf32> to vector<10x8xbf16>
    %86 = vector.extract_strided_slice %17 {offsets = [0, 16], sizes = [10, 8], strides = [1, 1]} : vector<10x32xf32> to vector<10x8xf32>
    %87 = arith.truncf %86 : vector<10x8xf32> to vector<10x8xbf16>
    %cst_30 = arith.constant dense<0.000000e+00> : vector<8x10xf32>
    %88 = tpu.matmul %83, %85, %cst_30 {dimension_numbers = #tpu.dot_dimension_numbers<[1], [1], [0], [0], [0, 0, 1, 0], [], []>} : vector<8x8xbf16>, vector<10x8xbf16>, vector<8x10xf32> -> vector<8x10xf32>
    %cst_31 = arith.constant 0.353553385 : f32
    %89 = vector.broadcast %cst_31 : f32 to vector<8x10xf32>
    %90 = arith.mulf %88, %89 : vector<8x10xf32>
    %cst_32 = arith.constant -1.000000e+09 : f32
    %91 = vector.shape_cast %21 : vector<1x10xi1> to vector<1x10xi1>
    %92 = vector.broadcast %91 : vector<1x10xi1> to vector<8x10xi1>
    %93 = vector.broadcast %cst_32 : f32 to vector<8x10xf32>
    %94 = arith.select %92, %93, %90 : vector<8x10xi1>, vector<8x10xf32>
    %cst_33 = arith.constant dense<0xFF800000> : vector<8xf32>
    %95 = vector.multi_reduction <maximumf>, %94, %cst_33 [1] : vector<8x10xf32> to vector<8xf32>
    %96 = vector.shape_cast %95 : vector<8xf32> to vector<8x1xf32>
    %97 = vector.broadcast %96 : vector<8x1xf32> to vector<8x10xf32>
    %98 = arith.subf %94, %97 : vector<8x10xf32>
    %99 = math.exp %98 : vector<8x10xf32>
    %cst_34 = arith.constant dense<0.000000e+00> : vector<8xf32>
    %100 = vector.multi_reduction <add>, %99, %cst_34 [1] : vector<8x10xf32> to vector<8xf32>
    %101 = vector.shape_cast %100 : vector<8xf32> to vector<8x1xf32>
    %102 = tpu.reciprocal %101 {approx = true} : vector<8x1xf32> -> vector<8x1xf32>
    %103 = vector.broadcast %102 : vector<8x1xf32> to vector<8x10xf32>
    %104 = arith.mulf %99, %103 : vector<8x10xf32>
    %105 = arith.truncf %104 : vector<8x10xf32> to vector<8x10xbf16>
    %cst_35 = arith.constant dense<0.000000e+00> : vector<8x8xf32>
    %106 = tpu.matmul %105, %87, %cst_35 {dimension_numbers = #tpu.dot_dimension_numbers<[1], [0], [0], [1], [0, 0, 1, 1], [], []>} : vector<8x10xbf16>, vector<10x8xbf16>, vector<8x8xf32> -> vector<8x8xf32>
    %107 = arith.truncf %106 : vector<8x8xf32> to vector<8x8xbf16>
    %108 = vector.extract_strided_slice %22 {offsets = [16, 0], sizes = [8, 32], strides = [1, 1]} : vector<32x32xbf16> to vector<8x32xbf16>
    %cst_36 = arith.constant dense<0.000000e+00> : vector<8x32xf32>
    %109 = tpu.matmul %107, %108, %cst_36 {dimension_numbers = #tpu.dot_dimension_numbers<[1], [0], [0], [1], [0, 0, 1, 1], [], []>} : vector<8x8xbf16>, vector<8x32xbf16>, vector<8x32xf32> -> vector<8x32xf32>
    %110 = arith.addf %81, %109 : vector<8x32xf32>
    %111 = vector.extract_strided_slice %8 {offsets = [0, 24], sizes = [8, 8], strides = [1, 1]} : vector<8x32xf32> to vector<8x8xf32>
    %112 = arith.truncf %111 : vector<8x8xf32> to vector<8x8xbf16>
    %113 = vector.extract_strided_slice %16 {offsets = [0, 24], sizes = [10, 8], strides = [1, 1]} : vector<10x32xf32> to vector<10x8xf32>
    %114 = arith.truncf %113 : vector<10x8xf32> to vector<10x8xbf16>
    %115 = vector.extract_strided_slice %17 {offsets = [0, 24], sizes = [10, 8], strides = [1, 1]} : vector<10x32xf32> to vector<10x8xf32>
    %116 = arith.truncf %115 : vector<10x8xf32> to vector<10x8xbf16>
    %cst_37 = arith.constant dense<0.000000e+00> : vector<8x10xf32>
    %117 = tpu.matmul %112, %114, %cst_37 {dimension_numbers = #tpu.dot_dimension_numbers<[1], [1], [0], [0], [0, 0, 1, 0], [], []>} : vector<8x8xbf16>, vector<10x8xbf16>, vector<8x10xf32> -> vector<8x10xf32>
    %cst_38 = arith.constant 0.353553385 : f32
    %118 = vector.broadcast %cst_38 : f32 to vector<8x10xf32>
    %119 = arith.mulf %117, %118 : vector<8x10xf32>
    %cst_39 = arith.constant -1.000000e+09 : f32
    %120 = vector.shape_cast %21 : vector<1x10xi1> to vector<1x10xi1>
    %121 = vector.broadcast %120 : vector<1x10xi1> to vector<8x10xi1>
    %122 = vector.broadcast %cst_39 : f32 to vector<8x10xf32>
    %123 = arith.select %121, %122, %119 : vector<8x10xi1>, vector<8x10xf32>
    %cst_40 = arith.constant dense<0xFF800000> : vector<8xf32>
    %124 = vector.multi_reduction <maximumf>, %123, %cst_40 [1] : vector<8x10xf32> to vector<8xf32>
    %125 = vector.shape_cast %124 : vector<8xf32> to vector<8x1xf32>
    %126 = vector.broadcast %125 : vector<8x1xf32> to vector<8x10xf32>
    %127 = arith.subf %123, %126 : vector<8x10xf32>
    %128 = math.exp %127 : vector<8x10xf32>
    %cst_41 = arith.constant dense<0.000000e+00> : vector<8xf32>
    %129 = vector.multi_reduction <add>, %128, %cst_41 [1] : vector<8x10xf32> to vector<8xf32>
    %130 = vector.shape_cast %129 : vector<8xf32> to vector<8x1xf32>
    %131 = tpu.reciprocal %130 {approx = true} : vector<8x1xf32> -> vector<8x1xf32>
    %132 = vector.broadcast %131 : vector<8x1xf32> to vector<8x10xf32>
    %133 = arith.mulf %128, %132 : vector<8x10xf32>
    %134 = arith.truncf %133 : vector<8x10xf32> to vector<8x10xbf16>
    %cst_42 = arith.constant dense<0.000000e+00> : vector<8x8xf32>
    %135 = tpu.matmul %134, %116, %cst_42 {dimension_numbers = #tpu.dot_dimension_numbers<[1], [0], [0], [1], [0, 0, 1, 1], [], []>} : vector<8x10xbf16>, vector<10x8xbf16>, vector<8x8xf32> -> vector<8x8xf32>
    %136 = arith.truncf %135 : vector<8x8xf32> to vector<8x8xbf16>
    %137 = vector.extract_strided_slice %22 {offsets = [24, 0], sizes = [8, 32], strides = [1, 1]} : vector<32x32xbf16> to vector<8x32xbf16>
    %cst_43 = arith.constant dense<0.000000e+00> : vector<8x32xf32>
    %138 = tpu.matmul %136, %137, %cst_43 {dimension_numbers = #tpu.dot_dimension_numbers<[1], [0], [0], [1], [0, 0, 1, 1], [], []>} : vector<8x8xbf16>, vector<8x32xbf16>, vector<8x32xf32> -> vector<8x32xf32>
    %139 = arith.addf %110, %138 : vector<8x32xf32>
    %c0_44 = arith.constant 0 : index
    %c0_45 = arith.constant 0 : index
    %140 = vector.load %arg9[%c0_44, %c0_45] : memref<1x32xf32, #tpu.memory_space<vmem>>, vector<1x32xf32>
    %141 = vector.broadcast %140 : vector<1x32xf32> to vector<8x32xf32>
    %142 = arith.addf %139, %141 : vector<8x32xf32>
    %143 = arith.extf %1 : vector<8x32xbf16> to vector<8x32xf32>
    %144 = arith.addf %142, %143 : vector<8x32xf32>
    %cst_46 = arith.constant dense<0.000000e+00> : vector<8xf32>
    %145 = vector.multi_reduction <add>, %144, %cst_46 [1] : vector<8x32xf32> to vector<8xf32>
    %146 = vector.shape_cast %145 : vector<8xf32> to vector<8x1xf32>
    %cst_47 = arith.constant 3.200000e+01 : f32
    %147 = vector.broadcast %cst_47 : f32 to vector<8x1xf32>
    %148 = arith.divf %146, %147 : vector<8x1xf32>
    %149 = vector.broadcast %148 : vector<8x1xf32> to vector<8x32xf32>
    %150 = arith.subf %144, %149 : vector<8x32xf32>
    %151 = arith.mulf %150, %150 : vector<8x32xf32>
    %cst_48 = arith.constant dense<0.000000e+00> : vector<8xf32>
    %152 = vector.multi_reduction <add>, %151, %cst_48 [1] : vector<8x32xf32> to vector<8xf32>
    %153 = vector.shape_cast %152 : vector<8xf32> to vector<8x1xf32>
    %cst_49 = arith.constant 3.200000e+01 : f32
    %154 = vector.broadcast %cst_49 : f32 to vector<8x1xf32>
    %155 = arith.divf %153, %154 : vector<8x1xf32>
    %156 = vector.broadcast %148 : vector<8x1xf32> to vector<8x32xf32>
    %157 = arith.subf %144, %156 : vector<8x32xf32>
    %cst_50 = arith.constant 9.99999974E-6 : f32
    %158 = vector.broadcast %cst_50 : f32 to vector<8x1xf32>
    %159 = arith.addf %155, %158 : vector<8x1xf32>
    %160 = math.rsqrt %159 : vector<8x1xf32>
    %161 = vector.broadcast %160 : vector<8x1xf32> to vector<8x32xf32>
    %162 = arith.mulf %157, %161 : vector<8x32xf32>
    %c0_51 = arith.constant 0 : index
    %c0_52 = arith.constant 0 : index
    %163 = vector.load %arg10[%c0_51, %c0_52] : memref<1x32xf32, #tpu.memory_space<vmem>>, vector<1x32xf32>
    %164 = vector.broadcast %163 : vector<1x32xf32> to vector<8x32xf32>
    %165 = arith.mulf %162, %164 : vector<8x32xf32>
    %c0_53 = arith.constant 0 : index
    %c0_54 = arith.constant 0 : index
    %166 = vector.load %arg11[%c0_53, %c0_54] : memref<1x32xf32, #tpu.memory_space<vmem>>, vector<1x32xf32>
    %167 = vector.broadcast %166 : vector<1x32xf32> to vector<8x32xf32>
    %168 = arith.addf %165, %167 : vector<8x32xf32>
    %c0_55 = arith.constant 0 : index
    %c0_56 = arith.constant 0 : index
    %c0_57 = arith.constant 0 : index
    %169 = vector.load %arg3[%c0_55, %c0_56, %c0_57] : memref<1x8x1xf32, #tpu.memory_space<vmem>>, vector<1x8x1xf32>
    %170 = vector.shape_cast %169 : vector<1x8x1xf32> to vector<8x1xf32>
    %171 = vector.broadcast %170 : vector<8x1xf32> to vector<8x32xf32>
    %172 = arith.mulf %168, %171 : vector<8x32xf32>
    %173 = arith.truncf %172 : vector<8x32xf32> to vector<8x32xbf16>
    %c0_58 = arith.constant 0 : index
    %c0_59 = arith.constant 0 : index
    %c0_60 = arith.constant 0 : index
    %174 = vector.load %arg12[%c0_58, %c0_59, %c0_60] : memref<1x8x32xbf16, #tpu.memory_space<vmem>>, vector<1x8x32xbf16>
    %175 = vector.shape_cast %174 : vector<1x8x32xbf16> to vector<8x32xbf16>
    %176 = vector.shape_cast %173 : vector<8x32xbf16> to vector<1x8x32xbf16>
    tpu.vector_store %arg12[%c0_58, %c0_59, %c0_60], %176 {strides = array<i32>} : memref<1x8x32xbf16, #tpu.memory_space<vmem>>, vector<1x8x32xbf16>,
    return
  }
  func.func @transform_0(%arg0: i32, %arg1: i32) -> (i32, i32, i32) {
    %c0_i32 = arith.constant 0 : i32
    %c0_i32_0 = arith.constant 0 : i32
    %c0_i32_1 = arith.constant 0 : i32
    return %arg0, %c0_i32, %c0_i32_0 : i32, i32, i32
  }
  func.func @transform_1(%arg0: i32, %arg1: i32) -> (i32, i32, i32) {
    %c0_i32 = arith.constant 0 : i32
    %c0_i32_0 = arith.constant 0 : i32
    return %arg0, %arg1, %c0_i32 : i32, i32, i32
  }
  func.func @transform_2(%arg0: i32, %arg1: i32) -> (i32, i32, i32) {
    %c0_i32 = arith.constant 0 : i32
    %c0_i32_0 = arith.constant 0 : i32
    return %arg0, %arg1, %c0_i32 : i32, i32, i32
  }
  func.func @transform_3(%arg0: i32, %arg1: i32) -> (i32, i32, i32) {
    %c0_i32 = arith.constant 0 : i32
    %c0_i32_0 = arith.constant 0 : i32
    %c0_i32_1 = arith.constant 0 : i32
    return %arg0, %c0_i32, %c0_i32_0 : i32, i32, i32
  }
  func.func @transform_4(%arg0: i32, %arg1: i32) -> (i32, i32) {
    %c0_i32 = arith.constant 0 : i32
    %c0_i32_0 = arith.constant 0 : i32
    %c0_i32_1 = arith.constant 0 : i32
    return %c0_i32, %c0_i32_0 : i32, i32
  }
  func.func @transform_5(%arg0: i32, %arg1: i32) -> (i32, i32) {
    %c0_i32 = arith.constant 0 : i32
    %c0_i32_0 = arith.constant 0 : i32
    %c0_i32_1 = arith.constant 0 : i32
    return %c0_i32, %c0_i32_0 : i32, i32
  }
  func.func @transform_6(%arg0: i32, %arg1: i32) -> (i32, i32) {
    %c0_i32 = arith.constant 0 : i32
    %c0_i32_0 = arith.constant 0 : i32
    %c0_i32_1 = arith.constant 0 : i32
    return %c0_i32, %c0_i32_0 : i32, i32
  }
  func.func @transform_7(%arg0: i32, %arg1: i32) -> (i32, i32) {
    %c0_i32 = arith.constant 0 : i32
    %c0_i32_0 = arith.constant 0 : i32
    %c0_i32_1 = arith.constant 0 : i32
    return %c0_i32, %c0_i32_0 : i32, i32
  }
  func.func @transform_8(%arg0: i32, %arg1: i32) -> (i32, i32) {
    %c0_i32 = arith.constant 0 : i32
    %c0_i32_0 = arith.constant 0 : i32
    %c0_i32_1 = arith.constant 0 : i32
    return %c0_i32, %c0_i32_0 : i32, i32
  }
  func.func @transform_9(%arg0: i32, %arg1: i32) -> (i32, i32) {
    %c0_i32 = arith.constant 0 : i32
    %c0_i32_0 = arith.constant 0 : i32
    %c0_i32_1 = arith.constant 0 : i32
    return %c0_i32, %c0_i32_0 : i32, i32
  }
  func.func @transform_10(%arg0: i32, %arg1: i32) -> (i32, i32, i32) {
    %c0_i32 = arith.constant 0 : i32
    %c0_i32_0 = arith.constant 0 : i32
    return %arg0, %arg1, %c0_i32 : i32, i32, i32
  }
}

module attributes {stable_mosaic.version = 11 : i64} {
  func.func @_ffn_kernel(%arg0: i32, %arg1: i32, %arg2: memref<1x8x32xbf16, #tpu.memory_space<vmem>>, %arg3: memref<1x8x1xf32, #tpu.memory_space<vmem>>, %arg4: memref<32x128xbf16, #tpu.memory_space<vmem>>, %arg5: memref<1x128xf32, #tpu.memory_space<vmem>>, %arg6: memref<128x32xbf16, #tpu.memory_space<vmem>>, %arg7: memref<1x32xf32, #tpu.memory_space<vmem>>, %arg8: memref<1x32xf32, #tpu.memory_space<vmem>>, %arg9: memref<1x32xf32, #tpu.memory_space<vmem>>, %arg10: memref<1x8x32xbf16, #tpu.memory_space<vmem>>) attributes {dimension_semantics = [#tpu.dimension_semantics<parallel>, #tpu.dimension_semantics<parallel>], iteration_bounds = array<i64: 2, 1>, scalar_prefetch = 0 : i64, scratch_operands = 0 : i64, tpu.core_type = #tpu.core_type<tc>, window_params = [{transform_indices = @transform_0, window_bounds = array<i64: 1, 8, 32>}, {transform_indices = @transform_1, window_bounds = array<i64: 1, 8, 1>}, {pipeline_mode = #tpu.pipeline_mode<synchronous>, transform_indices = @transform_2, window_bounds = array<i64: 32, 128>}, {pipeline_mode = #tpu.pipeline_mode<synchronous>, transform_indices = @transform_3, window_bounds = array<i64: 1, 128>}, {pipeline_mode = #tpu.pipeline_mode<synchronous>, transform_indices = @transform_4, window_bounds = array<i64: 128, 32>}, {pipeline_mode = #tpu.pipeline_mode<synchronous>, transform_indices = @transform_5, window_bounds = array<i64: 1, 32>}, {pipeline_mode = #tpu.pipeline_mode<synchronous>, transform_indices = @transform_6, window_bounds = array<i64: 1, 32>}, {pipeline_mode = #tpu.pipeline_mode<synchronous>, transform_indices = @transform_7, window_bounds = array<i64: 1, 32>}, {transform_indices = @transform_8, window_bounds = array<i64: 1, 8, 32>}]} {
    %c0 = arith.constant 0 : index
    %c0_0 = arith.constant 0 : index
    %c0_1 = arith.constant 0 : index
    %0 = vector.load %arg2[%c0, %c0_0, %c0_1] : memref<1x8x32xbf16, #tpu.memory_space<vmem>>, vector<1x8x32xbf16>
    %1 = vector.shape_cast %0 : vector<1x8x32xbf16> to vector<8x32xbf16>
    %c0_2 = arith.constant 0 : index
    %c0_3 = arith.constant 0 : index
    %2 = vector.load %arg4[%c0_2, %c0_3] : memref<32x128xbf16, #tpu.memory_space<vmem>>, vector<32x128xbf16>
    %cst = arith.constant dense<0.000000e+00> : vector<8x128xf32>
    %3 = tpu.matmul %1, %2, %cst {dimension_numbers = #tpu.dot_dimension_numbers<[1], [0], [0], [1], [0, 0, 1, 1], [], []>} : vector<8x32xbf16>, vector<32x128xbf16>, vector<8x128xf32> -> vector<8x128xf32>
    %c0_4 = arith.constant 0 : index
    %c0_5 = arith.constant 0 : index
    %4 = vector.load %arg5[%c0_4, %c0_5] : memref<1x128xf32, #tpu.memory_space<vmem>>, vector<1x128xf32>
    %5 = vector.broadcast %4 : vector<1x128xf32> to vector<8x128xf32>
    %6 = arith.addf %3, %5 : vector<8x128xf32>
    %cst_6 = arith.constant 0.000000e+00 : f32
    %7 = vector.broadcast %cst_6 : f32 to vector<8x128xf32>
    %8 = arith.maximumf %6, %7 : vector<8x128xf32>
    %9 = arith.truncf %8 : vector<8x128xf32> to vector<8x128xbf16>
    %c0_7 = arith.constant 0 : index
    %c0_8 = arith.constant 0 : index
    %10 = vector.load %arg6[%c0_7, %c0_8] : memref<128x32xbf16, #tpu.memory_space<vmem>>, vector<128x32xbf16>
    %cst_9 = arith.constant dense<0.000000e+00> : vector<8x32xf32>
    %11 = tpu.matmul %9, %10, %cst_9 {dimension_numbers = #tpu.dot_dimension_numbers<[1], [0], [0], [1], [0, 0, 1, 1], [], []>} : vector<8x128xbf16>, vector<128x32xbf16>, vector<8x32xf32> -> vector<8x32xf32>
    %c0_10 = arith.constant 0 : index
    %c0_11 = arith.constant 0 : index
    %12 = vector.load %arg7[%c0_10, %c0_11] : memref<1x32xf32, #tpu.memory_space<vmem>>, vector<1x32xf32>
    %13 = vector.broadcast %12 : vector<1x32xf32> to vector<8x32xf32>
    %14 = arith.addf %11, %13 : vector<8x32xf32>
    %15 = arith.extf %1 : vector<8x32xbf16> to vector<8x32xf32>
    %16 = arith.addf %14, %15 : vector<8x32xf32>
    %cst_12 = arith.constant dense<0.000000e+00> : vector<8xf32>
    %17 = vector.multi_reduction <add>, %16, %cst_12 [1] : vector<8x32xf32> to vector<8xf32>
    %18 = vector.shape_cast %17 : vector<8xf32> to vector<8x1xf32>
    %cst_13 = arith.constant 3.200000e+01 : f32
    %19 = vector.broadcast %cst_13 : f32 to vector<8x1xf32>
    %20 = arith.divf %18, %19 : vector<8x1xf32>
    %21 = vector.broadcast %20 : vector<8x1xf32> to vector<8x32xf32>
    %22 = arith.subf %16, %21 : vector<8x32xf32>
    %23 = arith.mulf %22, %22 : vector<8x32xf32>
    %cst_14 = arith.constant dense<0.000000e+00> : vector<8xf32>
    %24 = vector.multi_reduction <add>, %23, %cst_14 [1] : vector<8x32xf32> to vector<8xf32>
    %25 = vector.shape_cast %24 : vector<8xf32> to vector<8x1xf32>
    %cst_15 = arith.constant 3.200000e+01 : f32
    %26 = vector.broadcast %cst_15 : f32 to vector<8x1xf32>
    %27 = arith.divf %25, %26 : vector<8x1xf32>
    %28 = vector.broadcast %20 : vector<8x1xf32> to vector<8x32xf32>
    %29 = arith.subf %16, %28 : vector<8x32xf32>
    %cst_16 = arith.constant 9.99999974E-6 : f32
    %30 = vector.broadcast %cst_16 : f32 to vector<8x1xf32>
    %31 = arith.addf %27, %30 : vector<8x1xf32>
    %32 = math.rsqrt %31 : vector<8x1xf32>
    %33 = vector.broadcast %32 : vector<8x1xf32> to vector<8x32xf32>
    %34 = arith.mulf %29, %33 : vector<8x32xf32>
    %c0_17 = arith.constant 0 : index
    %c0_18 = arith.constant 0 : index
    %35 = vector.load %arg8[%c0_17, %c0_18] : memref<1x32xf32, #tpu.memory_space<vmem>>, vector<1x32xf32>
    %36 = vector.broadcast %35 : vector<1x32xf32> to vector<8x32xf32>
    %37 = arith.mulf %34, %36 : vector<8x32xf32>
    %c0_19 = arith.constant 0 : index
    %c0_20 = arith.constant 0 : index
    %38 = vector.load %arg9[%c0_19, %c0_20] : memref<1x32xf32, #tpu.memory_space<vmem>>, vector<1x32xf32>
    %39 = vector.broadcast %38 : vector<1x32xf32> to vector<8x32xf32>
    %40 = arith.addf %37, %39 : vector<8x32xf32>
    %c0_21 = arith.constant 0 : index
    %c0_22 = arith.constant 0 : index
    %c0_23 = arith.constant 0 : index
    %41 = vector.load %arg3[%c0_21, %c0_22, %c0_23] : memref<1x8x1xf32, #tpu.memory_space<vmem>>, vector<1x8x1xf32>
    %42 = vector.shape_cast %41 : vector<1x8x1xf32> to vector<8x1xf32>
    %43 = vector.broadcast %42 : vector<8x1xf32> to vector<8x32xf32>
    %44 = arith.mulf %40, %43 : vector<8x32xf32>
    %45 = arith.truncf %44 : vector<8x32xf32> to vector<8x32xbf16>
    %c0_24 = arith.constant 0 : index
    %c0_25 = arith.constant 0 : index
    %c0_26 = arith.constant 0 : index
    %46 = vector.load %arg10[%c0_24, %c0_25, %c0_26] : memref<1x8x32xbf16, #tpu.memory_space<vmem>>, vector<1x8x32xbf16>
    %47 = vector.shape_cast %46 : vector<1x8x32xbf16> to vector<8x32xbf16>
    %48 = vector.shape_cast %45 : vector<8x32xbf16> to vector<1x8x32xbf16>
    tpu.vector_store %arg10[%c0_24, %c0_25, %c0_26], %48 {strides = array<i32>} : memref<1x8x32xbf16, #tpu.memory_space<vmem>>, vector<1x8x32xbf16>,
    return
  }
  func.func @transform_0(%arg0: i32, %arg1: i32) -> (i32, i32, i32) {
    %c0_i32 = arith.constant 0 : i32
    %c0_i32_0 = arith.constant 0 : i32
    return %arg0, %arg1, %c0_i32 : i32, i32, i32
  }
  func.func @transform_1(%arg0: i32, %arg1: i32) -> (i32, i32, i32) {
    %c0_i32 = arith.constant 0 : i32
    %c0_i32_0 = arith.constant 0 : i32
    return %arg0, %arg1, %c0_i32 : i32, i32, i32
  }
  func.func @transform_2(%arg0: i32, %arg1: i32) -> (i32, i32) {
    %c0_i32 = arith.constant 0 : i32
    %c0_i32_0 = arith.constant 0 : i32
    %c0_i32_1 = arith.constant 0 : i32
    return %c0_i32, %c0_i32_0 : i32, i32
  }
  func.func @transform_3(%arg0: i32, %arg1: i32) -> (i32, i32) {
    %c0_i32 = arith.constant 0 : i32
    %c0_i32_0 = arith.constant 0 : i32
    %c0_i32_1 = arith.constant 0 : i32
    return %c0_i32, %c0_i32_0 : i32, i32
  }
  func.func @transform_4(%arg0: i32, %arg1: i32) -> (i32, i32) {
    %c0_i32 = arith.constant 0 : i32
    %c0_i32_0 = arith.constant 0 : i32
    %c0_i32_1 = arith.constant 0 : i32
    return %c0_i32, %c0_i32_0 : i32, i32
  }
  func.func @transform_5(%arg0: i32, %arg1: i32) -> (i32, i32) {
    %c0_i32 = arith.constant 0 : i32
    %c0_i32_0 = arith.constant 0 : i32
    %c0_i32_1 = arith.constant 0 : i32
    return %c0_i32, %c0_i32_0 : i32, i32
  }
  func.func @transform_6(%arg0: i32, %arg1: i32) -> (i32, i32) {
    %c0_i32 = arith.constant 0 : i32
    %c0_i32_0 = arith.constant 0 : i32
    %c0_i32_1 = arith.constant 0 : i32
    return %c0_i32, %c0_i32_0 : i32, i32
  }
  func.func @transform_7(%arg0: i32, %arg1: i32) -> (i32, i32) {
    %c0_i32 = arith.constant 0 : i32
    %c0_i32_0 = arith.constant 0 : i32
    %c0_i32_1 = arith.constant 0 : i32
    return %c0_i32, %c0_i32_0 : i32, i32
  }
  func.func @transform_8(%arg0: i32, %arg1: i32) -> (i32, i32, i32) {
    %c0_i32 = arith.constant 0 : i32
    %c0_i32_0 = arith.constant 0 : i32
    return %arg0, %arg1, %c0_i32 : i32, i32, i32
  }
}

module attributes {stable_mosaic.version = 11 : i64} {
  func.func @_copy_prep_kernel(%arg0: i32, %arg1: memref<1x1x10xi32, #tpu.memory_space<vmem>>, %arg2: memref<1x8x32xbf16, #tpu.memory_space<vmem>>, %arg3: memref<1x10x32xbf16, #tpu.memory_space<vmem>>, %arg4: memref<1x32xf32, #tpu.memory_space<vmem>>, %arg5: memref<1x1xf32, #tpu.memory_space<vmem>>, %arg6: memref<1x8x10xf32, #tpu.memory_space<vmem>>, %arg7: memref<1x8x1xf32, #tpu.memory_space<vmem>>) attributes {dimension_semantics = [#tpu.dimension_semantics<parallel>], iteration_bounds = array<i64: 2>, scalar_prefetch = 0 : i64, scratch_operands = 0 : i64, tpu.core_type = #tpu.core_type<tc>, window_params = [{transform_indices = @transform_0, window_bounds = array<i64: 1, 1, 10>}, {transform_indices = @transform_1, window_bounds = array<i64: 1, 8, 32>}, {transform_indices = @transform_2, window_bounds = array<i64: 1, 10, 32>}, {pipeline_mode = #tpu.pipeline_mode<synchronous>, transform_indices = @transform_3, window_bounds = array<i64: 1, 32>}, {pipeline_mode = #tpu.pipeline_mode<synchronous>, transform_indices = @transform_4, window_bounds = array<i64: 1, 1>}, {transform_indices = @transform_5, window_bounds = array<i64: 1, 8, 10>}, {transform_indices = @transform_6, window_bounds = array<i64: 1, 8, 1>}]} {
    %c0 = arith.constant 0 : index
    %c0_0 = arith.constant 0 : index
    %c0_1 = arith.constant 0 : index
    %0 = vector.load %arg2[%c0, %c0_0, %c0_1] : memref<1x8x32xbf16, #tpu.memory_space<vmem>>, vector<1x8x32xbf16>
    %1 = vector.shape_cast %0 : vector<1x8x32xbf16> to vector<8x32xbf16>
    %c0_2 = arith.constant 0 : index
    %c0_3 = arith.constant 0 : index
    %c0_4 = arith.constant 0 : index
    %2 = vector.load %arg3[%c0_2, %c0_3, %c0_4] : memref<1x10x32xbf16, #tpu.memory_space<vmem>>, vector<1x10x32xbf16>
    %3 = vector.shape_cast %2 : vector<1x10x32xbf16> to vector<10x32xbf16>
    %4 = arith.extf %1 : vector<8x32xbf16> to vector<8x32xf32>
    %c0_5 = arith.constant 0 : index
    %c0_6 = arith.constant 0 : index
    %5 = vector.load %arg4[%c0_5, %c0_6] : memref<1x32xf32, #tpu.memory_space<vmem>>, vector<1x32xf32>
    %6 = vector.broadcast %5 : vector<1x32xf32> to vector<8x32xf32>
    %7 = arith.mulf %4, %6 : vector<8x32xf32>
    %cst = arith.constant dense<0.000000e+00> : vector<8xf32>
    %8 = vector.multi_reduction <add>, %7, %cst [1] : vector<8x32xf32> to vector<8xf32>
    %9 = vector.shape_cast %8 : vector<8xf32> to vector<8x1xf32>
    %c0_7 = arith.constant 0 : index
    %c0_8 = arith.constant 0 : index
    %10 = vector.load %arg5[%c0_7, %c0_8] : memref<1x1xf32, #tpu.memory_space<vmem>>, vector<1x1xf32>
    %11 = vector.broadcast %10 : vector<1x1xf32> to vector<8x1xf32>
    %12 = arith.addf %9, %11 : vector<8x1xf32>
    %13 = arith.negf %12 : vector<8x1xf32>
    %14 = math.exp %13 : vector<8x1xf32>
    %cst_9 = arith.constant 1.000000e+00 : f32
    %15 = vector.broadcast %cst_9 : f32 to vector<8x1xf32>
    %16 = arith.addf %15, %14 : vector<8x1xf32>
    %17 = arith.divf %15, %16 : vector<8x1xf32>
    %cst_10 = arith.constant dense<0.000000e+00> : vector<8x10xf32>
    %18 = tpu.matmul %1, %3, %cst_10 {dimension_numbers = #tpu.dot_dimension_numbers<[1], [1], [0], [0], [0, 0, 1, 0], [], []>} : vector<8x32xbf16>, vector<10x32xbf16>, vector<8x10xf32> -> vector<8x10xf32>
    %c0_11 = arith.constant 0 : index
    %c0_12 = arith.constant 0 : index
    %c0_13 = arith.constant 0 : index
    %19 = vector.load %arg1[%c0_11, %c0_12, %c0_13] : memref<1x1x10xi32, #tpu.memory_space<vmem>>, vector<1x1x10xi32>
    %20 = vector.shape_cast %19 : vector<1x1x10xi32> to vector<1x10xi32>
    %c0_i32 = arith.constant 0 : i32
    %21 = vector.broadcast %c0_i32 : i32 to vector<1x10xi32>
    %22 = arith.cmpi sgt, %20, %21 : vector<1x10xi32>
    %cst_14 = arith.constant -1.000000e+09 : f32
    %23 = vector.shape_cast %22 : vector<1x10xi1> to vector<1x10xi1>
    %24 = vector.broadcast %23 : vector<1x10xi1> to vector<8x10xi1>
    %25 = vector.broadcast %cst_14 : f32 to vector<8x10xf32>
    %26 = arith.select %24, %25, %18 : vector<8x10xi1>, vector<8x10xf32>
    %cst_15 = arith.constant dense<0xFF800000> : vector<8xf32>
    %27 = vector.multi_reduction <maximumf>, %26, %cst_15 [1] : vector<8x10xf32> to vector<8xf32>
    %28 = vector.shape_cast %27 : vector<8xf32> to vector<8x1xf32>
    %29 = vector.broadcast %28 : vector<8x1xf32> to vector<8x10xf32>
    %30 = arith.subf %26, %29 : vector<8x10xf32>
    %31 = math.exp %30 : vector<8x10xf32>
    %cst_16 = arith.constant dense<0.000000e+00> : vector<8xf32>
    %32 = vector.multi_reduction <add>, %31, %cst_16 [1] : vector<8x10xf32> to vector<8xf32>
    %33 = vector.shape_cast %32 : vector<8xf32> to vector<8x1xf32>
    %34 = vector.broadcast %33 : vector<8x1xf32> to vector<8x10xf32>
    %35 = arith.divf %31, %34 : vector<8x10xf32>
    %36 = vector.broadcast %17 : vector<8x1xf32> to vector<8x10xf32>
    %37 = arith.mulf %35, %36 : vector<8x10xf32>
    %c0_17 = arith.constant 0 : index
    %c0_18 = arith.constant 0 : index
    %c0_19 = arith.constant 0 : index
    %38 = vector.load %arg6[%c0_17, %c0_18, %c0_19] : memref<1x8x10xf32, #tpu.memory_space<vmem>>, vector<1x8x10xf32>
    %39 = vector.shape_cast %38 : vector<1x8x10xf32> to vector<8x10xf32>
    %40 = vector.shape_cast %37 : vector<8x10xf32> to vector<1x8x10xf32>
    tpu.vector_store %arg6[%c0_17, %c0_18, %c0_19], %40 {strides = array<i32>} : memref<1x8x10xf32, #tpu.memory_space<vmem>>, vector<1x8x10xf32>,
    %c0_20 = arith.constant 0 : index
    %c0_21 = arith.constant 0 : index
    %c0_22 = arith.constant 0 : index
    %41 = vector.load %arg7[%c0_20, %c0_21, %c0_22] : memref<1x8x1xf32, #tpu.memory_space<vmem>>, vector<1x8x1xf32>
    %42 = vector.shape_cast %41 : vector<1x8x1xf32> to vector<8x1xf32>
    %43 = vector.shape_cast %17 : vector<8x1xf32> to vector<1x8x1xf32>
    tpu.vector_store %arg7[%c0_20, %c0_21, %c0_22], %43 {strides = array<i32>} : memref<1x8x1xf32, #tpu.memory_space<vmem>>, vector<1x8x1xf32>,
    return
  }
  func.func @transform_0(%arg0: i32) -> (i32, i32, i32) {
    %c0_i32 = arith.constant 0 : i32
    %c0_i32_0 = arith.constant 0 : i32
    %c0_i32_1 = arith.constant 0 : i32
    return %arg0, %c0_i32, %c0_i32_0 : i32, i32, i32
  }
  func.func @transform_1(%arg0: i32) -> (i32, i32, i32) {
    %c0_i32 = arith.constant 0 : i32
    %c0_i32_0 = arith.constant 0 : i32
    %c0_i32_1 = arith.constant 0 : i32
    return %arg0, %c0_i32, %c0_i32_0 : i32, i32, i32
  }
  func.func @transform_2(%arg0: i32) -> (i32, i32, i32) {
    %c0_i32 = arith.constant 0 : i32
    %c0_i32_0 = arith.constant 0 : i32
    %c0_i32_1 = arith.constant 0 : i32
    return %arg0, %c0_i32, %c0_i32_0 : i32, i32, i32
  }
  func.func @transform_3(%arg0: i32) -> (i32, i32) {
    %c0_i32 = arith.constant 0 : i32
    %c0_i32_0 = arith.constant 0 : i32
    %c0_i32_1 = arith.constant 0 : i32
    return %c0_i32, %c0_i32_0 : i32, i32
  }
  func.func @transform_4(%arg0: i32) -> (i32, i32) {
    %c0_i32 = arith.constant 0 : i32
    %c0_i32_0 = arith.constant 0 : i32
    %c0_i32_1 = arith.constant 0 : i32
    return %c0_i32, %c0_i32_0 : i32, i32
  }
  func.func @transform_5(%arg0: i32) -> (i32, i32, i32) {
    %c0_i32 = arith.constant 0 : i32
    %c0_i32_0 = arith.constant 0 : i32
    %c0_i32_1 = arith.constant 0 : i32
    return %arg0, %c0_i32, %c0_i32_0 : i32, i32, i32
  }
  func.func @transform_6(%arg0: i32) -> (i32, i32, i32) {
    %c0_i32 = arith.constant 0 : i32
    %c0_i32_0 = arith.constant 0 : i32
    %c0_i32_1 = arith.constant 0 : i32
    return %arg0, %c0_i32, %c0_i32_0 : i32, i32, i32
  }
}

module attributes {stable_mosaic.version = 11 : i64} {
  func.func @_vocab_lse_kernel(%arg0: i32, %arg1: i32, %arg2: memref<1x8x32xbf16, #tpu.memory_space<vmem>>, %arg3: memref<32x128xbf16, #tpu.memory_space<vmem>>, %arg4: memref<1x128xf32, #tpu.memory_space<vmem>>, %arg5: memref<1x8x1xf32, #tpu.memory_space<vmem>>, %arg6: memref<8x1xf32, #tpu.memory_space<vmem>>, %arg7: memref<8x1xf32, #tpu.memory_space<vmem>>) attributes {dimension_semantics = [#tpu.dimension_semantics<parallel>, #tpu.dimension_semantics<arbitrary>], iteration_bounds = array<i64: 2, 1>, scalar_prefetch = 0 : i64, scratch_operands = 2 : i64, tpu.core_type = #tpu.core_type<tc>, window_params = [{transform_indices = @transform_0, window_bounds = array<i64: 1, 8, 32>}, {transform_indices = @transform_1, window_bounds = array<i64: 32, 128>}, {transform_indices = @transform_2, window_bounds = array<i64: 1, 128>}, {transform_indices = @transform_3, window_bounds = array<i64: 1, 8, 1>}]} {
    %c0_i32 = arith.constant 0 : i32
    %0 = arith.cmpi eq, %arg1, %c0_i32 : i32
    %1 = arith.extui %0 : i1 to i32
    %c0_i32_0 = arith.constant 0 : i32
    %2 = arith.cmpi ne, %1, %c0_i32_0 : i32
    scf.if %2 {
      %cst_19 = arith.constant -1.000000e+30 : f32
      %29 = vector.broadcast %cst_19 : f32 to vector<8x1xf32>
      %c0_20 = arith.constant 0 : index
      %c0_21 = arith.constant 0 : index
      %30 = vector.load %arg6[%c0_20, %c0_21] : memref<8x1xf32, #tpu.memory_space<vmem>>, vector<8x1xf32>
      tpu.vector_store %arg6[%c0_20, %c0_21], %29 {strides = array<i32>} : memref<8x1xf32, #tpu.memory_space<vmem>>, vector<8x1xf32>,
      %cst_22 = arith.constant 0.000000e+00 : f32
      %31 = vector.broadcast %cst_22 : f32 to vector<8x1xf32>
      %c0_23 = arith.constant 0 : index
      %c0_24 = arith.constant 0 : index
      %32 = vector.load %arg7[%c0_23, %c0_24] : memref<8x1xf32, #tpu.memory_space<vmem>>, vector<8x1xf32>
      tpu.vector_store %arg7[%c0_23, %c0_24], %31 {strides = array<i32>} : memref<8x1xf32, #tpu.memory_space<vmem>>, vector<8x1xf32>,
    } else {
    }
    %c0 = arith.constant 0 : index
    %c0_1 = arith.constant 0 : index
    %c0_2 = arith.constant 0 : index
    %3 = vector.load %arg2[%c0, %c0_1, %c0_2] : memref<1x8x32xbf16, #tpu.memory_space<vmem>>, vector<1x8x32xbf16>
    %4 = vector.shape_cast %3 : vector<1x8x32xbf16> to vector<8x32xbf16>
    %c0_3 = arith.constant 0 : index
    %c0_4 = arith.constant 0 : index
    %5 = vector.load %arg3[%c0_3, %c0_4] : memref<32x128xbf16, #tpu.memory_space<vmem>>, vector<32x128xbf16>
    %cst = arith.constant dense<0.000000e+00> : vector<8x128xf32>
    %6 = tpu.matmul %4, %5, %cst {dimension_numbers = #tpu.dot_dimension_numbers<[1], [0], [0], [1], [0, 0, 1, 1], [], []>} : vector<8x32xbf16>, vector<32x128xbf16>, vector<8x128xf32> -> vector<8x128xf32>
    %c0_5 = arith.constant 0 : index
    %c0_6 = arith.constant 0 : index
    %7 = vector.load %arg4[%c0_5, %c0_6] : memref<1x128xf32, #tpu.memory_space<vmem>>, vector<1x128xf32>
    %8 = vector.broadcast %7 : vector<1x128xf32> to vector<8x128xf32>
    %9 = arith.addf %6, %8 : vector<8x128xf32>
    %c0_7 = arith.constant 0 : index
    %c0_8 = arith.constant 0 : index
    %10 = vector.load %arg6[%c0_7, %c0_8] : memref<8x1xf32, #tpu.memory_space<vmem>>, vector<8x1xf32>
    %cst_9 = arith.constant dense<0xFF800000> : vector<8xf32>
    %11 = vector.multi_reduction <maximumf>, %9, %cst_9 [1] : vector<8x128xf32> to vector<8xf32>
    %12 = vector.shape_cast %11 : vector<8xf32> to vector<8x1xf32>
    %13 = arith.maximumf %10, %12 : vector<8x1xf32>
    %c0_10 = arith.constant 0 : index
    %c0_11 = arith.constant 0 : index
    %14 = vector.load %arg7[%c0_10, %c0_11] : memref<8x1xf32, #tpu.memory_space<vmem>>, vector<8x1xf32>
    %15 = arith.subf %10, %13 : vector<8x1xf32>
    %16 = math.exp %15 : vector<8x1xf32>
    %17 = arith.mulf %14, %16 : vector<8x1xf32>
    %18 = vector.broadcast %13 : vector<8x1xf32> to vector<8x128xf32>
    %19 = arith.subf %9, %18 : vector<8x128xf32>
    %20 = math.exp %19 : vector<8x128xf32>
    %cst_12 = arith.constant dense<0.000000e+00> : vector<8xf32>
    %21 = vector.multi_reduction <add>, %20, %cst_12 [1] : vector<8x128xf32> to vector<8xf32>
    %22 = vector.shape_cast %21 : vector<8xf32> to vector<8x1xf32>
    %23 = arith.addf %17, %22 : vector<8x1xf32>
    %c0_13 = arith.constant 0 : index
    %c0_14 = arith.constant 0 : index
    %24 = vector.load %arg7[%c0_13, %c0_14] : memref<8x1xf32, #tpu.memory_space<vmem>>, vector<8x1xf32>
    tpu.vector_store %arg7[%c0_13, %c0_14], %23 {strides = array<i32>} : memref<8x1xf32, #tpu.memory_space<vmem>>, vector<8x1xf32>,
    %c0_15 = arith.constant 0 : index
    %c0_16 = arith.constant 0 : index
    %25 = vector.load %arg6[%c0_15, %c0_16] : memref<8x1xf32, #tpu.memory_space<vmem>>, vector<8x1xf32>
    tpu.vector_store %arg6[%c0_15, %c0_16], %13 {strides = array<i32>} : memref<8x1xf32, #tpu.memory_space<vmem>>, vector<8x1xf32>,
    %c0_i32_17 = arith.constant 0 : i32
    %26 = arith.cmpi eq, %arg1, %c0_i32_17 : i32
    %27 = arith.extui %26 : i1 to i32
    %c0_i32_18 = arith.constant 0 : i32
    %28 = arith.cmpi ne, %27, %c0_i32_18 : i32
    scf.if %28 {
      %c0_19 = arith.constant 0 : index
      %c0_20 = arith.constant 0 : index
      %29 = vector.load %arg6[%c0_19, %c0_20] : memref<8x1xf32, #tpu.memory_space<vmem>>, vector<8x1xf32>
      %c0_21 = arith.constant 0 : index
      %c0_22 = arith.constant 0 : index
      %30 = vector.load %arg7[%c0_21, %c0_22] : memref<8x1xf32, #tpu.memory_space<vmem>>, vector<8x1xf32>
      %31 = math.log %30 : vector<8x1xf32>
      %32 = arith.addf %29, %31 : vector<8x1xf32>
      %c0_23 = arith.constant 0 : index
      %c0_24 = arith.constant 0 : index
      %c0_25 = arith.constant 0 : index
      %33 = vector.load %arg5[%c0_23, %c0_24, %c0_25] : memref<1x8x1xf32, #tpu.memory_space<vmem>>, vector<1x8x1xf32>
      %34 = vector.shape_cast %33 : vector<1x8x1xf32> to vector<8x1xf32>
      %35 = vector.shape_cast %32 : vector<8x1xf32> to vector<1x8x1xf32>
      tpu.vector_store %arg5[%c0_23, %c0_24, %c0_25], %35 {strides = array<i32>} : memref<1x8x1xf32, #tpu.memory_space<vmem>>, vector<1x8x1xf32>,
    } else {
    }
    return
  }
  func.func @transform_0(%arg0: i32, %arg1: i32) -> (i32, i32, i32) {
    %c0_i32 = arith.constant 0 : i32
    %c0_i32_0 = arith.constant 0 : i32
    %c0_i32_1 = arith.constant 0 : i32
    return %arg0, %c0_i32, %c0_i32_0 : i32, i32, i32
  }
  func.func @transform_1(%arg0: i32, %arg1: i32) -> (i32, i32) {
    %c0_i32 = arith.constant 0 : i32
    %c0_i32_0 = arith.constant 0 : i32
    return %c0_i32, %arg1 : i32, i32
  }
  func.func @transform_2(%arg0: i32, %arg1: i32) -> (i32, i32) {
    %c0_i32 = arith.constant 0 : i32
    %c0_i32_0 = arith.constant 0 : i32
    return %c0_i32, %arg1 : i32, i32
  }
  func.func @transform_3(%arg0: i32, %arg1: i32) -> (i32, i32, i32) {
    %c0_i32 = arith.constant 0 : i32
    %c0_i32_0 = arith.constant 0 : i32
    %c0_i32_1 = arith.constant 0 : i32
    return %arg0, %c0_i32, %c0_i32_0 : i32, i32, i32
  }
}

module attributes {stable_mosaic.version = 11 : i64} {
  func.func @_copy_out_kernel(%arg0: i32, %arg1: i32, %arg2: memref<1x10x1xi32, #tpu.memory_space<vmem>>, %arg3: memref<1x8x32xbf16, #tpu.memory_space<vmem>>, %arg4: memref<1x8x1xf32, #tpu.memory_space<vmem>>, %arg5: memref<1x8x1xf32, #tpu.memory_space<vmem>>, %arg6: memref<1x8x10xf32, #tpu.memory_space<vmem>>, %arg7: memref<32x128xbf16, #tpu.memory_space<vmem>>, %arg8: memref<1x128xf32, #tpu.memory_space<vmem>>, %arg9: memref<1x8x128xf32, #tpu.memory_space<vmem>>) attributes {dimension_semantics = [#tpu.dimension_semantics<parallel>, #tpu.dimension_semantics<parallel>], iteration_bounds = array<i64: 2, 1>, scalar_prefetch = 0 : i64, scratch_operands = 0 : i64, tpu.core_type = #tpu.core_type<tc>, window_params = [{transform_indices = @transform_0, window_bounds = array<i64: 1, 10, 1>}, {transform_indices = @transform_1, window_bounds = array<i64: 1, 8, 32>}, {transform_indices = @transform_2, window_bounds = array<i64: 1, 8, 1>}, {transform_indices = @transform_3, window_bounds = array<i64: 1, 8, 1>}, {transform_indices = @transform_4, window_bounds = array<i64: 1, 8, 10>}, {transform_indices = @transform_5, window_bounds = array<i64: 32, 128>}, {transform_indices = @transform_6, window_bounds = array<i64: 1, 128>}, {transform_indices = @transform_7, window_bounds = array<i64: 1, 8, 128>}]} {
    %c0 = arith.constant 0 : index
    %c0_0 = arith.constant 0 : index
    %c0_1 = arith.constant 0 : index
    %0 = vector.load %arg3[%c0, %c0_0, %c0_1] : memref<1x8x32xbf16, #tpu.memory_space<vmem>>, vector<1x8x32xbf16>
    %1 = vector.shape_cast %0 : vector<1x8x32xbf16> to vector<8x32xbf16>
    %c0_2 = arith.constant 0 : index
    %c0_3 = arith.constant 0 : index
    %2 = vector.load %arg7[%c0_2, %c0_3] : memref<32x128xbf16, #tpu.memory_space<vmem>>, vector<32x128xbf16>
    %cst = arith.constant dense<0.000000e+00> : vector<8x128xf32>
    %3 = tpu.matmul %1, %2, %cst {dimension_numbers = #tpu.dot_dimension_numbers<[1], [0], [0], [1], [0, 0, 1, 1], [], []>} : vector<8x32xbf16>, vector<32x128xbf16>, vector<8x128xf32> -> vector<8x128xf32>
    %c0_4 = arith.constant 0 : index
    %c0_5 = arith.constant 0 : index
    %4 = vector.load %arg8[%c0_4, %c0_5] : memref<1x128xf32, #tpu.memory_space<vmem>>, vector<1x128xf32>
    %5 = vector.broadcast %4 : vector<1x128xf32> to vector<8x128xf32>
    %6 = arith.addf %3, %5 : vector<8x128xf32>
    %c0_6 = arith.constant 0 : index
    %c0_7 = arith.constant 0 : index
    %c0_8 = arith.constant 0 : index
    %7 = vector.load %arg4[%c0_6, %c0_7, %c0_8] : memref<1x8x1xf32, #tpu.memory_space<vmem>>, vector<1x8x1xf32>
    %8 = vector.shape_cast %7 : vector<1x8x1xf32> to vector<8x1xf32>
    %9 = vector.broadcast %8 : vector<8x1xf32> to vector<8x128xf32>
    %10 = arith.subf %6, %9 : vector<8x128xf32>
    %11 = math.exp %10 : vector<8x128xf32>
    %c128_i32 = arith.constant 128 : i32
    %12 = arith.muli %arg1, %c128_i32 : i32
    %c0_9 = arith.constant 0 : index
    %c0_10 = arith.constant 0 : index
    %c0_11 = arith.constant 0 : index
    %13 = vector.load %arg2[%c0_9, %c0_10, %c0_11] : memref<1x10x1xi32, #tpu.memory_space<vmem>>, vector<1x10x1xi32>
    %14 = vector.shape_cast %13 : vector<1x10x1xi32> to vector<10x1xi32>
    %15 = tpu.iota {dimensions = array<i32: 1>} : vector<10x128xi32>
    %16 = vector.broadcast %12 : i32 to vector<10x128xi32>
    %17 = arith.addi %15, %16 : vector<10x128xi32>
    %18 = vector.broadcast %14 : vector<10x1xi32> to vector<10x128xi32>
    %19 = arith.cmpi eq, %18, %17 : vector<10x128xi32>
    %20 = arith.extui %19 : vector<10x128xi1> to vector<10x128xi32>
    %21 = arith.sitofp %20 : vector<10x128xi32> to vector<10x128xf32>
    %c0_12 = arith.constant 0 : index
    %c0_13 = arith.constant 0 : index
    %c0_14 = arith.constant 0 : index
    %22 = vector.load %arg6[%c0_12, %c0_13, %c0_14] : memref<1x8x10xf32, #tpu.memory_space<vmem>>, vector<1x8x10xf32>
    %23 = vector.shape_cast %22 : vector<1x8x10xf32> to vector<8x10xf32>
    %cst_15 = arith.constant dense<0.000000e+00> : vector<8x128xf32>
    %24 = tpu.matmul %23, %21, %cst_15 {dimension_numbers = #tpu.dot_dimension_numbers<[1], [0], [0], [1], [0, 0, 1, 1], [], []>} : vector<8x10xf32>, vector<10x128xf32>, vector<8x128xf32> -> vector<8x128xf32>
    %c0_16 = arith.constant 0 : index
    %c0_17 = arith.constant 0 : index
    %c0_18 = arith.constant 0 : index
    %25 = vector.load %arg5[%c0_16, %c0_17, %c0_18] : memref<1x8x1xf32, #tpu.memory_space<vmem>>, vector<1x8x1xf32>
    %26 = vector.shape_cast %25 : vector<1x8x1xf32> to vector<8x1xf32>
    %cst_19 = arith.constant 1.000000e+00 : f32
    %27 = vector.broadcast %cst_19 : f32 to vector<8x1xf32>
    %28 = arith.subf %27, %26 : vector<8x1xf32>
    %29 = vector.broadcast %28 : vector<8x1xf32> to vector<8x128xf32>
    %30 = arith.mulf %29, %11 : vector<8x128xf32>
    %31 = arith.addf %30, %24 : vector<8x128xf32>
    %cst_20 = arith.constant 9.99999993E-9 : f32
    %32 = vector.broadcast %cst_20 : f32 to vector<8x128xf32>
    %33 = arith.addf %31, %32 : vector<8x128xf32>
    %34 = math.log %33 : vector<8x128xf32>
    %c0_21 = arith.constant 0 : index
    %c0_22 = arith.constant 0 : index
    %c0_23 = arith.constant 0 : index
    %35 = vector.load %arg9[%c0_21, %c0_22, %c0_23] : memref<1x8x128xf32, #tpu.memory_space<vmem>>, vector<1x8x128xf32>
    %36 = vector.shape_cast %35 : vector<1x8x128xf32> to vector<8x128xf32>
    %37 = vector.shape_cast %34 : vector<8x128xf32> to vector<1x8x128xf32>
    tpu.vector_store %arg9[%c0_21, %c0_22, %c0_23], %37 {strides = array<i32>} : memref<1x8x128xf32, #tpu.memory_space<vmem>>, vector<1x8x128xf32>,
    return
  }
  func.func @transform_0(%arg0: i32, %arg1: i32) -> (i32, i32, i32) {
    %c0_i32 = arith.constant 0 : i32
    %c0_i32_0 = arith.constant 0 : i32
    %c0_i32_1 = arith.constant 0 : i32
    return %arg0, %c0_i32, %c0_i32_0 : i32, i32, i32
  }
  func.func @transform_1(%arg0: i32, %arg1: i32) -> (i32, i32, i32) {
    %c0_i32 = arith.constant 0 : i32
    %c0_i32_0 = arith.constant 0 : i32
    %c0_i32_1 = arith.constant 0 : i32
    return %arg0, %c0_i32, %c0_i32_0 : i32, i32, i32
  }
  func.func @transform_2(%arg0: i32, %arg1: i32) -> (i32, i32, i32) {
    %c0_i32 = arith.constant 0 : i32
    %c0_i32_0 = arith.constant 0 : i32
    %c0_i32_1 = arith.constant 0 : i32
    return %arg0, %c0_i32, %c0_i32_0 : i32, i32, i32
  }
  func.func @transform_3(%arg0: i32, %arg1: i32) -> (i32, i32, i32) {
    %c0_i32 = arith.constant 0 : i32
    %c0_i32_0 = arith.constant 0 : i32
    %c0_i32_1 = arith.constant 0 : i32
    return %arg0, %c0_i32, %c0_i32_0 : i32, i32, i32
  }
  func.func @transform_4(%arg0: i32, %arg1: i32) -> (i32, i32, i32) {
    %c0_i32 = arith.constant 0 : i32
    %c0_i32_0 = arith.constant 0 : i32
    %c0_i32_1 = arith.constant 0 : i32
    return %arg0, %c0_i32, %c0_i32_0 : i32, i32, i32
  }
  func.func @transform_5(%arg0: i32, %arg1: i32) -> (i32, i32) {
    %c0_i32 = arith.constant 0 : i32
    %c0_i32_0 = arith.constant 0 : i32
    return %c0_i32, %arg1 : i32, i32
  }
  func.func @transform_6(%arg0: i32, %arg1: i32) -> (i32, i32) {
    %c0_i32 = arith.constant 0 : i32
    %c0_i32_0 = arith.constant 0 : i32
    return %c0_i32, %arg1 : i32, i32
  }
  func.func @transform_7(%arg0: i32, %arg1: i32) -> (i32, i32, i32) {
    %c0_i32 = arith.constant 0 : i32
    %c0_i32_0 = arith.constant 0 : i32
    return %arg0, %c0_i32, %arg1 : i32, i32, i32
  }
}

</mosaic_0001>

<bundles_post_ra>
// kernel: forward.34
= control target key start
LH: loop header
LB: loop body
LE: loop exit
PB: predicated region body
PF: predicated region fallthrough
CT: control target
= control target key end

     0   :  { %s945_s27 = smov 0   ;;  %s947_s28 = smov 0   ;;  %s1036_s0 = inlined_call_operand.vmem [shape: bf16[2,10,32], index: 0, kind: input, shape index: {}]   ;;  %s1037_s1 = inlined_call_operand.vmem [shape: f32[2,10,1], index: 1, kind: input, shape index: {}]   ;;  %s1038_s2 = inlined_call_operand.vmem [shape: bf16[32,128], index: 2, kind: input, shape index: {}]   ;;  %s1039_s3 = inlined_call_operand.vmem [shape: f32[1,128], index: 3, kind: input, shape index: {}]   ;;  %s1040_s4 = inlined_call_operand.vmem [shape: bf16[128,32], index: 4, kind: input, shape index: {}]   ;;  %s1041_s5 = inlined_call_operand.vmem [shape: f32[1,32], index: 5, kind: input, shape index: {}]   ;;  %s1042_s6 = inlined_call_operand.vmem [shape: f32[1,32], index: 6, kind: input, shape index: {}]   ;;  %s1043_s7 = inlined_call_operand.vmem [shape: f32[1,32], index: 7, kind: input, shape index: {}]   ;;  %s1044_s8 = inlined_call_operand.vmem [shape: bf16[2,10,32], index: 8, kind: output, shape index: {}]  }
   0x1   :  { %s949_s29 = smov 0  }
   0x2 LB: > { %s30_s30 = sadd.s32 1, %s891_s28  ;;  %p757_p0 = scmp.ge.s32.totalorder %s895_s29, 1  ;;  %s895_s29 = sphi %s949_s29, %s18_s29   ;;  %s891_s28 = sphi %s947_s28, %s1046_s28   ;;  %s887_s27 = sphi %s945_s27, %s1045_s27  }
   0x3   : > { %p32_p1 = scmp.ge.s32.totalorder %s30_s30, 2  ;;  %p300_p2 = scmp.lt.s32.totalorder %s895_s29, 3 }
   0x5   : > { %s1048_s30 = smov (%p32_p1, %s30_s30), 0  ;;  %p301_p3 = pnand %p757_p0, %p300_p2 }
   0x6   : > { %v858_v0 = vld [vmem:[%s1038_s2] sm:$0xff] (!%p301_p3)   ;;  %v897_v1 = vmov (!%p301_p3), 0.0   ;;  %v859_v2 = vld [vmem:[%s1038_s2 + $0x8] sm:$0xff] (!%p301_p3)   ;;  %vm898_vm0 = vmmov (!%p301_p3), 0   ;;  %p352_p4 = scmp.lt.s32.totalorder (!%p301_p3), %s887_s27, 1  ;;  %vm412_vm1 = vcmask (!%p301_p3), 261120  }
   0x7   : > { %304 = sbr.rel (%p301_p3) target bundleno = 778 (0x30a), region = 52  ;;  %801 = vmatprep.subr.bf16.mxu0 (!%p301_p3), %v897_v1  ;;  %809 = vmatprep.subr.bf16.mxu1 (!%p301_p3), %v897_v1  ;;  %v861_v3 = vld [vmem:[%s1040_s4] sm:$0xff] (!%p301_p3)   ;;  %v862_v4 = vld [vmem:[%s1040_s4 + $0x8] sm:$0xff] (!%p301_p3)   ;;  %v863_v8 = vld [vmem:[%s1040_s4 + $0x10] sm:$0xff] (!%p301_p3)   ;;  %vm579_vm2 = vcmask (!%p301_p3), 254976   ;;  %v899_v37 = vmov (!%p301_p3), 0  }
   0x8   : > { %802 = vmatpush3.bf16.msra.mxu0 (!%p301_p3), %v858_v0  ;;  %805 = vmatprep.mubr.msk.bf16.mxu0 (!%p301_p3), %vm898_vm0, %v897_v1  ;;  %v864_v9 = vld [vmem:[%s1040_s4 + $0x18] sm:$0xff] (!%p301_p3)   ;;  %v865_v10 = vld [vmem:[%s1040_s4 + $0x20] sm:$0xff] (!%p301_p3)   ;;  %v866_v11 = vld [vmem:[%s1040_s4 + $0x28] sm:$0xff] (!%p301_p3)   ;;  %vm644_vm3 = vcmask (!%p301_p3), 257024   ;;  %vm646_vm4 = vcmask (!%p301_p3), 253952  }
   0x9   : > { %803 = vmatprep.subr.bf16.mxu0 (!%p301_p3), %v897_v1  ;;  %825 = vmatprep.mubr.msk.bf16.mxu1 (!%p301_p3), %vm898_vm0, %v897_v1  ;;  %v867_v12 = vld [vmem:[%s1040_s4 + $0x30] sm:$0xff] (!%p301_p3)   ;;  %v868_v13 = vld [vmem:[%s1040_s4 + $0x38] sm:$0xff] (!%p301_p3)   ;;  %v764_v14 = vld [vmem:[%s1039_s3] ss:$0 sm:$0xff] (!%p301_p3) }
   0xa   : > { %810 = vmatpush3.bf16.msra.mxu1 (!%p301_p3), %v861_v3  ;;  %v769_v24 = vld [vmem:[%s1041_s5] ss:$0 sm:$0xff] (!%p301_p3)  ;;  %856 = vset.pattern.permute.xlu0 (!%p301_p3), %v899_v37 }
   0xb   : > { %811 = vmatprep.subr.bf16.mxu1 (!%p301_p3), %v897_v1  ;;  %857 = vset.pattern.permute.xlu1 (!%p301_p3), %v899_v37  ;;  %v778_v57 = vld [vmem:[%s1042_s6] ss:$0 sm:$0xff] (!%p301_p3) }
   0xc   : > { %804 = vmatpush3.bf16.msra.mxu0 (!%p301_p3), %v859_v2  ;;  %v779_v59 = vld [vmem:[%s1043_s7] ss:$0 sm:$0xff] (!%p301_p3) }
   0xe   : > { %s1050_s27 = smov (!%p352_p4, %s887_s27), 1  ;;  %812 = vmatpush3.bf16.msra.mxu1 %v862_v4 }
   0xf   : > { %s784_s17 = sshll.u32 %s1050_s27, 3  ;;  %813 = vmatprep.subr.bf16.mxu1 %v897_v1 }
  0x10   : > { %s359_s20 = scalar_lea.vmem %s1036_s0, %s784_s17  ;;  %s379_s12 = scalar_lea.vmem %s1044_s8, %s784_s17 }
  0x11   : > { %v382_v5 = vld [vmem:[%s359_s20] sm:$0xf]  ;;  %v383_v6 = vld [vmem:[%s359_s20 + $0x4] sm:$0x1]  ;;  %s785_s20 = sshll.u32 %s1050_s27, 4 }
  0x12   : > { %v765_v7 = vcombine.low %v382_v5, %v383_v6  ;;  %814 = vmatpush3.bf16.msra.mxu1 %v863_v8  ;;  %v572_v25 = vunpack.c.l.bf16 %v382_v5  ;;  %v573_v29 = vunpack.c.l.bf16 %v383_v6  ;;  %s369_s23 = scalar_lea.vmem %s1037_s1, %s785_s20 }
  0x13   : > { %815 = vmatprep.subr.bf16.mxu1 %v897_v1  ;;  %v622_v38 = vld [vmem:[%s369_s23] sm:$0xff]  ;;  %v623_v49 = vld [vmem:[%s369_s23 + $0x8] sm:$0x3] }
  0x14   : > { %806 = vmatmul.mubr.msk.bf16.vlgmr.msra.gmra.mrb[0].mxu0 %vm412_vm1, %v765_v7 }
  0x16   : > { %816 = vmatpush3.bf16.msra.mxu1 %v864_v9 }
  0x17   : > { %817 = vmatprep.subr.bf16.mxu1 %v897_v1 }
  0x1a   : > { %818 = vmatpush3.bf16.msra.mxu1 %v865_v10 }
  0x1b   : > { %819 = vmatprep.subr.bf16.mxu1 %v897_v1 }
  0x1e   : > { %820 = vmatpush3.bf16.msra.mxu1 %v866_v11 }
  0x1f   : > { %821 = vmatprep.subr.bf16.mxu1 %v897_v1 }
  0x22   : > { %822 = vmatpush3.bf16.msra.mxu1 %v867_v12 }
  0x23   : > { %823 = vmatprep.subr.bf16.mxu1 %v897_v1 }
  0x26   : > { %824 = vmatpush3.bf16.msra.mxu1 %v868_v13 }
  0xe7   : > { %v450_v15 = vpop.f32.mrb[0].mxu0 }
  0xe8   : > { %v451_v16 = vadd.f32 %v764_v14, %v450_v15  ;;  %v807_v17 = vpop.f32.mrb[1].mxu0 }
  0xe9   : > { %v453_v18 = vpop.f32.mrb[2].mxu0 }
  0xea   : > { %v454_v19 = vadd.f32 %v764_v14, %v453_v18  ;;  %v808_v20 = vpop.f32.mrb[3].mxu0  ;;  %v457_v21 = vmax.f32 %v451_v16, 0.0 }
  0xec   : > { %v458_v22 = vmax.f32 %v454_v19, 0.0 }
  0xee   : > { %v459_v23 = vpack.c.bf16 %v458_v22, %v457_v21 }
  0xf0   : > { %826 = vmatmul.mubr.bf16.vlgmr.msra.gmra.mrb[0].mxu1 %v459_v23 }
 0x1c3   : > { %v565_v26 = vpop.f32.mrb[0].mxu1 }
 0x1c4   : > { %v566_v27 = vadd.f32 %v769_v24, %v565_v26  ;;  %v827_v28 = vpop.f32.mrb[1].mxu1 }
 0x1c5   : > { %v568_v30 = vpop.f32.mrb[2].mxu1 }
 0x1c6   : > { %v569_v31 = vadd.f32 %v769_v24, %v568_v30  ;;  %v828_v32 = vpop.f32.mrb[3].mxu1  ;;  %v574_v33 = vadd.f32 %v572_v25, %v566_v27 }
 0x1c8   : > { %v576_v34 = vsel %vm412_vm1, %v574_v33, 0.0  ;;  %v575_v35 = vadd.f32 %v573_v29, %v569_v31 }
 0x1c9   : > { %577 = vadd.xlane.f32.xlu0 %v576_v34 }
 0x1ca   : > { %v580_v36 = vsel %vm579_vm2, %v575_v35, 0.0 }
 0x1cd   : > { %581 = vadd.xlane.f32.xlu0 %v580_v36 }
 0x1e3   : > { %626 = vperm.xlu0 %856, %v622_v38  }
 0x256   : > { %v578_v39 = vpop.xlane.xlu0 %577 }
 0x257   : > { %v584_v40 = vmul.f32 0.03125, %v578_v39 }
 0x259   : > { %v586_v41 = vsub.f32 %v574_v33, %v584_v40 }
 0x25a   : > { %v582_v42 = vpop.xlane.xlu0 %581 }
 0x25b   : > { %v585_v43 = vmul.f32 0.03125, %v582_v42  ;;  %v588_v44 = vmul.f32 %v586_v41, %v586_v41 }
 0x25d   : > { %v587_v45 = vsub.f32 %v575_v35, %v585_v43  ;;  %v590_v46 = vsel %vm412_vm1, %v588_v44, 0.0 }
 0x25e   : > { %591 = vadd.xlane.f32.xlu1 %v590_v46 }
 0x25f   : > { %v589_v47 = vmul.f32 %v587_v45, %v587_v45 }
 0x261   : > { %v593_v48 = vsel %vm579_vm2, %v589_v47, 0.0 }
 0x262   : > { %594 = vadd.xlane.f32.xlu1 %v593_v48  ;;  %v627_v62 = vpop.permute.xlu0 %626 }
 0x273   : > { %631 = vperm.xlu1 %857, %v623_v49  }
 0x2eb   : > { %v592_v50 = vpop.xlane.xlu1 %591 }
 0x2ec   : > { %v596_v51 = vmul.f32 0.03125, %v592_v50 }
 0x2ee   : > { %v598_v52 = vadd.f32 1e-05, %v596_v51 }
 0x2ef   : > { %v595_v53 = vpop.xlane.xlu1 %594 }
 0x2f0   : > { %869 = vrsqrt.f32 %v598_v52  ;;  %v597_v54 = vmul.f32 0.03125, %v595_v53 }
 0x2f2   : > { %v599_v55 = vadd.f32 1e-05, %v597_v54 }
 0x2f3   : > { %v632_v3 = vpop.permute.xlu1 %631 }
 0x2f4   : > { %871 = vrsqrt.f32 %v599_v55 }
 0x2fa   : > { %v870_v56 = vpop.eup %869 }
 0x2fb   : > { %v602_v58 = vmul.f32 %v870_v56, %v586_v41 }
 0x2fd   : > { %v611_v60 = vmul.f32 %v778_v57, %v602_v58 }
 0x2fe   : > { %v872_v61 = vpop.eup %871 }
 0x2ff   : > { %v620_v63 = vadd.f32 %v779_v59, %v611_v60  ;;  %v603_v0 = vmul.f32 %v872_v61, %v587_v45 }
 0x301   : > { %v634_v1 = vmul.f32 %v627_v62, %v620_v63  ;;  %v612_v2 = vmul.f32 %v778_v57, %v603_v0 }
 0x303   : > { %v787_v4 = vpack.c.bf16 %v634_v1, %v634_v1  ;;  %v621_v5 = vadd.f32 %v779_v59, %v612_v2 }
 0x305   : > { %645 = vst.msk [vmem:[%s379_s12] sm:$0xf] %vm644_vm3, %v787_v4  ;;  %v635_v6 = vmul.f32 %v632_v3, %v621_v5 }
 0x307   : > { %v788_v7 = vpack.c.bf16 %v635_v6, %v635_v6 }
 0x309   : > { %647 = vst.msk [vmem:[%s379_s12 + $0x4] sm:$0x1] %vm646_vm4, %v788_v7 }
 0x30a PF: > { %s18_s29 = sadd.s32 1, %s895_s29   ;;  %s1045_s27 = smov %s891_s28 }
 0x30b   : > { %p15_p5 = scmp.ge.s32.totalorder %s18_s29, 4   ;;  %s1046_s28 = smov %s1048_s30 }
 0x30d   :  { %17 = sbr.rel (!%p15_p5) target bundleno = 2 (0x2), region = 85 }

// kernel: forward.33
= control target key start
LH: loop header
LB: loop body
LE: loop exit
PB: predicated region body
PF: predicated region fallthrough
CT: control target
= control target key end

     0   :  { %s1749_s30 = smov 0   ;;  %s1751_s10 = smov 0   ;;  %s1964_s0 = inlined_call_operand.vmem [shape: bf16[2,10,10], index: 0, kind: input, shape index: {}]   ;;  %s1965_s1 = inlined_call_operand.vmem [shape: f32[2,10,1], index: 1, kind: input, shape index: {}]   ;;  %s1966_s2 = inlined_call_operand.vmem [shape: bf16[2,10,32], index: 2, kind: input, shape index: {}]   ;;  %s1967_s3 = inlined_call_operand.vmem [shape: bf16[32,96], index: 3, kind: input, shape index: {}]   ;;  %s1968_s4 = inlined_call_operand.vmem [shape: f32[1,96], index: 4, kind: input, shape index: {}]   ;;  %s1969_s5 = inlined_call_operand.vmem [shape: bf16[32,32], index: 5, kind: input, shape index: {}]   ;;  %s1970_s6 = inlined_call_operand.vmem [shape: f32[1,32], index: 6, kind: input, shape index: {}]   ;;  %s1971_s7 = inlined_call_operand.vmem [shape: f32[1,32], index: 7, kind: input, shape index: {}]   ;;  %s1972_s8 = inlined_call_operand.vmem [shape: f32[1,32], index: 8, kind: input, shape index: {}]   ;;  %s1973_s9 = inlined_call_operand.vmem [shape: bf16[2,10,32], index: 9, kind: output, shape index: {}]  }
   0x1   :  { %s1753_s11 = smov 0  }
   0x2 LB: > { %s31_s12 = sadd.s32 1, %s1679_s10  ;;  %p1436_p0 = scmp.ge.s32.totalorder %s1683_s11, 1  ;;  %s1683_s11 = sphi %s1753_s11, %s19_s11   ;;  %s1679_s10 = sphi %s1751_s10, %s1979_s10   ;;  %s1675_s30 = sphi %s1749_s30, %s1978_s30  }
   0x3   : > { %p33_p1 = scmp.ge.s32.totalorder %s31_s12, 2  ;;  %p335_p2 = scmp.lt.s32.totalorder %s1683_s11, 3 }
   0x5   : > { %s1981_s12 = smov (%p33_p1, %s31_s12), 0  ;;  %p336_p3 = pnand %p1436_p0, %p335_p2 }
   0x6   : > { %v1622_v0 = vld [vmem:[%s1967_s3] sm:$0xff] (!%p336_p3)   ;;  %v1685_v1 = vmov (!%p336_p3), 0.0   ;;  %v1623_v2 = vld [vmem:[%s1967_s3 + $0x8] sm:$0xff] (!%p336_p3)   ;;  %vm1686_vm0 = vmmov (!%p336_p3), 0   ;;  %p394_p4 = scmp.lt.s32.totalorder (!%p336_p3), %s1675_s30, 1  ;;  %vm462_vm1 = vcmask (!%p336_p3), 261120  }
   0x7   : > { %339 = sbr.rel (%p336_p3) target bundleno = 2958 (0xb8e), region = 56  ;;  %1502 = vmatprep.subr.bf16.mxu0 (!%p336_p3), %v1685_v1  ;;  %1510 = vmatprep.subr.bf16.mxu1 (!%p336_p3), %v1685_v1  ;;  %v1445_v6 = vld [vmem:[%s1968_s4] ss:$0 sm:$0xff] (!%p336_p3)  ;;  %s1687_s23 = smov (!%p336_p3), 120   ;;  %vm519_vm2 = vcmask (!%p336_p3), 64512   ;;  %v1690_v19 = vmov (!%p336_p3), 0  }
   0x8   : > { %1503 = vmatpush3.bf16.msra.mxu0 (!%p336_p3), %v1622_v0  ;;  %1506 = vmatprep.mubr.msk.bf16.mxu0 (!%p336_p3), %vm1686_vm0, %v1685_v1  ;;  %s1688_s24 = smov (!%p336_p3), 96   ;;  %s1689_s25 = smov (!%p336_p3), 88   ;;  %vm577_vm6 = vcmask (!%p336_p3), 80896   ;;  %vm581_vm8 = vcmask (!%p336_p3), 74752   ;;  %vm607_vm9 = vcmask (!%p336_p3), 1044480   ;;  %vm784_vm10 = vcmask (!%p336_p3), 1043456  }
   0x9   : > { %1504 = vmatprep.subr.bf16.mxu0 (!%p336_p3), %v1685_v1  ;;  %1512 = vmatprep.mubr.msk.bf16.mxu1 (!%p336_p3), %vm1686_vm0, %v1685_v1  ;;  %s1691_s29 = smov (!%p336_p3), 56   ;;  %s1692_s13 = smov (!%p336_p3), 64   ;;  %vm1246_vm11 = vcmask (!%p336_p3), 254976   ;;  %vm1311_vm12 = vcmask (!%p336_p3), 257024   ;;  %vm1313_vm13 = vcmask (!%p336_p3), 253952  }
   0xa   : > { %1620 = vset.pattern.permute.xlu1 (!%p336_p3), %v1690_v19  ;;  %1621 = vset.pattern.permute.xlu0 (!%p336_p3), %v1690_v19  ;;  %s1693_s14 = smov (!%p336_p3), 80   ;;  %s1694_s15 = smov (!%p336_p3), 112  }
   0xb   : > { %s1695_s21 = smov (!%p336_p3), 72   ;;  %s1696_s22 = smov (!%p336_p3), 48  }
   0xc   : > { %1505 = vmatpush3.bf16.msra.mxu0 (!%p336_p3), %v1623_v2  ;;  %s1698_s26 = smov (!%p336_p3), 40  }
   0xd   : > { %1516 = vmatprep.subr.bf16.mxu0 (!%p336_p3), %v1685_v1 }
   0xe   : > { %s1983_s30 = smov (!%p394_p4, %s1675_s30), 1 }
   0xf   : > { %s1783_s17 = sshll.u32 %s1983_s30, 3 }
  0x10   : > { %s417_s20 = scalar_lea.vmem %s1966_s2, %s1783_s17  ;;  %s401_s28 = scalar_lea.vmem %s1964_s0, %s1783_s17 }
  0x11   : > { %v1790_v3 = vld [vmem:[%s417_s20] sm:$0xf]  ;;  %v1792_v4 = vld [vmem:[%s417_s20 + $0x4] sm:$0x1] }
  0x12   : > { %v1446_v5 = vcombine.low %v1790_v3, %v1792_v4  ;;  %v507_v20 = vld [vmem:[%s401_s28] sm:$0xf]  ;;  %v508_v21 = vld [vmem:[%s401_s28 + $0x4] sm:$0x1] }
  0x13   : > { %vm509_vm3 = vcmp.gt.bf16.partialorder %v507_v20, 1056980736  ;;  %vm510_vm4 = vcmp.gt.bf16.partialorder %v508_v21, 1056980736 }
  0x14   : > { %1507 = vmatmul.mubr.msk.bf16.vlgmr.msra.gmra.mrb[0].mxu0 %vm462_vm1, %v1446_v5  ;;  %v569_v22 = vsel %vm509_vm3, 65537, %v1690_v19  ;;  %v570_v23 = vsel %vm510_vm4, 65537, %v1690_v19 }
  0x15   : > { %1518 = vmatprep.mubr.msk.bf16.mxu0 %vm1686_vm0, %v1685_v1  ;;  %v571_v24 = vunpack.c.l.b16 %v569_v22  ;;  %v572_v25 = vunpack.c.l.b16 %v570_v23 }
  0x17   : > { %vm1822_vm5 = vcmp.ne.s32.totalorder %v571_v24, 0  ;;  %vm1826_vm7 = vcmp.ne.s32.totalorder %v572_v25, 0 }
  0xe7   : > { %v500_v7 = vpop.f32.mrb[0].mxu0 }
  0xe8   : > { %v1508_v8 = vpop.f32.mrb[1].mxu0  ;;  %v501_v10 = vadd.f32 %v1445_v6, %v500_v7 }
  0xe9   : > { %v503_v9 = vpop.f32.mrb[2].mxu0 }
  0xea   : > { %v504_v11 = vadd.f32 %v1445_v6, %v503_v9  ;;  %v1509_v12 = vpop.f32.mrb[3].mxu0 }
  0xec   : > { %v1802_v13 = vpack.c.bf16 %v504_v11, %v501_v10 }
  0xee   : > { %653 = vrot.lane.b32.xlu1 %v1802_v13, %s1687_s23  ;;  %517 = vrot.lane.b32.xlu0 %v1802_v13, %s1688_s24  ;;  %s1697_s23 = smov 104   ;;  %s426_s24 = scalar_lea.vmem %s1973_s9, %s1783_s17 }
  0xf2   : > { %655 = vrot.lane.b32.xlu0 %v1802_v13, %s1689_s25 }
 0x160   : > { %v518_v14 = vpop.permute.xlu0 %517  ;;  %v654_v18 = vpop.permute.xlu1 %653 }
 0x161   : > { %v524_v15 = vsel %vm519_vm2, %v518_v14, 0 }
 0x162   : > { %1511 = vmatpush3.bf16.xpose.msra.mxu1 %v524_v15 }
 0x163   : > { %1522 = vmatprep.subr.bf16.mxu1 %v1685_v1 }
 0x164   : > { %v656_v16 = vpop.permute.xlu0 %655 }
 0x165   : > { %v661_v17 = vsel %vm519_vm2, %v656_v16, 0 }
 0x169   : > { %1513 = vmatmul.mubr.msk.bf16.vlgmr.msra.gmra.mrb[0].mxu1 %vm519_vm2, %v1802_v13 }
 0x16a   : > { %1523 = vmatpush3.bf16.xpose.msra.mxu1 %v661_v17  ;;  %1524 = vmatprep.mubr.msk.bf16.mxu1 %vm1686_vm0, %v1685_v1 }
 0x16b   : > { %1534 = vmatprep.subr.bf16.mxu1 %v1685_v1 }
 0x171   : > { %1525 = vmatmul.mubr.msk.bf16.vlgmr.msra.gmra.mrb[4].mxu1 %vm519_vm2, %v654_v18 }
 0x172   : > { %1536 = vmatprep.mubr.msk.bf16.mxu1 %vm1686_vm0, %v1685_v1 }
 0x23c   : > { %v560_v26 = vpop.f32.mrb[0].mxu1 }
 0x23d   : > { %v567_v28 = vmul.f32 0.35355338, %v560_v26  ;;  %v1514_v29 = vpop.f32.mrb[1].mxu1  ;;  %v511_v26 = vld [vmem:[%s1969_s5] sm:$0xf] }
 0x23e   : > { %v563_v30 = vpop.f32.mrb[2].mxu1  ;;  %v512_v29 = vld [vmem:[%s1969_s5 + $0x4] sm:$0xf] }
 0x23f   : > { %v568_v32 = vmul.f32 0.35355338, %v563_v30  ;;  %v1515_v33 = vpop.f32.mrb[3].mxu1  ;;  %v575_v34 = vsel %vm1822_vm5, -1e+09, %v567_v28  ;;  %v833_v28 = vsel %vm784_vm10, %v511_v26, 0 }
 0x240   : > { %v578_v35 = vsel %vm577_vm6, %v575_v34, -inf  ;;  %v786_v30 = vsel %vm784_vm10, %v512_v29, 0 }
 0x241   : > { %579 = vmax.xlane.f32.xlu1 %v578_v35  ;;  %v576_v36 = vsel %vm1826_vm7, -1e+09, %v568_v32  ;;  %1535 = vmatpush3.bf16.msra.mxu1 %v786_v30 }
 0x242   : > { %v582_v37 = vsel %vm581_vm8, %v576_v36, -inf  ;;  %1546 = vmatprep.subr.bf16.mxu1 %v1685_v1 }
 0x243   : > { %583 = vmax.xlane.f32.xlu0 %v582_v37 }
 0x244   : > { %v697_v38 = vpop.f32.mrb[4].mxu1 }
 0x245   : > { %v704_v39 = vmul.f32 0.35355338, %v697_v38  ;;  %v1526_v40 = vpop.f32.mrb[5].mxu1 }
 0x246   : > { %v700_v41 = vpop.f32.mrb[6].mxu1 }
 0x247   : > { %v705_v42 = vmul.f32 0.35355338, %v700_v41  ;;  %v1527_v43 = vpop.f32.mrb[7].mxu1  ;;  %v706_v44 = vsel %vm1822_vm5, -1e+09, %v704_v39 }
 0x248   : > { %v708_v45 = vsel %vm577_vm6, %v706_v44, -inf }
 0x249   : > { %709 = vmax.xlane.f32.xlu0 %v708_v45  ;;  %v707_v46 = vsel %vm1826_vm7, -1e+09, %v705_v42 }
 0x24a   : > { %v711_v47 = vsel %vm581_vm8, %v707_v46, -inf }
 0x24b   : > { %712 = vmax.xlane.f32.xlu1 %v711_v47 }
 0x2ce   : > { %v580_v48 = vpop.xlane.xlu1 %579 }
 0x2cf   : > { %v585_v49 = vsub.f32 %v575_v34, %v580_v48 }
 0x2d0   : > { %v584_v50 = vpop.xlane.xlu0 %583 }
 0x2d1   : > { %v587_v51 = vmul.f32 1.442695, %v585_v49  ;;  %v586_v52 = vsub.f32 %v576_v36, %v584_v50 }
 0x2d3   : > { %1625 = vpow2.f32 %v587_v51  ;;  %v589_v53 = vmul.f32 1.442695, %v586_v52 }
 0x2d5   : > { %1627 = vpow2.f32 %v589_v53 }
 0x2d6   : > { %v710_v54 = vpop.xlane.xlu0 %709 }
 0x2d7   : > { %v714_v55 = vsub.f32 %v706_v44, %v710_v54 }
 0x2d8   : > { %v713_v56 = vpop.xlane.xlu1 %712 }
 0x2d9   : > { %v716_v57 = vmul.f32 1.442695, %v714_v55  ;;  %v715_v58 = vsub.f32 %v707_v46, %v713_v56 }
 0x2db   : > { %1629 = vpow2.f32 %v716_v57  ;;  %v718_v59 = vmul.f32 1.442695, %v715_v58 }
 0x2dd   : > { %v1626_v60 = vpop.eup %1625  ;;  %1631 = vpow2.f32 %v718_v59 }
 0x2de   : > { %v591_v61 = vsel %vm577_vm6, %v1626_v60, 0.0 }
 0x2df   : > { %v1628_v62 = vpop.eup %1627  ;;  %592 = vadd.xlane.f32.xlu0 %v591_v61 }
 0x2e0   : > { %v594_v63 = vsel %vm581_vm8, %v1628_v62, 0.0 }
 0x2e1   : > { %595 = vadd.xlane.f32.xlu1 %v594_v63 }
 0x2e5   : > { %v1630_v0 = vpop.eup %1629 }
 0x2e6   : > { %v720_v2 = vsel %vm577_vm6, %v1630_v0, 0.0 }
 0x2e7   : > { %v1632_v5 = vpop.eup %1631  ;;  %721 = vadd.xlane.f32.xlu0 %v720_v2 }
 0x2e8   : > { %v723_v6 = vsel %vm581_vm8, %v1632_v5, 0.0 }
 0x2e9   : > { %724 = vadd.xlane.f32.xlu1 %v723_v6 }
 0x2fa   : > { %731 = vrot.lane.b32.xlu1 %v1802_v13, %s1691_s29 }
 0x2fd   : > { %602 = vrot.lane.b32.xlu0 %v1802_v13, %s1692_s13 }
 0x2fe   : > { %878 = vrot.lane.b32.xlu1 %v1802_v13, %s1693_s14  ;;  %s1470_s14 = sshll.u32 %s1983_s30, 4 }
 0x2ff   : > { %s411_s18 = scalar_lea.vmem %s1965_s1, %s1470_s14 }
 0x301   : > { %876 = vrot.lane.b32.xlu0 %v1802_v13, %s1694_s15 }
 0x36c   : > { %v593_v7 = vpop.xlane.xlu0 %592 }
 0x36d   : > { %1633 = vrcp.f32 %v593_v7 }
 0x36e   : > { %v596_v8 = vpop.xlane.xlu1 %595 }
 0x36f   : > { %1635 = vrcp.f32 %v596_v8 }
 0x374   : > { %v722_v9 = vpop.xlane.xlu0 %721 }
 0x375   : > { %1637 = vrcp.f32 %v722_v9 }
 0x376   : > { %v725_v10 = vpop.xlane.xlu1 %724 }
 0x377   : > { %v1634_v11 = vpop.eup %1633  ;;  %1639 = vrcp.f32 %v725_v10 }
 0x378   : > { %v603_v12 = vpop.permute.xlu0 %602  ;;  %v599_v16 = vmul.f32 %v1634_v11, %v1626_v60 }
 0x379   : > { %v1636_v14 = vpop.eup %1635  ;;  %v609_v15 = vsel %vm607_vm9, %v603_v12, 0 }
 0x37a   : > { %v600_v17 = vmul.f32 %v1636_v14, %v1628_v62  ;;  %1517 = vmatpush3.bf16.msra.mxu0 %v609_v15  ;;  %v732_v18 = vpop.permute.xlu1 %731 }
 0x37b   : > { %1528 = vmatprep.subr.bf16.mxu0 %v1685_v1  ;;  %v737_v20 = vsel %vm607_vm9, %v732_v18, 0 }
 0x37c   : > { %v601_v19 = vpack.c.bf16 %v600_v17, %v599_v16  ;;  %v877_v44 = vpop.permute.xlu0 %876 }
 0x37e   : > { %1519 = vmatmul.mubr.msk.bf16.vlgmr.msra.gmra.mrb[4].mxu0 %vm577_vm6, %v601_v19  ;;  %v879_v39 = vpop.permute.xlu1 %878 }
 0x37f   : > { %v1638_v21 = vpop.eup %1637  ;;  %1529 = vmatpush3.bf16.msra.mxu0 %v737_v20  ;;  %1530 = vmatprep.mubr.msk.bf16.mxu0 %vm1686_vm0, %v1685_v1  ;;  %v884_v43 = vsel %vm519_vm2, %v879_v39, 0 }
 0x380   : > { %1540 = vmatprep.subr.bf16.mxu0 %v1685_v1  ;;  %v728_v23 = vmul.f32 %v1638_v21, %v1630_v0 }
 0x381   : > { %v1640_v22 = vpop.eup %1639 }
 0x382   : > { %v729_v24 = vmul.f32 %v1640_v22, %v1632_v5 }
 0x384   : > { %v730_v25 = vpack.c.bf16 %v729_v24, %v728_v23 }
 0x386   : > { %1531 = vmatmul.mubr.msk.bf16.vlgmr.msra.gmra.mrb[8].mxu0 %vm577_vm6, %v730_v25 }
 0x387   : > { %1542 = vmatprep.mubr.msk.bf16.mxu0 %vm1686_vm0, %v1685_v1  ;;  %1541 = vmatpush3.bf16.msra.mxu0 %v833_v28  ;;  %v513_v28 = vld [vmem:[%s1969_s5 + $0x8] sm:$0xf] }
 0x388   : > { %1552 = vmatprep.subr.bf16.mxu0 %v1685_v1  ;;  %v1008_v29 = vsel %vm784_vm10, %v513_v28, 0 }
 0x451   : > { %v645_v32 = vpop.f32.mrb[4].mxu0 }
 0x452   : > { %v1520_v33 = vpop.f32.mrb[5].mxu0 }
 0x453   : > { %v648_v34 = vpop.f32.mrb[6].mxu0 }
 0x454   : > { %v652_v35 = vpack.c.bf16 %v648_v34, %v645_v32  ;;  %v1521_v36 = vpop.f32.mrb[7].mxu0 }
 0x456   : > { %1543 = vmatmul.mubr.msk.bf16.vlgmr.msra.gmra.mrb[12].mxu0 %vm519_vm2, %v652_v35 }
 0x457   : > { %1554 = vmatprep.mubr.msk.bf16.mxu0 %vm1686_vm0, %v1685_v1 }
 0x459   : > { %v773_v37 = vpop.f32.mrb[8].mxu0 }
 0x45a   : > { %v1532_v38 = vpop.f32.mrb[9].mxu0 }
 0x45b   : > { %v776_v40 = vpop.f32.mrb[10].mxu0 }
 0x45c   : > { %v780_v41 = vpack.c.bf16 %v776_v40, %v773_v37  ;;  %v1533_v42 = vpop.f32.mrb[11].mxu0 }
 0x45e   : > { %1537 = vmatmul.mubr.msk.bf16.vlgmr.msra.gmra.mrb[8].mxu1 %vm519_vm2, %v780_v41 }
 0x45f   : > { %1547 = vmatpush3.bf16.xpose.msra.mxu1 %v884_v43  ;;  %1548 = vmatprep.mubr.msk.bf16.mxu1 %vm1686_vm0, %v1685_v1 }
 0x460   : > { %1558 = vmatprep.subr.bf16.mxu1 %v1685_v1 }
 0x466   : > { %1549 = vmatmul.mubr.msk.bf16.vlgmr.msra.gmra.mrb[12].mxu1 %vm519_vm2, %v877_v44 }
 0x467   : > { %1560 = vmatprep.mubr.msk.bf16.mxu1 %vm1686_vm0, %v1685_v1  ;;  %1559 = vmatpush3.bf16.msra.mxu1 %v1008_v29 }
 0x468   : > { %1570 = vmatprep.subr.bf16.mxu1 %v1685_v1 }
 0x529   : > { %v869_v45 = vpop.f32.mrb[12].mxu0 }
 0x52a   : > { %v1544_v46 = vpop.f32.mrb[13].mxu0 }
 0x52b   : > { %v872_v47 = vpop.f32.mrb[14].mxu0 }
 0x52c   : > { %v1545_v48 = vpop.f32.mrb[15].mxu0 }
 0x531   : > { %v822_v49 = vpop.f32.mrb[8].mxu1 }
 0x532   : > { %v1881_v50 = vadd.f32 %v869_v45, %v822_v49  ;;  %v1538_v51 = vpop.f32.mrb[9].mxu1 }
 0x533   : > { %v825_v52 = vpop.f32.mrb[10].mxu1 }
 0x534   : > { %v1883_v53 = vadd.f32 %v872_v47, %v825_v52  ;;  %v1539_v54 = vpop.f32.mrb[11].mxu1 }
 0x539   : > { %v920_v55 = vpop.f32.mrb[12].mxu1 }
 0x53a   : > { %v927_v56 = vmul.f32 0.35355338, %v920_v55  ;;  %v1550_v57 = vpop.f32.mrb[13].mxu1 }
 0x53b   : > { %v923_v58 = vpop.f32.mrb[14].mxu1 }
 0x53c   : > { %v928_v59 = vmul.f32 0.35355338, %v923_v58  ;;  %v1551_v60 = vpop.f32.mrb[15].mxu1  ;;  %v929_v61 = vsel %vm1822_vm5, -1e+09, %v927_v56 }
 0x53d   : > { %v931_v62 = vsel %vm577_vm6, %v929_v61, -inf }
 0x53e   : > { %932 = vmax.xlane.f32.xlu1 %v931_v62  ;;  %v930_v63 = vsel %vm1826_vm7, -1e+09, %v928_v59 }
 0x53f   : > { %v934_v0 = vsel %vm581_vm8, %v930_v63, -inf }
 0x540   : > { %935 = vmax.xlane.f32.xlu0 %v934_v0 }
 0x5cb   : > { %v933_v2 = vpop.xlane.xlu1 %932 }
 0x5cc   : > { %v937_v5 = vsub.f32 %v929_v61, %v933_v2 }
 0x5cd   : > { %v936_v6 = vpop.xlane.xlu0 %935 }
 0x5ce   : > { %v939_v7 = vmul.f32 1.442695, %v937_v5  ;;  %v938_v8 = vsub.f32 %v930_v63, %v936_v6 }
 0x5d0   : > { %1641 = vpow2.f32 %v939_v7  ;;  %v941_v9 = vmul.f32 1.442695, %v938_v8 }
 0x5d2   : > { %1643 = vpow2.f32 %v941_v9 }
 0x5da   : > { %v1642_v10 = vpop.eup %1641 }
 0x5db   : > { %v943_v11 = vsel %vm577_vm6, %v1642_v10, 0.0 }
 0x5dc   : > { %v1644_v12 = vpop.eup %1643  ;;  %944 = vadd.xlane.f32.xlu0 %v943_v11 }
 0x5dd   : > { %v946_v14 = vsel %vm581_vm8, %v1644_v12, 0.0 }
 0x5de   : > { %947 = vadd.xlane.f32.xlu1 %v946_v14 }
 0x5ef   : > { %1055 = vrot.lane.b32.xlu1 %v1802_v13, %s1695_s21 }
 0x5f2   : > { %954 = vrot.lane.b32.xlu0 %v1802_v13, %s1696_s22 }
 0x5f3   : > { %1053 = vrot.lane.b32.xlu1 %v1802_v13, %s1697_s23 }
 0x669   : > { %v945_v15 = vpop.xlane.xlu0 %944 }
 0x66a   : > { %1645 = vrcp.f32 %v945_v15  ;;  %v1462_v15 = vld [vmem:[%s1970_s6] ss:$0 sm:$0xff] }
 0x66b   : > { %v948_v16 = vpop.xlane.xlu1 %947 }
 0x66c   : > { %1647 = vrcp.f32 %v948_v16 }
 0x66d   : > { %v955_v17 = vpop.permute.xlu0 %954 }
 0x66e   : > { %v960_v18 = vsel %vm607_vm9, %v955_v17, 0 }
 0x66f   : > { %1553 = vmatpush3.bf16.msra.mxu0 %v960_v18  ;;  %v1056_v23 = vpop.permute.xlu1 %1055  ;;  %v1239_v18 = vunpack.c.l.bf16 %v1790_v3  ;;  %v1289_v3 = vld [vmem:[%s411_s18] sm:$0xff] }
 0x670   : > { %1564 = vmatprep.subr.bf16.mxu0 %v1685_v1  ;;  %v1061_v25 = vsel %vm519_vm2, %v1056_v23, 0  ;;  %v1240_v23 = vunpack.c.l.bf16 %v1792_v4 }
 0x673   : > { %v1054_v26 = vpop.permute.xlu1 %1053 }
 0x674   : > { %v1646_v19 = vpop.eup %1645 }
 0x675   : > { %v951_v21 = vmul.f32 %v1646_v19, %v1642_v10 }
 0x676   : > { %v1648_v20 = vpop.eup %1647 }
 0x677   : > { %v952_v22 = vmul.f32 %v1648_v20, %v1644_v12 }
 0x679   : > { %v953_v24 = vpack.c.bf16 %v952_v22, %v951_v21 }
 0x67b   : > { %1555 = vmatmul.mubr.msk.bf16.vlgmr.msra.gmra.mrb[16].mxu0 %vm577_vm6, %v953_v24 }
 0x67c   : > { %1565 = vmatpush3.bf16.xpose.msra.mxu0 %v1061_v25  ;;  %1566 = vmatprep.mubr.msk.bf16.mxu0 %vm1686_vm0, %v1685_v1 }
 0x67d   : > { %1576 = vmatprep.subr.bf16.mxu0 %v1685_v1 }
 0x683   : > { %1567 = vmatmul.mubr.msk.bf16.vlgmr.msra.gmra.mrb[20].mxu0 %vm519_vm2, %v1054_v26 }
 0x684   : > { %1578 = vmatprep.mubr.msk.bf16.mxu0 %vm1686_vm0, %v1685_v1 }
 0x74e   : > { %v996_v30 = vpop.f32.mrb[16].mxu0 }
 0x74f   : > { %v1556_v32 = vpop.f32.mrb[17].mxu0 }
 0x750   : > { %v999_v33 = vpop.f32.mrb[18].mxu0 }
 0x751   : > { %v1003_v34 = vpack.c.bf16 %v999_v33, %v996_v30  ;;  %v1557_v35 = vpop.f32.mrb[19].mxu0 }
 0x753   : > { %1561 = vmatmul.mubr.msk.bf16.vlgmr.msra.gmra.mrb[16].mxu1 %vm519_vm2, %v1003_v34 }
 0x754   : > { %1572 = vmatprep.mubr.msk.bf16.mxu1 %vm1686_vm0, %v1685_v1 }
 0x756   : > { %v1097_v36 = vpop.f32.mrb[20].mxu0 }
 0x757   : > { %v1104_v37 = vmul.f32 0.35355338, %v1097_v36  ;;  %v1568_v38 = vpop.f32.mrb[21].mxu0 }
 0x758   : > { %v1100_v39 = vpop.f32.mrb[22].mxu0 }
 0x759   : > { %v1105_v40 = vmul.f32 0.35355338, %v1100_v39  ;;  %v1569_v41 = vpop.f32.mrb[23].mxu0  ;;  %v1106_v42 = vsel %vm1822_vm5, -1e+09, %v1104_v37 }
 0x75a   : > { %v1108_v43 = vsel %vm577_vm6, %v1106_v42, -inf }
 0x75b   : > { %1109 = vmax.xlane.f32.xlu0 %v1108_v43  ;;  %v1107_v44 = vsel %vm1826_vm7, -1e+09, %v1105_v40  ;;  %v1290_v40 = vld [vmem:[%s411_s18 + $0x8] sm:$0x3] }
 0x75c   : > { %v1111_v45 = vsel %vm581_vm8, %v1107_v44, -inf }
 0x75d   : > { %1112 = vmax.xlane.f32.xlu1 %v1111_v45 }
 0x76e   : > { %1131 = vrot.lane.b32.xlu1 %v1802_v13, %s1698_s26 }
 0x772   : > { %1293 = vperm.xlu1 %1620, %v1289_v3  }
 0x7e8   : > { %v1110_v1 = vpop.xlane.xlu0 %1109 }
 0x7e9   : > { %v1114_v46 = vsub.f32 %v1106_v42, %v1110_v1 }
 0x7ea   : > { %v1113_v47 = vpop.xlane.xlu1 %1112 }
 0x7eb   : > { %v1116_v48 = vmul.f32 1.442695, %v1114_v46  ;;  %v1115_v49 = vsub.f32 %v1107_v44, %v1113_v47  ;;  %v1463_v47 = vld [vmem:[%s1971_s7] ss:$0 sm:$0xff] }
 0x7ed   : > { %1649 = vpow2.f32 %v1116_v48  ;;  %v1118_v27 = vmul.f32 1.442695, %v1115_v49  ;;  %v1464_v49 = vld [vmem:[%s1972_s8] ss:$0 sm:$0xff] }
 0x7ee   : > { %v1132_v51 = vpop.permute.xlu1 %1131 }
 0x7ef   : > { %1651 = vpow2.f32 %v1118_v27  ;;  %v1137_v52 = vsel %vm607_vm9, %v1132_v51, 0 }
 0x7f0   : > { %1571 = vmatpush3.bf16.msra.mxu1 %v1137_v52 }
 0x7f2   : > { %v1294_v52 = vpop.permute.xlu1 %1293 }
 0x7f7   : > { %v1650_v31 = vpop.eup %1649 }
 0x7f8   : > { %v1120_v54 = vsel %vm577_vm6, %v1650_v31, 0.0 }
 0x7f9   : > { %v1652_v55 = vpop.eup %1651  ;;  %1121 = vadd.xlane.f32.xlu0 %v1120_v54 }
 0x7fa   : > { %v1123_v56 = vsel %vm581_vm8, %v1652_v55, 0.0 }
 0x7fd   : > { %1124 = vadd.xlane.f32.xlu0 %v1123_v56 }
 0x826   : > { %v1044_v13 = vpop.f32.mrb[16].mxu1 }
 0x827   : > { %v1051_v57 = vadd.f32 %v1044_v13, %v1881_v50  ;;  %v1562_v58 = vpop.f32.mrb[17].mxu1  ;;  %v514_v50 = vld [vmem:[%s1969_s5 + $0xc] sm:$0xf] }
 0x828   : > { %v1047_v59 = vpop.f32.mrb[18].mxu1  ;;  %v1185_v8 = vsel %vm784_vm10, %v514_v50, 0 }
 0x829   : > { %v1052_v60 = vadd.f32 %v1047_v59, %v1883_v53  ;;  %v1563_v61 = vpop.f32.mrb[19].mxu1  ;;  %1577 = vmatpush3.bf16.msra.mxu0 %v1185_v8 }
 0x886   : > { %v1122_v62 = vpop.xlane.xlu0 %1121 }
 0x887   : > { %1653 = vrcp.f32 %v1122_v62 }
 0x88a   : > { %v1125_v63 = vpop.xlane.xlu0 %1124 }
 0x88b   : > { %1655 = vrcp.f32 %v1125_v63 }
 0x891   : > { %v1654_v0 = vpop.eup %1653 }
 0x892   : > { %v1128_v5 = vmul.f32 %v1654_v0, %v1650_v31 }
 0x895   : > { %v1656_v2 = vpop.eup %1655 }
 0x896   : > { %v1129_v6 = vmul.f32 %v1656_v2, %v1652_v55 }
 0x898   : > { %v1130_v7 = vpack.c.bf16 %v1129_v6, %v1128_v5 }
 0x89a   : > { %1573 = vmatmul.mubr.msk.bf16.vlgmr.msra.gmra.mrb[20].mxu1 %vm577_vm6, %v1130_v7 }
 0x96d   : > { %v1173_v53 = vpop.f32.mrb[20].mxu1 }
 0x96e   : > { %v1574_v9 = vpop.f32.mrb[21].mxu1 }
 0x96f   : > { %v1176_v10 = vpop.f32.mrb[22].mxu1 }
 0x970   : > { %v1180_v11 = vpack.c.bf16 %v1176_v10, %v1173_v53  ;;  %v1575_v12 = vpop.f32.mrb[23].mxu1 }
 0x972   : > { %1579 = vmatmul.mubr.msk.bf16.vlgmr.msra.gmra.mrb[24].mxu0 %vm519_vm2, %v1180_v11 }
 0xa45   : > { %v1221_v14 = vpop.f32.mrb[24].mxu0 }
 0xa46   : > { %v1228_v16 = vadd.f32 %v1221_v14, %v1051_v57  ;;  %v1580_v17 = vpop.f32.mrb[25].mxu0 }
 0xa47   : > { %v1224_v19 = vpop.f32.mrb[26].mxu0 }
 0xa48   : > { %v1237_v20 = vadd.f32 %v1462_v15, %v1228_v16  ;;  %v1229_v21 = vadd.f32 %v1224_v19, %v1052_v60  ;;  %v1581_v22 = vpop.f32.mrb[27].mxu0 }
 0xa4a   : > { %v1238_v24 = vadd.f32 %v1462_v15, %v1229_v21  ;;  %v1241_v25 = vadd.f32 %v1239_v18, %v1237_v20 }
 0xa4c   : > { %v1243_v26 = vsel %vm462_vm1, %v1241_v25, 0.0  ;;  %v1242_v28 = vadd.f32 %v1240_v23, %v1238_v24 }
 0xa4d   : > { %1244 = vadd.xlane.f32.xlu0 %v1243_v26 }
 0xa4e   : > { %v1247_v29 = vsel %vm1246_vm11, %v1242_v28, 0.0 }
 0xa51   : > { %1248 = vadd.xlane.f32.xlu0 %v1247_v29 }
 0xada   : > { %v1245_v30 = vpop.xlane.xlu0 %1244 }
 0xadb   : > { %v1251_v32 = vmul.f32 0.03125, %v1245_v30 }
 0xadd   : > { %v1253_v4 = vsub.f32 %v1241_v25, %v1251_v32 }
 0xade   : > { %v1249_v33 = vpop.xlane.xlu0 %1248 }
 0xadf   : > { %v1252_v34 = vmul.f32 0.03125, %v1249_v33  ;;  %v1255_v35 = vmul.f32 %v1253_v4, %v1253_v4 }
 0xae1   : > { %v1254_v36 = vsub.f32 %v1242_v28, %v1252_v34  ;;  %v1257_v37 = vsel %vm462_vm1, %v1255_v35, 0.0 }
 0xae2   : > { %1258 = vadd.xlane.f32.xlu0 %v1257_v37 }
 0xae3   : > { %v1256_v38 = vmul.f32 %v1254_v36, %v1254_v36 }
 0xae5   : > { %v1260_v39 = vsel %vm1246_vm11, %v1256_v38, 0.0 }
 0xae6   : > { %1261 = vadd.xlane.f32.xlu0 %v1260_v39 }
 0xafc   : > { %1298 = vperm.xlu0 %1621, %v1290_v40  }
 0xb6f   : > { %v1259_v41 = vpop.xlane.xlu0 %1258 }
 0xb70   : > { %v1263_v42 = vmul.f32 0.03125, %v1259_v41 }
 0xb72   : > { %v1265_v43 = vadd.f32 1e-05, %v1263_v42 }
 0xb73   : > { %v1262_v44 = vpop.xlane.xlu0 %1261 }
 0xb74   : > { %1657 = vrsqrt.f32 %v1265_v43  ;;  %v1264_v45 = vmul.f32 0.03125, %v1262_v44 }
 0xb76   : > { %v1266_v1 = vadd.f32 1e-05, %v1264_v45 }
 0xb78   : > { %1659 = vrsqrt.f32 %v1266_v1 }
 0xb7b   : > { %v1299_v13 = vpop.permute.xlu0 %1298 }
 0xb7e   : > { %v1658_v46 = vpop.eup %1657 }
 0xb7f   : > { %v1269_v48 = vmul.f32 %v1658_v46, %v1253_v4 }
 0xb81   : > { %v1278_v27 = vmul.f32 %v1463_v47, %v1269_v48 }
 0xb82   : > { %v1660_v51 = vpop.eup %1659 }
 0xb83   : > { %v1287_v31 = vadd.f32 %v1464_v49, %v1278_v27  ;;  %v1270_v54 = vmul.f32 %v1660_v51, %v1254_v36 }
 0xb85   : > { %v1301_v55 = vmul.f32 %v1294_v52, %v1287_v31  ;;  %v1279_v56 = vmul.f32 %v1463_v47, %v1270_v54 }
 0xb87   : > { %v1473_v57 = vpack.c.bf16 %v1301_v55, %v1301_v55  ;;  %v1288_v58 = vadd.f32 %v1464_v49, %v1279_v56 }
 0xb89   : > { %1312 = vst.msk [vmem:[%s426_s24] sm:$0xf] %vm1311_vm12, %v1473_v57  ;;  %v1302_v59 = vmul.f32 %v1299_v13, %v1288_v58 }
 0xb8b   : > { %v1474_v60 = vpack.c.bf16 %v1302_v59, %v1302_v59 }
 0xb8d   : > { %1314 = vst.msk [vmem:[%s426_s24 + $0x4] sm:$0x1] %vm1313_vm13, %v1474_v60 }
 0xb8e PF: > { %s19_s11 = sadd.s32 1, %s1683_s11   ;;  %s1978_s30 = smov %s1679_s10 }
 0xb8f   : > { %p16_p5 = scmp.ge.s32.totalorder %s19_s11, 4   ;;  %s1979_s10 = smov %s1981_s12 }
 0xb91   :  { %18 = sbr.rel (!%p16_p5) target bundleno = 2 (0x2), region = 92 }

// kernel: forward.46
= control target key start
LH: loop header
LB: loop body
LE: loop exit
PB: predicated region body
PF: predicated region fallthrough
CT: control target
= control target key end

     0   :  { %s1689_s13 = smov 0   ;;  %s1691_s14 = smov 0   ;;  %s1892_s0 = inlined_call_operand.vmem [shape: s32[2,1,10], index: 0, kind: input, shape index: {}]   ;;  %s1893_s1 = inlined_call_operand.vmem [shape: f32[2,8,1], index: 1, kind: input, shape index: {}]   ;;  %s1894_s2 = inlined_call_operand.vmem [shape: bf16[2,8,32], index: 2, kind: input, shape index: {}]   ;;  %s1895_s3 = inlined_call_operand.vmem [shape: bf16[2,10,32], index: 3, kind: input, shape index: {}]   ;;  %s1896_s4 = inlined_call_operand.vmem [shape: bf16[32,96], index: 4, kind: input, shape index: {}]   ;;  %s1897_s5 = inlined_call_operand.vmem [shape: f32[1,96], index: 5, kind: input, shape index: {}]   ;;  %s1898_s6 = inlined_call_operand.vmem [shape: bf16[32,32], index: 6, kind: input, shape index: {}]   ;;  %s1899_s7 = inlined_call_operand.vmem [shape: f32[1,32], index: 7, kind: input, shape index: {}]   ;;  %s1900_s8 = inlined_call_operand.vmem [shape: f32[1,32], index: 8, kind: input, shape index: {}]   ;;  %s1901_s9 = inlined_call_operand.vmem [shape: f32[1,32], index: 9, kind: input, shape index: {}]   ;;  %s1902_s10 = inlined_call_operand.vmem [shape: bf16[2,8,32], index: 10, kind: output, shape index: {}]  }
   0x1   :  { %s1693_s15 = smov 0  }
   0x2 LB: > { %s32_s16 = sadd.s32 1, %s1618_s14  ;;  %p1395_p0 = scmp.ge.s32.totalorder %s1622_s15, 1  ;;  %s1622_s15 = sphi %s1693_s15, %s20_s15   ;;  %s1618_s14 = sphi %s1691_s14, %s1904_s14   ;;  %s1614_s13 = sphi %s1689_s13, %s1903_s13  }
   0x3   : > { %p34_p1 = scmp.ge.s32.totalorder %s32_s16, 2  ;;  %p362_p2 = scmp.lt.s32.totalorder %s1622_s15, 3 }
   0x5   : > { %s1906_s16 = smov (%p34_p1, %s32_s16), 0  ;;  %p363_p3 = pnand %p1395_p0, %p362_p2 }
   0x6   : > { %v1579_v0 = vld [vmem:[%s1896_s4] sm:$0xff] (!%p363_p3)   ;;  %s1624_s19 = smov (!%p363_p3), 96   ;;  %v1580_v1 = vld [vmem:[%s1896_s4 + $0x8] sm:$0xff] (!%p363_p3)   ;;  %v1625_v2 = vmov (!%p363_p3), 0.0   ;;  %p419_p4 = scmp.lt.s32.totalorder (!%p363_p3), %s1614_s13, 1  ;;  %vm1626_vm0 = vmmov (!%p363_p3), 0   ;;  %v634_v27 = vlaneseq (!%p363_p3) }
   0x7   : > { %366 = sbr.rel (%p363_p3) target bundleno = 3043 (0xbe3), region = 60  ;;  %524 = vrot.lane.b32.xlu0 (!%p363_p3), %v1579_v0, %s1624_s19  ;;  %1463 = vmatprep.subr.bf16.mxu1 (!%p363_p3), %v1625_v2  ;;  %v1401_v3 = vld [vmem:[%s1897_s5] ss:$0 sm:$0xff] (!%p363_p3)  ;;  %vm473_vm1 = vcmask (!%p363_p3), 261120   ;;  %s1627_s12 = smov (!%p363_p3), 120   ;;  %vm585_vm2 = vcmask (!%p363_p3), 64512  }
   0x8   : > { %1467 = vmatprep.mubr.msk.bf16.mxu1 (!%p363_p3), %vm1626_vm0, %v1625_v2  ;;  %1455 = vmatprep.subr.bf16.mxu0 (!%p363_p3), %v1625_v2  ;;  %v1628_v23 = vmov (!%p363_p3), 0   ;;  %v635_v29 = vshrl.u32 (!%p363_p3), %v634_v27, 7  ;;  %vm640_vm5 = vcmask (!%p363_p3), 80896   ;;  %s1629_s21 = smov (!%p363_p3), 112   ;;  %s1630_s22 = smov (!%p363_p3), 88   ;;  %vm659_vm6 = vcmask (!%p363_p3), 1044480  }
   0x9   : > { %1456 = vmatpush3.bf16.msra.mxu0 (!%p363_p3), %v1579_v0  ;;  %1459 = vmatprep.mubr.msk.bf16.mxu0 (!%p363_p3), %vm1626_vm0, %v1625_v2  ;;  %vm821_vm7 = vcmask (!%p363_p3), 1043456   ;;  %v580_v63 = vld [vmem:[%s1898_s6 + $0x4] sm:$0xf] (!%p363_p3)  ;;  %s1632_s29 = smov (!%p363_p3), 80   ;;  %vm1279_vm8 = vcmask (!%p363_p3), 257024  }
   0xa   : > { %1457 = vmatprep.subr.bf16.mxu0 (!%p363_p3), %v1625_v2  ;;  %530 = vrot.lane.b32.xlu1 (!%p363_p3), %v1401_v3, %s1624_s19  ;;  %v636_v30 = vsub.s32 (!%p363_p3), 0, %v635_v29  ;;  %v823_v0 = vsel (!%p363_p3), %vm821_vm7, %v580_v63, 0 }
   0xb   : > { %526 = vrot.lane.b32.xlu0 (!%p363_p3), %v1580_v1, %s1624_s19  ;;  %1577 = vset.pattern.permute.xlu1 (!%p363_p3), %v1628_v23 }
   0xc   : > { %1578 = vset.pattern.permute.xlu0 (!%p363_p3), %v1628_v23 }
   0xd   : > { %1458 = vmatpush3.bf16.msra.mxu0 (!%p363_p3), %v1580_v1 }
   0xe   : > { %s1908_s13 = smov (!%p419_p4, %s1614_s13), 1  ;;  %1471 = vmatprep.subr.bf16.mxu0 %v1625_v2 }
   0xf   : > { %s1396_s24 = sshll.u32 %s1908_s13, 3  ;;  %s1397_s25 = sshll.u32 %s1908_s13, 2 }
  0x10   : > { %s440_s28 = scalar_lea.vmem %s1895_s3, %s1396_s24  ;;  %s435_s11 = scalar_lea.vmem %s1894_s2, %s1397_s25 }
  0x11   : > { %v1740_v4 = vld [vmem:[%s435_s11] sm:$0xf]  ;;  %s421_s20 = scalar_lea.vmem %s1892_s0, %s1908_s13  ;;  %s428_s23 = scalar_lea.vmem %s1893_s1, %s1396_s24 }
  0x12   : > { %1460 = vmatmul.mubr.msk.bf16.vlgmr.msra.gmra.mrb[0].mxu0 %vm473_vm1, %v1740_v4  ;;  %v1581_v7 = vld [vmem:[%s440_s28] sm:$0x1f]   ;;  %s1631_s28 = smov 104   ;;  %s447_s11 = scalar_lea.vmem %s1902_s10, %s1397_s25 }
  0x13   : > { %1473 = vmatprep.mubr.msk.bf16.mxu0 %vm1626_vm0, %v1625_v2  ;;  %v577_v28 = vld [vmem:[%s421_s20] sm:$0x1] }
  0x14   : > { %vm578_vm3 = vcmp.gt.s32.totalorder %v577_v28, 0 }
  0x15   : > { %v633_v31 = vsel %vm578_vm3, 1, %v1628_v23 }
  0x16   : > { %v1774_v32 = vrot.slane %v633_v31, %v636_v30 }
  0x18   : > { %vm638_vm4 = vcmp.eq.s32.totalorder %v1774_v32, 1  ;;  %v582_v32 = vld [vmem:[%s1898_s6 + $0xc] sm:$0xf] }
  0x79   : > { %v525_v5 = vpop.permute.xlu0 %524 }
  0x7a   : > { %1464 = vmatpush3.bf16.msra.mxu1 %v525_v5 }
  0x7b   : > { %1465 = vmatprep.subr.bf16.mxu1 %v1625_v2 }
  0x7c   : > { %v531_v14 = vpop.permute.xlu1 %530 }
  0x7d   : > { %v527_v6 = vpop.permute.xlu0 %526 }
  0x7e   : > { %1466 = vmatpush3.bf16.msra.mxu1 %v527_v6 }
  0x7f   : > { %1477 = vmatprep.subr.bf16.mxu1 %v1625_v2 }
  0x81   : > { %1468 = vmatmul.mubr.msk.bf16.vlgmr.msra.gmra.mrb[0].mxu1 %vm473_vm1, %v1581_v7  ;;  %v579_v7 = vld [vmem:[%s1898_s6] sm:$0xf] }
  0x82   : > { %1479 = vmatprep.mubr.msk.bf16.mxu1 %vm1626_vm0, %v1625_v2 }
  0xe5   : > { %v511_v8 = vpop.f32.mrb[0].mxu0 }
  0xe6   : > { %v512_v9 = vadd.f32 %v1401_v3, %v511_v8  ;;  %v1461_v10 = vpop.f32.mrb[1].mxu0 }
  0xe7   : > { %v514_v11 = vpop.f32.mrb[2].mxu0  ;;  %v869_v10 = vsel %vm821_vm7, %v579_v7, 0 }
  0xe8   : > { %v1752_v12 = vpack.c.bf16 %v512_v9, %v512_v9  ;;  %v1462_v13 = vpop.f32.mrb[3].mxu0 }
  0xea   : > { %705 = vrot.lane.b32.xlu0 %v1752_v12, %s1627_s12 }
 0x154   : > { %v570_v15 = vpop.f32.mrb[0].mxu1 }
 0x155   : > { %v1469_v16 = vpop.f32.mrb[1].mxu1  ;;  %v571_v18 = vadd.f32 %v570_v15, %v531_v14 }
 0x156   : > { %v573_v17 = vpop.f32.mrb[2].mxu1 }
 0x157   : > { %v574_v19 = vadd.f32 %v573_v17, %v531_v14  ;;  %v1470_v20 = vpop.f32.mrb[3].mxu1 }
 0x159   : > { %v1755_v21 = vpack.c.bf16 %v574_v19, %v571_v18 }
 0x15b   : > { %707 = vrot.lane.b32.xlu1 %v1755_v21, %s1627_s12  ;;  %v590_v22 = vsel %vm585_vm2, %v1755_v21, 0  ;;  %s1633_s12 = smov 72  }
 0x15c   : > { %1472 = vmatpush3.bf16.xpose.msra.mxu0 %v590_v22  ;;  %v706_v26 = vpop.permute.xlu0 %705 }
 0x15d   : > { %1483 = vmatprep.subr.bf16.mxu0 %v1625_v2 }
 0x163   : > { %1474 = vmatmul.mubr.msk.bf16.vlgmr.msra.gmra.mrb[4].mxu0 %vm585_vm2, %v1752_v12 }
 0x164   : > { %1485 = vmatprep.mubr.msk.bf16.mxu0 %vm1626_vm0, %v1625_v2 }
 0x1cd   : > { %v708_v24 = vpop.permute.xlu1 %707 }
 0x1ce   : > { %v713_v25 = vsel %vm585_vm2, %v708_v24, 0 }
 0x1cf   : > { %1484 = vmatpush3.bf16.xpose.msra.mxu0 %v713_v25 }
 0x1d0   : > { %1495 = vmatprep.subr.bf16.mxu0 %v1625_v2 }
 0x1d6   : > { %1486 = vmatmul.mubr.msk.bf16.vlgmr.msra.gmra.mrb[8].mxu0 %vm585_vm2, %v706_v26 }
 0x1d7   : > { %1497 = vmatprep.mubr.msk.bf16.mxu0 %vm1626_vm0, %v1625_v2  ;;  %1496 = vmatpush3.bf16.msra.mxu0 %v823_v0 }
 0x1d8   : > { %1507 = vmatprep.subr.bf16.mxu0 %v1625_v2 }
 0x236   : > { %v626_v33 = vpop.f32.mrb[4].mxu0 }
 0x237   : > { %v632_v34 = vmul.f32 0.35355338, %v626_v33  ;;  %v1475_v35 = vpop.f32.mrb[5].mxu0 }
 0x238   : > { %v629_v36 = vpop.f32.mrb[6].mxu0 }
 0x239   : > { %v1476_v37 = vpop.f32.mrb[7].mxu0  ;;  %v639_v38 = vsel %vm638_vm4, -1e+09, %v632_v34 }
 0x23a   : > { %v641_v39 = vsel %vm640_vm5, %v639_v38, -inf }
 0x23b   : > { %642 = vmax.xlane.f32.xlu1 %v641_v39 }
 0x2a9   : > { %v749_v40 = vpop.f32.mrb[8].mxu0 }
 0x2aa   : > { %v755_v41 = vmul.f32 0.35355338, %v749_v40  ;;  %v1487_v42 = vpop.f32.mrb[9].mxu0 }
 0x2ab   : > { %v752_v43 = vpop.f32.mrb[10].mxu0 }
 0x2ac   : > { %v1488_v44 = vpop.f32.mrb[11].mxu0  ;;  %v756_v45 = vsel %vm638_vm4, -1e+09, %v755_v41 }
 0x2ad   : > { %v757_v46 = vsel %vm640_vm5, %v756_v45, -inf }
 0x2ae   : > { %758 = vmax.xlane.f32.xlu0 %v757_v46 }
 0x2c8   : > { %v643_v47 = vpop.xlane.xlu1 %642 }
 0x2c9   : > { %v644_v48 = vsub.f32 %v639_v38, %v643_v47 }
 0x2cb   : > { %v645_v49 = vmul.f32 1.442695, %v644_v48 }
 0x2cd   : > { %1582 = vpow2.f32 %v645_v49 }
 0x2d7   : > { %v1583_v50 = vpop.eup %1582 }
 0x2d8   : > { %v647_v51 = vsel %vm640_vm5, %v1583_v50, 0.0 }
 0x2d9   : > { %648 = vadd.xlane.f32.xlu0 %v647_v51 }
 0x2ef   : > { %654 = vrot.lane.b32.xlu0 %v1755_v21, %s1624_s19 }
 0x2f3   : > { %911 = vrot.lane.b32.xlu0 %v1752_v12, %s1629_s21 }
 0x33b   : > { %v759_v52 = vpop.xlane.xlu0 %758 }
 0x33c   : > { %v760_v53 = vsub.f32 %v756_v45, %v759_v52 }
 0x33e   : > { %v761_v54 = vmul.f32 1.442695, %v760_v53 }
 0x340   : > { %1584 = vpow2.f32 %v761_v54 }
 0x34a   : > { %v1585_v55 = vpop.eup %1584 }
 0x34b   : > { %v763_v56 = vsel %vm640_vm5, %v1585_v55, 0.0 }
 0x34c   : > { %764 = vadd.xlane.f32.xlu1 %v763_v56  ;;  %v581_v56 = vld [vmem:[%s1898_s6 + $0x8] sm:$0xf] }
 0x35d   : > { %769 = vrot.lane.b32.xlu1 %v1755_v21, %s1630_s22 }
 0x361   : > { %913 = vrot.lane.b32.xlu1 %v1755_v21, %s1629_s21 }
 0x366   : > { %v649_v57 = vpop.xlane.xlu0 %648 }
 0x367   : > { %1586 = vrcp.f32 %v649_v57  ;;  %v1028_v57 = vsel %vm821_vm7, %v581_v56, 0 }
 0x36a   : > { %v655_v58 = vpop.permute.xlu0 %654 }
 0x36b   : > { %v661_v59 = vsel %vm659_vm6, %v655_v58, 0 }
 0x36c   : > { %1478 = vmatpush3.bf16.msra.mxu1 %v661_v59 }
 0x36d   : > { %1489 = vmatprep.subr.bf16.mxu1 %v1625_v2 }
 0x36e   : > { %v912_v25 = vpop.permute.xlu0 %911 }
 0x371   : > { %v1587_v60 = vpop.eup %1586 }
 0x372   : > { %v651_v61 = vmul.f32 %v1587_v60, %v1583_v50 }
 0x374   : > { %v652_v62 = vpack.c.bf16 %v651_v61, %v651_v61 }
 0x376   : > { %1480 = vmatmul.mubr.msk.bf16.vlgmr.msra.gmra.mrb[4].mxu1 %vm640_vm5, %v652_v62 }
 0x377   : > { %1491 = vmatprep.mubr.msk.bf16.mxu1 %vm1626_vm0, %v1625_v2 }
 0x3d9   : > { %v765_v1 = vpop.xlane.xlu1 %764 }
 0x3da   : > { %1588 = vrcp.f32 %v765_v1 }
 0x3dd   : > { %v770_v3 = vpop.permute.xlu1 %769 }
 0x3de   : > { %v775_v5 = vsel %vm659_vm6, %v770_v3, 0 }
 0x3df   : > { %1490 = vmatpush3.bf16.msra.mxu1 %v775_v5 }
 0x3e0   : > { %1501 = vmatprep.subr.bf16.mxu1 %v1625_v2 }
 0x3e1   : > { %v914_v17 = vpop.permute.xlu1 %913 }
 0x3e2   : > { %v919_v23 = vsel %vm585_vm2, %v914_v17, 0 }
 0x3e4   : > { %v1589_v6 = vpop.eup %1588 }
 0x3e5   : > { %v767_v8 = vmul.f32 %v1589_v6, %v1585_v55 }
 0x3e7   : > { %v768_v9 = vpack.c.bf16 %v767_v8, %v767_v8 }
 0x3e9   : > { %1492 = vmatmul.mubr.msk.bf16.vlgmr.msra.gmra.mrb[8].mxu1 %vm640_vm5, %v768_v9 }
 0x3ea   : > { %1502 = vmatpush3.bf16.msra.mxu1 %v869_v10  ;;  %1503 = vmatprep.mubr.msk.bf16.mxu1 %vm1626_vm0, %v1625_v2 }
 0x3eb   : > { %1513 = vmatprep.subr.bf16.mxu1 %v1625_v2 }
 0x449   : > { %v697_v11 = vpop.f32.mrb[4].mxu1 }
 0x44a   : > { %v703_v13 = vpack.c.bf16 %v697_v11, %v697_v11  ;;  %v1481_v14 = vpop.f32.mrb[5].mxu1 }
 0x44b   : > { %v700_v15 = vpop.f32.mrb[6].mxu1 }
 0x44c   : > { %v1482_v16 = vpop.f32.mrb[7].mxu1  ;;  %1504 = vmatmul.mubr.msk.bf16.vlgmr.msra.gmra.mrb[12].mxu1 %vm585_vm2, %v703_v13  ;;  %v1188_v15 = vsel %vm821_vm7, %v582_v32, 0 }
 0x44d   : > { %1515 = vmatprep.mubr.msk.bf16.mxu1 %vm1626_vm0, %v1625_v2 }
 0x4bc   : > { %v811_v18 = vpop.f32.mrb[8].mxu1 }
 0x4bd   : > { %v817_v19 = vpack.c.bf16 %v811_v18, %v811_v18  ;;  %v1493_v20 = vpop.f32.mrb[9].mxu1 }
 0x4be   : > { %v814_v22 = vpop.f32.mrb[10].mxu1 }
 0x4bf   : > { %v1494_v24 = vpop.f32.mrb[11].mxu1  ;;  %1498 = vmatmul.mubr.msk.bf16.vlgmr.msra.gmra.mrb[12].mxu0 %vm585_vm2, %v817_v19 }
 0x4c0   : > { %1508 = vmatpush3.bf16.xpose.msra.mxu0 %v919_v23  ;;  %1509 = vmatprep.mubr.msk.bf16.mxu0 %vm1626_vm0, %v1625_v2 }
 0x4c1   : > { %1519 = vmatprep.subr.bf16.mxu0 %v1625_v2 }
 0x4c7   : > { %1510 = vmatmul.mubr.msk.bf16.vlgmr.msra.gmra.mrb[16].mxu0 %vm585_vm2, %v912_v25 }
 0x4c8   : > { %1521 = vmatprep.mubr.msk.bf16.mxu0 %vm1626_vm0, %v1625_v2  ;;  %1520 = vmatpush3.bf16.msra.mxu0 %v1028_v57 }
 0x4c9   : > { %1531 = vmatprep.subr.bf16.mxu0 %v1625_v2 }
 0x51f   : > { %v905_v26 = vpop.f32.mrb[12].mxu1 }
 0x520   : > { %v1505_v27 = vpop.f32.mrb[13].mxu1 }
 0x521   : > { %v908_v28 = vpop.f32.mrb[14].mxu1 }
 0x522   : > { %v1506_v29 = vpop.f32.mrb[15].mxu1 }
 0x592   : > { %v859_v30 = vpop.f32.mrb[12].mxu0 }
 0x593   : > { %v1821_v31 = vadd.f32 %v905_v26, %v859_v30  ;;  %v1499_v33 = vpop.f32.mrb[13].mxu0 }
 0x594   : > { %v862_v34 = vpop.f32.mrb[14].mxu0 }
 0x595   : > { %v1500_v35 = vpop.f32.mrb[15].mxu0 }
 0x596   : > { %v1239_v35 = vunpack.c.l.bf16 %v1740_v4  ;;  %v1271_v4 = vld [vmem:[%s428_s23] sm:$0xff] }
 0x59a   : > { %v955_v36 = vpop.f32.mrb[16].mxu0 }
 0x59b   : > { %v961_v37 = vmul.f32 0.35355338, %v955_v36  ;;  %v1511_v38 = vpop.f32.mrb[17].mxu0 }
 0x59c   : > { %v958_v39 = vpop.f32.mrb[18].mxu0 }
 0x59d   : > { %v1512_v40 = vpop.f32.mrb[19].mxu0  ;;  %v962_v41 = vsel %vm638_vm4, -1e+09, %v961_v37 }
 0x59e   : > { %v963_v42 = vsel %vm640_vm5, %v962_v41, -inf }
 0x59f   : > { %964 = vmax.xlane.f32.xlu1 %v963_v42 }
 0x5b0   : > { %1073 = vrot.lane.b32.xlu1 %v1755_v21, %s1631_s28 }
 0x5b4   : > { %1071 = vrot.lane.b32.xlu1 %v1752_v12, %s1631_s28 }
 0x62c   : > { %v965_v43 = vpop.xlane.xlu1 %964 }
 0x62d   : > { %v966_v44 = vsub.f32 %v962_v41, %v965_v43 }
 0x62f   : > { %v967_v45 = vmul.f32 1.442695, %v966_v44 }
 0x630   : > { %v1074_v52 = vpop.permute.xlu1 %1073 }
 0x631   : > { %1590 = vpow2.f32 %v967_v45  ;;  %v1079_v54 = vsel %vm585_vm2, %v1074_v52, 0 }
 0x634   : > { %v1072_v55 = vpop.permute.xlu1 %1071 }
 0x63b   : > { %v1591_v46 = vpop.eup %1590 }
 0x63c   : > { %v969_v47 = vsel %vm640_vm5, %v1591_v46, 0.0 }
 0x63d   : > { %970 = vadd.xlane.f32.xlu0 %v969_v47 }
 0x653   : > { %975 = vrot.lane.b32.xlu0 %v1755_v21, %s1632_s29 }
 0x6ca   : > { %v971_v48 = vpop.xlane.xlu0 %970 }
 0x6cb   : > { %1592 = vrcp.f32 %v971_v48 }
 0x6ce   : > { %v976_v49 = vpop.permute.xlu0 %975 }
 0x6cf   : > { %v981_v50 = vsel %vm659_vm6, %v976_v49, 0 }
 0x6d0   : > { %1514 = vmatpush3.bf16.msra.mxu1 %v981_v50  ;;  %v1420_v50 = vld [vmem:[%s1900_s8] ss:$0 sm:$0xff] }
 0x6d1   : > { %1525 = vmatprep.subr.bf16.mxu1 %v1625_v2 }
 0x6d5   : > { %v1593_v12 = vpop.eup %1592 }
 0x6d6   : > { %v973_v51 = vmul.f32 %v1593_v12, %v1591_v46 }
 0x6d8   : > { %v974_v53 = vpack.c.bf16 %v973_v51, %v973_v51  ;;  %v1421_v51 = vld [vmem:[%s1901_s9] ss:$0 sm:$0xff] }
 0x6da   : > { %1516 = vmatmul.mubr.msk.bf16.vlgmr.msra.gmra.mrb[16].mxu1 %vm640_vm5, %v974_v53 }
 0x6db   : > { %1526 = vmatpush3.bf16.xpose.msra.mxu1 %v1079_v54  ;;  %1527 = vmatprep.mubr.msk.bf16.mxu1 %vm1626_vm0, %v1625_v2 }
 0x6dc   : > { %1537 = vmatprep.subr.bf16.mxu1 %v1625_v2 }
 0x6e2   : > { %1528 = vmatmul.mubr.msk.bf16.vlgmr.msra.gmra.mrb[20].mxu1 %vm585_vm2, %v1072_v55 }
 0x6e3   : > { %1539 = vmatprep.mubr.msk.bf16.mxu1 %vm1626_vm0, %v1625_v2  ;;  %1538 = vmatpush3.bf16.msra.mxu1 %v1188_v15 }
 0x7ad   : > { %v1017_v58 = vpop.f32.mrb[16].mxu1 }
 0x7ae   : > { %v1023_v59 = vpack.c.bf16 %v1017_v58, %v1017_v58  ;;  %v1517_v60 = vpop.f32.mrb[17].mxu1 }
 0x7af   : > { %v1020_v61 = vpop.f32.mrb[18].mxu1 }
 0x7b0   : > { %v1518_v62 = vpop.f32.mrb[19].mxu1  ;;  %1522 = vmatmul.mubr.msk.bf16.vlgmr.msra.gmra.mrb[20].mxu0 %vm585_vm2, %v1023_v59 }
 0x7b1   : > { %1533 = vmatprep.mubr.msk.bf16.mxu0 %vm1626_vm0, %v1625_v2 }
 0x7b5   : > { %v1115_v63 = vpop.f32.mrb[20].mxu1 }
 0x7b6   : > { %v1121_v0 = vmul.f32 0.35355338, %v1115_v63  ;;  %v1529_v1 = vpop.f32.mrb[21].mxu1 }
 0x7b7   : > { %v1118_v3 = vpop.f32.mrb[22].mxu1 }
 0x7b8   : > { %v1530_v5 = vpop.f32.mrb[23].mxu1  ;;  %v1122_v6 = vsel %vm638_vm4, -1e+09, %v1121_v0 }
 0x7b9   : > { %v1123_v7 = vsel %vm640_vm5, %v1122_v6, -inf }
 0x7ba   : > { %1124 = vmax.xlane.f32.xlu0 %v1123_v7 }
 0x7d0   : > { %1135 = vrot.lane.b32.xlu0 %v1755_v21, %s1633_s12 }
 0x847   : > { %v1125_v8 = vpop.xlane.xlu0 %1124 }
 0x848   : > { %v1126_v9 = vsub.f32 %v1122_v6, %v1125_v8 }
 0x84a   : > { %v1127_v10 = vmul.f32 1.442695, %v1126_v9 }
 0x84b   : > { %v1136_v11 = vpop.permute.xlu0 %1135 }
 0x84c   : > { %1594 = vpow2.f32 %v1127_v10  ;;  %v1141_v2 = vsel %vm659_vm6, %v1136_v11, 0 }
 0x84d   : > { %1532 = vmatpush3.bf16.msra.mxu0 %v1141_v2 }
 0x856   : > { %v1595_v13 = vpop.eup %1594 }
 0x857   : > { %v1129_v14 = vsel %vm640_vm5, %v1595_v13, 0.0 }
 0x858   : > { %1130 = vadd.xlane.f32.xlu1 %v1129_v14 }
 0x883   : > { %v1064_v21 = vpop.f32.mrb[20].mxu0 }
 0x884   : > { %v1070_v16 = vadd.f32 %v1064_v21, %v1821_v31  ;;  %v1523_v17 = vpop.f32.mrb[21].mxu0  ;;  %v1419_v31 = vld [vmem:[%s1899_s7] ss:$0 sm:$0xff] }
 0x885   : > { %v1067_v18 = vpop.f32.mrb[22].mxu0 }
 0x886   : > { %v1524_v19 = vpop.f32.mrb[23].mxu0 }
 0x8e5   : > { %v1131_v20 = vpop.xlane.xlu1 %1130 }
 0x8e6   : > { %1596 = vrcp.f32 %v1131_v20 }
 0x8f0   : > { %v1597_v22 = vpop.eup %1596 }
 0x8f1   : > { %v1133_v23 = vmul.f32 %v1597_v22, %v1595_v13 }
 0x8f3   : > { %v1134_v24 = vpack.c.bf16 %v1133_v23, %v1133_v23 }
 0x8f5   : > { %1534 = vmatmul.mubr.msk.bf16.vlgmr.msra.gmra.mrb[24].mxu0 %vm640_vm5, %v1134_v24 }
 0x9c8   : > { %v1177_v25 = vpop.f32.mrb[24].mxu0 }
 0x9c9   : > { %v1183_v26 = vpack.c.bf16 %v1177_v25, %v1177_v25  ;;  %v1535_v27 = vpop.f32.mrb[25].mxu0 }
 0x9ca   : > { %v1180_v28 = vpop.f32.mrb[26].mxu0 }
 0x9cb   : > { %v1536_v29 = vpop.f32.mrb[27].mxu0  ;;  %1540 = vmatmul.mubr.msk.bf16.vlgmr.msra.gmra.mrb[24].mxu1 %vm585_vm2, %v1183_v26 }
 0xa9e   : > { %v1224_v30 = vpop.f32.mrb[24].mxu1 }
 0xa9f   : > { %v1230_v33 = vadd.f32 %v1224_v30, %v1070_v16  ;;  %v1541_v34 = vpop.f32.mrb[25].mxu1 }
 0xaa0   : > { %v1227_v36 = vpop.f32.mrb[26].mxu1 }
 0xaa1   : > { %v1238_v37 = vadd.f32 %v1419_v31, %v1230_v33  ;;  %v1542_v38 = vpop.f32.mrb[27].mxu1 }
 0xaa3   : > { %v1240_v39 = vadd.f32 %v1239_v35, %v1238_v37 }
 0xaa5   : > { %v1241_v40 = vsel %vm473_vm1, %v1240_v39, 0.0 }
 0xaa6   : > { %1242 = vadd.xlane.f32.xlu1 %v1241_v40 }
 0xb33   : > { %v1243_v41 = vpop.xlane.xlu1 %1242 }
 0xb34   : > { %v1245_v42 = vmul.f32 0.03125, %v1243_v41 }
 0xb36   : > { %v1246_v43 = vsub.f32 %v1240_v39, %v1245_v42 }
 0xb38   : > { %v1247_v44 = vmul.f32 %v1246_v43, %v1246_v43 }
 0xb3a   : > { %v1248_v45 = vsel %vm473_vm1, %v1247_v44, 0.0 }
 0xb3b   : > { %1249 = vadd.xlane.f32.xlu1 %v1248_v45 }
 0xb4c   : > { %1274 = vperm.xlu1 %1577, %v1271_v4  }
 0xbc8   : > { %v1250_v46 = vpop.xlane.xlu1 %1249 }
 0xbc9   : > { %v1251_v47 = vmul.f32 0.03125, %v1250_v46 }
 0xbcb   : > { %v1252_v48 = vadd.f32 1e-05, %v1251_v47 }
 0xbcc   : > { %v1275_v53 = vpop.permute.xlu1 %1274 }
 0xbcd   : > { %1598 = vrsqrt.f32 %v1252_v48 }
 0xbd7   : > { %v1599_v49 = vpop.eup %1598 }
 0xbd8   : > { %v1254_v12 = vmul.f32 %v1599_v49, %v1246_v43 }
 0xbda   : > { %v1262_v52 = vmul.f32 %v1420_v50, %v1254_v12 }
 0xbdc   : > { %v1270_v54 = vadd.f32 %v1421_v51, %v1262_v52 }
 0xbde   : > { %v1277_v55 = vmul.f32 %v1275_v53, %v1270_v54 }
 0xbe0   : > { %v1278_v56 = vpack.c.bf16 %v1277_v55, %v1277_v55 }
 0xbe2   : > { %1280 = vst.msk [vmem:[%s447_s11] sm:$0xf] %vm1279_vm8, %v1278_v56 }
 0xbe3 PF: > { %s20_s15 = sadd.s32 1, %s1622_s15   ;;  %s1903_s13 = smov %s1618_s14 }
 0xbe4   : > { %p17_p5 = scmp.ge.s32.totalorder %s20_s15, 4   ;;  %s1904_s14 = smov %s1906_s16 }
 0xbe6   :  { %19 = sbr.rel (!%p17_p5) target bundleno = 2 (0x2), region = 99 }

// kernel: forward.45
= control target key start
LH: loop header
LB: loop body
LE: loop exit
PB: predicated region body
PF: predicated region fallthrough
CT: control target
= control target key end

     0   :  { %s1549_s30 = smov 0   ;;  %s1551_s10 = smov 0   ;;  %s1735_s0 = inlined_call_operand.vmem [shape: s32[2,1,8], index: 0, kind: input, shape index: {}]   ;;  %s1736_s1 = inlined_call_operand.vmem [shape: f32[2,8,1], index: 1, kind: input, shape index: {}]   ;;  %s1737_s2 = inlined_call_operand.vmem [shape: bf16[2,8,32], index: 2, kind: input, shape index: {}]   ;;  %s1738_s3 = inlined_call_operand.vmem [shape: bf16[32,96], index: 3, kind: input, shape index: {}]   ;;  %s1739_s4 = inlined_call_operand.vmem [shape: f32[1,96], index: 4, kind: input, shape index: {}]   ;;  %s1740_s5 = inlined_call_operand.vmem [shape: bf16[32,32], index: 5, kind: input, shape index: {}]   ;;  %s1741_s6 = inlined_call_operand.vmem [shape: f32[1,32], index: 6, kind: input, shape index: {}]   ;;  %s1742_s7 = inlined_call_operand.vmem [shape: f32[1,32], index: 7, kind: input, shape index: {}]   ;;  %s1743_s8 = inlined_call_operand.vmem [shape: f32[1,32], index: 8, kind: input, shape index: {}]   ;;  %s1744_s9 = inlined_call_operand.vmem [shape: bf16[2,8,32], index: 9, kind: output, shape index: {}]  }
   0x1   :  { %s1553_s11 = smov 0  }
   0x2 LB: > { %s31_s12 = sadd.s32 1, %s1479_s10  ;;  %p1269_p0 = scmp.ge.s32.totalorder %s1483_s11, 1  ;;  %s1483_s11 = sphi %s1553_s11, %s19_s11   ;;  %s1479_s10 = sphi %s1551_s10, %s1748_s10   ;;  %s1475_s30 = sphi %s1549_s30, %s1747_s30  }
   0x3   : > { %p33_p1 = scmp.ge.s32.totalorder %s31_s12, 2  ;;  %p322_p2 = scmp.lt.s32.totalorder %s1483_s11, 3 }
   0x5   : > { %s1750_s12 = smov (%p33_p1, %s31_s12), 0  ;;  %p323_p3 = pnand %p1269_p0, %p322_p2 }
   0x6   : > { %v1441_v0 = vld [vmem:[%s1738_s3] sm:$0xff] (!%p323_p3)   ;;  %v1485_v1 = vmov (!%p323_p3), 0.0   ;;  %v1442_v2 = vld [vmem:[%s1738_s3 + $0x8] sm:$0xff] (!%p323_p3)   ;;  %vm1486_vm0 = vmmov (!%p323_p3), 0   ;;  %p369_p4 = scmp.lt.s32.totalorder (!%p323_p3), %s1475_s30, 1  ;;  %vm415_vm1 = vcmask (!%p323_p3), 261120   ;;  %v461_v17 = vlaneseq (!%p323_p3) }
   0x7   : > { %326 = sbr.rel (%p323_p3) target bundleno = 2938 (0xb7a), region = 56  ;;  %1321 = vmatprep.subr.bf16.mxu0 (!%p323_p3), %v1485_v1  ;;  %1329 = vmatprep.subr.bf16.mxu1 (!%p323_p3), %v1485_v1  ;;  %v1273_v4 = vld [vmem:[%s1739_s4] ss:$0 sm:$0xff] (!%p323_p3)  ;;  %s1487_s23 = smov (!%p323_p3), 120   ;;  %vm484_vm2 = vcmask (!%p323_p3), 64512   ;;  %v1490_v16 = vmov (!%p323_p3), 0  }
   0x8   : > { %1322 = vmatpush3.bf16.msra.mxu0 (!%p323_p3), %v1441_v0  ;;  %1325 = vmatprep.mubr.msk.bf16.mxu0 (!%p323_p3), %vm1486_vm0, %v1485_v1  ;;  %s1488_s24 = smov (!%p323_p3), 96   ;;  %s1489_s25 = smov (!%p323_p3), 88   ;;  %v462_v19 = vshrl.u32 (!%p323_p3), %v461_v17, 7  ;;  %v467_v22 = vand.u32 (!%p323_p3), 127, %v461_v17  ;;  %vm550_vm7 = vcmask (!%p323_p3), 1043456   ;;  %vm1168_vm8 = vcmask (!%p323_p3), 257024  }
   0x9   : > { %1323 = vmatprep.subr.bf16.mxu0 (!%p323_p3), %v1485_v1  ;;  %1331 = vmatprep.mubr.msk.bf16.mxu1 (!%p323_p3), %vm1486_vm0, %v1485_v1  ;;  %s1491_s29 = smov (!%p323_p3), 64   ;;  %s1492_s13 = smov (!%p323_p3), 56   ;;  %v476_v61 = vld [vmem:[%s1740_s5] sm:$0xf] (!%p323_p3)  ;;  %v477_v63 = vld [vmem:[%s1740_s5 + $0x4] sm:$0xf] (!%p323_p3) }
   0xa   : > { %1439 = vset.pattern.permute.xlu1 (!%p323_p3), %v1490_v16  ;;  %1440 = vset.pattern.permute.xlu0 (!%p323_p3), %v1490_v16  ;;  %v472_v20 = vsub.s32 (!%p323_p3), 0, %v462_v19  ;;  %vm468_vm4 = vcmp.gt.s32.totalorder (!%p323_p3), %v467_v22, %v462_v19  ;;  %s1493_s14 = smov (!%p323_p3), 112   ;;  %s1494_s15 = smov (!%p323_p3), 80   ;;  %v758_v62 = vsel (!%p323_p3), %vm550_vm7, %v476_v61, 0  ;;  %v712_v0 = vsel (!%p323_p3), %vm550_vm7, %v477_v63, 0 }
   0xb   : > { %s1495_s21 = smov (!%p323_p3), 72   ;;  %s1496_s22 = smov (!%p323_p3), 104   ;;  %v479_v25 = vld [vmem:[%s1740_s5 + $0xc] sm:$0xf] (!%p323_p3) }
   0xc   : > { %1324 = vmatpush3.bf16.msra.mxu0 (!%p323_p3), %v1442_v2  ;;  %s1498_s26 = smov (!%p323_p3), 40  }
   0xd   : > { %1335 = vmatprep.subr.bf16.mxu0 (!%p323_p3), %v1485_v1 }
   0xe   : > { %s1752_s30 = smov (!%p369_p4, %s1475_s30), 1 }
   0xf   : > { %s1271_s17 = sshll.u32 %s1752_s30, 2  ;;  %s371_s28 = scalar_lea.vmem %s1735_s0, %s1752_s30 }
  0x10   : > { %s382_s20 = scalar_lea.vmem %s1737_s2, %s1271_s17  ;;  %v459_v18 = vld [vmem:[%s371_s28] sm:$0x1] }
  0x11   : > { %v1589_v3 = vld [vmem:[%s382_s20] sm:$0xf]  ;;  %vm460_vm3 = vcmp.gt.s32.totalorder %v459_v18, 0 }
  0x12   : > { %1326 = vmatmul.mubr.msk.bf16.vlgmr.msra.gmra.mrb[0].mxu0 %vm415_vm1, %v1589_v3  ;;  %v469_v21 = vsel %vm460_vm3, 1, %v1490_v16 }
  0x13   : > { %1337 = vmatprep.mubr.msk.bf16.mxu0 %vm1486_vm0, %v1485_v1  ;;  %v473_v23 = vrot.slane %v469_v21, %v472_v20 }
  0x15   : > { %vm474_vm5 = vcmp.eq.s32.totalorder %v473_v23, 1 }
  0x16   : > { %vm1618_vm6 = vmor %vm474_vm5, %vm468_vm4 }
  0xe5   : > { %v453_v5 = vpop.f32.mrb[0].mxu0 }
  0xe6   : > { %v454_v6 = vadd.f32 %v1273_v4, %v453_v5  ;;  %v1327_v7 = vpop.f32.mrb[1].mxu0 }
  0xe7   : > { %v456_v8 = vpop.f32.mrb[2].mxu0 }
  0xe8   : > { %v1598_v9 = vpack.c.bf16 %v454_v6, %v454_v6  ;;  %v1328_v10 = vpop.f32.mrb[3].mxu0 }
  0xea   : > { %595 = vrot.lane.b32.xlu1 %v1598_v9, %s1487_s23  ;;  %482 = vrot.lane.b32.xlu0 %v1598_v9, %s1488_s24  ;;  %s1497_s23 = smov 48  }
  0xee   : > { %597 = vrot.lane.b32.xlu0 %v1598_v9, %s1489_s25  ;;  %s389_s25 = scalar_lea.vmem %s1744_s9, %s1271_s17 }
 0x15c   : > { %v483_v11 = vpop.permute.xlu0 %482  ;;  %v596_v15 = vpop.permute.xlu1 %595 }
 0x15d   : > { %v489_v12 = vsel %vm484_vm2, %v483_v11, 0 }
 0x15e   : > { %1330 = vmatpush3.bf16.xpose.msra.mxu1 %v489_v12 }
 0x15f   : > { %1341 = vmatprep.subr.bf16.mxu1 %v1485_v1 }
 0x160   : > { %v598_v13 = vpop.permute.xlu0 %597 }
 0x161   : > { %v603_v14 = vsel %vm484_vm2, %v598_v13, 0 }
 0x165   : > { %1332 = vmatmul.mubr.msk.bf16.vlgmr.msra.gmra.mrb[0].mxu1 %vm484_vm2, %v1598_v9 }
 0x166   : > { %1342 = vmatpush3.bf16.xpose.msra.mxu1 %v603_v14  ;;  %1343 = vmatprep.mubr.msk.bf16.mxu1 %vm1486_vm0, %v1485_v1 }
 0x167   : > { %1353 = vmatprep.subr.bf16.mxu1 %v1485_v1 }
 0x16d   : > { %1344 = vmatmul.mubr.msk.bf16.vlgmr.msra.gmra.mrb[4].mxu1 %vm484_vm2, %v596_v15 }
 0x16e   : > { %1355 = vmatprep.mubr.msk.bf16.mxu1 %vm1486_vm0, %v1485_v1  ;;  %1354 = vmatpush3.bf16.msra.mxu1 %v712_v0 }
 0x16f   : > { %1365 = vmatprep.subr.bf16.mxu1 %v1485_v1 }
 0x238   : > { %v525_v24 = vpop.f32.mrb[0].mxu1 }
 0x239   : > { %v531_v26 = vmul.f32 0.35355338, %v525_v24  ;;  %v1333_v27 = vpop.f32.mrb[1].mxu1 }
 0x23a   : > { %v528_v28 = vpop.f32.mrb[2].mxu1 }
 0x23b   : > { %v1334_v29 = vpop.f32.mrb[3].mxu1  ;;  %v532_v30 = vsel %vm1618_vm6, -1e+09, %v531_v26 }
 0x23c   : > { %v533_v31 = vsel %vm484_vm2, %v532_v30, -inf }
 0x23d   : > { %534 = vmax.xlane.f32.xlu1 %v533_v31 }
 0x240   : > { %v639_v32 = vpop.f32.mrb[4].mxu1 }
 0x241   : > { %v645_v33 = vmul.f32 0.35355338, %v639_v32  ;;  %v1345_v34 = vpop.f32.mrb[5].mxu1 }
 0x242   : > { %v642_v35 = vpop.f32.mrb[6].mxu1 }
 0x243   : > { %v1346_v36 = vpop.f32.mrb[7].mxu1  ;;  %v646_v37 = vsel %vm1618_vm6, -1e+09, %v645_v33 }
 0x244   : > { %v647_v38 = vsel %vm484_vm2, %v646_v37, -inf }
 0x245   : > { %648 = vmax.xlane.f32.xlu0 %v647_v38 }
 0x2ca   : > { %v535_v39 = vpop.xlane.xlu1 %534 }
 0x2cb   : > { %v536_v40 = vsub.f32 %v532_v30, %v535_v39 }
 0x2cd   : > { %v537_v41 = vmul.f32 1.442695, %v536_v40 }
 0x2cf   : > { %1443 = vpow2.f32 %v537_v41 }
 0x2d2   : > { %v649_v42 = vpop.xlane.xlu0 %648 }
 0x2d3   : > { %v650_v43 = vsub.f32 %v646_v37, %v649_v42 }
 0x2d5   : > { %v651_v44 = vmul.f32 1.442695, %v650_v43 }
 0x2d7   : > { %1445 = vpow2.f32 %v651_v44 }
 0x2d9   : > { %v1444_v45 = vpop.eup %1443 }
 0x2da   : > { %v539_v46 = vsel %vm484_vm2, %v1444_v45, 0.0 }
 0x2db   : > { %540 = vadd.xlane.f32.xlu0 %v539_v46 }
 0x2e1   : > { %v1446_v47 = vpop.eup %1445 }
 0x2e2   : > { %v653_v48 = vsel %vm484_vm2, %v1446_v47, 0.0 }
 0x2e3   : > { %654 = vadd.xlane.f32.xlu1 %v653_v48  ;;  %v478_v48 = vld [vmem:[%s1740_s5 + $0x8] sm:$0xf] }
 0x2f1   : > { %545 = vrot.lane.b32.xlu0 %v1598_v9, %s1491_s29 }
 0x2f4   : > { %659 = vrot.lane.b32.xlu1 %v1598_v9, %s1492_s13 }
 0x2f5   : > { %800 = vrot.lane.b32.xlu0 %v1598_v9, %s1493_s14  ;;  %s1270_s14 = sshll.u32 %s1752_s30, 3 }
 0x2f6   : > { %s378_s18 = scalar_lea.vmem %s1736_s1, %s1270_s14 }
 0x2f8   : > { %802 = vrot.lane.b32.xlu1 %v1598_v9, %s1494_s15 }
 0x368   : > { %v541_v49 = vpop.xlane.xlu0 %540 }
 0x369   : > { %1447 = vrcp.f32 %v541_v49  ;;  %v917_v49 = vsel %vm550_vm7, %v478_v48, 0 }
 0x36c   : > { %v546_v50 = vpop.permute.xlu0 %545 }
 0x36d   : > { %v552_v51 = vsel %vm550_vm7, %v546_v50, 0 }
 0x36e   : > { %1336 = vmatpush3.bf16.msra.mxu0 %v552_v51 }
 0x36f   : > { %1347 = vmatprep.subr.bf16.mxu0 %v1485_v1 }
 0x370   : > { %v655_v52 = vpop.xlane.xlu1 %654  ;;  %v801_v16 = vpop.permute.xlu0 %800 }
 0x371   : > { %1449 = vrcp.f32 %v655_v52 }
 0x373   : > { %v1448_v53 = vpop.eup %1447 }
 0x374   : > { %v543_v54 = vmul.f32 %v1448_v53, %v1444_v45  ;;  %v660_v55 = vpop.permute.xlu1 %659 }
 0x375   : > { %v665_v57 = vsel %vm550_vm7, %v660_v55, 0 }
 0x376   : > { %v544_v56 = vpack.c.bf16 %v543_v54, %v543_v54 }
 0x378   : > { %1338 = vmatmul.mubr.msk.bf16.vlgmr.msra.gmra.mrb[4].mxu0 %vm484_vm2, %v544_v56  ;;  %v803_v8 = vpop.permute.xlu1 %802 }
 0x379   : > { %1348 = vmatpush3.bf16.msra.mxu0 %v665_v57  ;;  %1349 = vmatprep.mubr.msk.bf16.mxu0 %vm1486_vm0, %v1485_v1  ;;  %v808_v14 = vsel %vm484_vm2, %v803_v8, 0 }
 0x37a   : > { %1359 = vmatprep.subr.bf16.mxu0 %v1485_v1 }
 0x37b   : > { %v1450_v58 = vpop.eup %1449 }
 0x37c   : > { %v657_v59 = vmul.f32 %v1450_v58, %v1446_v47 }
 0x37e   : > { %v658_v60 = vpack.c.bf16 %v657_v59, %v657_v59 }
 0x380   : > { %1350 = vmatmul.mubr.msk.bf16.vlgmr.msra.gmra.mrb[8].mxu0 %vm484_vm2, %v658_v60 }
 0x381   : > { %1361 = vmatprep.mubr.msk.bf16.mxu0 %vm1486_vm0, %v1485_v1  ;;  %1360 = vmatpush3.bf16.msra.mxu0 %v758_v62 }
 0x382   : > { %1371 = vmatprep.subr.bf16.mxu0 %v1485_v1 }
 0x44b   : > { %v588_v2 = vpop.f32.mrb[4].mxu0 }
 0x44c   : > { %v594_v4 = vpack.c.bf16 %v588_v2, %v588_v2  ;;  %v1339_v5 = vpop.f32.mrb[5].mxu0 }
 0x44d   : > { %v591_v6 = vpop.f32.mrb[6].mxu0 }
 0x44e   : > { %v1340_v7 = vpop.f32.mrb[7].mxu0  ;;  %1362 = vmatmul.mubr.msk.bf16.vlgmr.msra.gmra.mrb[12].mxu0 %vm484_vm2, %v594_v4  ;;  %v1077_v6 = vsel %vm550_vm7, %v479_v25, 0 }
 0x44f   : > { %1373 = vmatprep.mubr.msk.bf16.mxu0 %vm1486_vm0, %v1485_v1 }
 0x453   : > { %v701_v10 = vpop.f32.mrb[8].mxu0 }
 0x454   : > { %v707_v11 = vpack.c.bf16 %v701_v10, %v701_v10  ;;  %v1351_v12 = vpop.f32.mrb[9].mxu0 }
 0x455   : > { %v704_v13 = vpop.f32.mrb[10].mxu0 }
 0x456   : > { %v1352_v15 = vpop.f32.mrb[11].mxu0  ;;  %1356 = vmatmul.mubr.msk.bf16.vlgmr.msra.gmra.mrb[8].mxu1 %vm484_vm2, %v707_v11 }
 0x457   : > { %1366 = vmatpush3.bf16.xpose.msra.mxu1 %v808_v14  ;;  %1367 = vmatprep.mubr.msk.bf16.mxu1 %vm1486_vm0, %v1485_v1 }
 0x458   : > { %1377 = vmatprep.subr.bf16.mxu1 %v1485_v1 }
 0x45e   : > { %1368 = vmatmul.mubr.msk.bf16.vlgmr.msra.gmra.mrb[12].mxu1 %vm484_vm2, %v801_v16 }
 0x45f   : > { %1379 = vmatprep.mubr.msk.bf16.mxu1 %vm1486_vm0, %v1485_v1  ;;  %1378 = vmatpush3.bf16.msra.mxu1 %v917_v49 }
 0x460   : > { %1389 = vmatprep.subr.bf16.mxu1 %v1485_v1 }
 0x521   : > { %v794_v17 = vpop.f32.mrb[12].mxu0 }
 0x522   : > { %v1363_v18 = vpop.f32.mrb[13].mxu0 }
 0x523   : > { %v797_v19 = vpop.f32.mrb[14].mxu0 }
 0x524   : > { %v1364_v20 = vpop.f32.mrb[15].mxu0 }
 0x529   : > { %v748_v21 = vpop.f32.mrb[8].mxu1 }
 0x52a   : > { %v1665_v22 = vadd.f32 %v794_v17, %v748_v21  ;;  %v1357_v23 = vpop.f32.mrb[9].mxu1 }
 0x52b   : > { %v751_v24 = vpop.f32.mrb[10].mxu1 }
 0x52c   : > { %v1358_v26 = vpop.f32.mrb[11].mxu1 }
 0x52d   : > { %v1128_v26 = vunpack.c.l.bf16 %v1589_v3  ;;  %v1160_v3 = vld [vmem:[%s378_s18] sm:$0xff] }
 0x531   : > { %v844_v27 = vpop.f32.mrb[12].mxu1 }
 0x532   : > { %v850_v28 = vmul.f32 0.35355338, %v844_v27  ;;  %v1369_v29 = vpop.f32.mrb[13].mxu1 }
 0x533   : > { %v847_v30 = vpop.f32.mrb[14].mxu1 }
 0x534   : > { %v1370_v31 = vpop.f32.mrb[15].mxu1  ;;  %v851_v32 = vsel %vm1618_vm6, -1e+09, %v850_v28 }
 0x535   : > { %v852_v33 = vsel %vm484_vm2, %v851_v32, -inf }
 0x536   : > { %853 = vmax.xlane.f32.xlu1 %v852_v33 }
 0x547   : > { %962 = vrot.lane.b32.xlu1 %v1598_v9, %s1495_s21 }
 0x54b   : > { %960 = vrot.lane.b32.xlu1 %v1598_v9, %s1496_s22 }
 0x5c3   : > { %v854_v34 = vpop.xlane.xlu1 %853 }
 0x5c4   : > { %v855_v35 = vsub.f32 %v851_v32, %v854_v34 }
 0x5c6   : > { %v856_v36 = vmul.f32 1.442695, %v855_v35 }
 0x5c7   : > { %v963_v44 = vpop.permute.xlu1 %962 }
 0x5c8   : > { %1451 = vpow2.f32 %v856_v36  ;;  %v968_v46 = vsel %vm484_vm2, %v963_v44, 0 }
 0x5cb   : > { %v961_v47 = vpop.permute.xlu1 %960 }
 0x5d2   : > { %v1452_v37 = vpop.eup %1451 }
 0x5d3   : > { %v858_v38 = vsel %vm484_vm2, %v1452_v37, 0.0 }
 0x5d4   : > { %859 = vadd.xlane.f32.xlu0 %v858_v38 }
 0x5ea   : > { %864 = vrot.lane.b32.xlu0 %v1598_v9, %s1497_s23 }
 0x661   : > { %v860_v39 = vpop.xlane.xlu0 %859 }
 0x662   : > { %1453 = vrcp.f32 %v860_v39 }
 0x665   : > { %v865_v40 = vpop.permute.xlu0 %864 }
 0x666   : > { %v870_v41 = vsel %vm550_vm7, %v865_v40, 0 }
 0x667   : > { %1372 = vmatpush3.bf16.msra.mxu0 %v870_v41  ;;  %v1290_v41 = vld [vmem:[%s1742_s7] ss:$0 sm:$0xff] }
 0x668   : > { %1383 = vmatprep.subr.bf16.mxu0 %v1485_v1 }
 0x66c   : > { %v1454_v42 = vpop.eup %1453 }
 0x66d   : > { %v862_v43 = vmul.f32 %v1454_v42, %v1452_v37 }
 0x66f   : > { %v863_v45 = vpack.c.bf16 %v862_v43, %v862_v43  ;;  %v1291_v43 = vld [vmem:[%s1743_s8] ss:$0 sm:$0xff] }
 0x671   : > { %1374 = vmatmul.mubr.msk.bf16.vlgmr.msra.gmra.mrb[16].mxu0 %vm484_vm2, %v863_v45 }
 0x672   : > { %1384 = vmatpush3.bf16.xpose.msra.mxu0 %v968_v46  ;;  %1385 = vmatprep.mubr.msk.bf16.mxu0 %vm1486_vm0, %v1485_v1 }
 0x673   : > { %1395 = vmatprep.subr.bf16.mxu0 %v1485_v1 }
 0x679   : > { %1386 = vmatmul.mubr.msk.bf16.vlgmr.msra.gmra.mrb[20].mxu0 %vm484_vm2, %v961_v47 }
 0x67a   : > { %1397 = vmatprep.mubr.msk.bf16.mxu0 %vm1486_vm0, %v1485_v1  ;;  %1396 = vmatpush3.bf16.msra.mxu0 %v1077_v6 }
 0x744   : > { %v906_v50 = vpop.f32.mrb[16].mxu0 }
 0x745   : > { %v912_v51 = vpack.c.bf16 %v906_v50, %v906_v50  ;;  %v1375_v52 = vpop.f32.mrb[17].mxu0 }
 0x746   : > { %v909_v53 = vpop.f32.mrb[18].mxu0 }
 0x747   : > { %v1376_v54 = vpop.f32.mrb[19].mxu0  ;;  %1380 = vmatmul.mubr.msk.bf16.vlgmr.msra.gmra.mrb[16].mxu1 %vm484_vm2, %v912_v51 }
 0x748   : > { %1391 = vmatprep.mubr.msk.bf16.mxu1 %vm1486_vm0, %v1485_v1 }
 0x74c   : > { %v1004_v55 = vpop.f32.mrb[20].mxu0 }
 0x74d   : > { %v1010_v56 = vmul.f32 0.35355338, %v1004_v55  ;;  %v1387_v57 = vpop.f32.mrb[21].mxu0 }
 0x74e   : > { %v1007_v58 = vpop.f32.mrb[22].mxu0 }
 0x74f   : > { %v1388_v59 = vpop.f32.mrb[23].mxu0  ;;  %v1011_v60 = vsel %vm1618_vm6, -1e+09, %v1010_v56 }
 0x750   : > { %v1012_v61 = vsel %vm484_vm2, %v1011_v60, -inf }
 0x751   : > { %1013 = vmax.xlane.f32.xlu0 %v1012_v61 }
 0x767   : > { %1024 = vrot.lane.b32.xlu0 %v1598_v9, %s1498_s26 }
 0x7de   : > { %v1014_v62 = vpop.xlane.xlu0 %1013 }
 0x7df   : > { %v1015_v63 = vsub.f32 %v1011_v60, %v1014_v62 }
 0x7e1   : > { %v1016_v0 = vmul.f32 1.442695, %v1015_v63 }
 0x7e2   : > { %v1025_v2 = vpop.permute.xlu0 %1024 }
 0x7e3   : > { %1455 = vpow2.f32 %v1016_v0  ;;  %v1030_v1 = vsel %vm550_vm7, %v1025_v2, 0 }
 0x7e4   : > { %1390 = vmatpush3.bf16.msra.mxu1 %v1030_v1 }
 0x7ed   : > { %v1456_v4 = vpop.eup %1455 }
 0x7ee   : > { %v1018_v5 = vsel %vm484_vm2, %v1456_v4, 0.0 }
 0x7ef   : > { %1019 = vadd.xlane.f32.xlu1 %v1018_v5 }
 0x81a   : > { %v953_v9 = vpop.f32.mrb[16].mxu1 }
 0x81b   : > { %v959_v7 = vadd.f32 %v953_v9, %v1665_v22  ;;  %v1381_v8 = vpop.f32.mrb[17].mxu1  ;;  %v1289_v22 = vld [vmem:[%s1741_s6] ss:$0 sm:$0xff] }
 0x81c   : > { %v956_v10 = vpop.f32.mrb[18].mxu1 }
 0x81d   : > { %v1382_v11 = vpop.f32.mrb[19].mxu1 }
 0x87c   : > { %v1020_v12 = vpop.xlane.xlu1 %1019 }
 0x87d   : > { %1457 = vrcp.f32 %v1020_v12 }
 0x887   : > { %v1458_v13 = vpop.eup %1457 }
 0x888   : > { %v1022_v14 = vmul.f32 %v1458_v13, %v1456_v4 }
 0x88a   : > { %v1023_v15 = vpack.c.bf16 %v1022_v14, %v1022_v14 }
 0x88c   : > { %1392 = vmatmul.mubr.msk.bf16.vlgmr.msra.gmra.mrb[20].mxu1 %vm484_vm2, %v1023_v15 }
 0x95f   : > { %v1066_v16 = vpop.f32.mrb[20].mxu1 }
 0x960   : > { %v1072_v17 = vpack.c.bf16 %v1066_v16, %v1066_v16  ;;  %v1393_v18 = vpop.f32.mrb[21].mxu1 }
 0x961   : > { %v1069_v19 = vpop.f32.mrb[22].mxu1 }
 0x962   : > { %v1394_v20 = vpop.f32.mrb[23].mxu1  ;;  %1398 = vmatmul.mubr.msk.bf16.vlgmr.msra.gmra.mrb[24].mxu0 %vm484_vm2, %v1072_v17 }
 0xa35   : > { %v1113_v21 = vpop.f32.mrb[24].mxu0 }
 0xa36   : > { %v1119_v23 = vadd.f32 %v1113_v21, %v959_v7  ;;  %v1399_v24 = vpop.f32.mrb[25].mxu0 }
 0xa37   : > { %v1116_v27 = vpop.f32.mrb[26].mxu0 }
 0xa38   : > { %v1127_v28 = vadd.f32 %v1289_v22, %v1119_v23  ;;  %v1400_v29 = vpop.f32.mrb[27].mxu0 }
 0xa3a   : > { %v1129_v30 = vadd.f32 %v1128_v26, %v1127_v28 }
 0xa3c   : > { %v1130_v31 = vsel %vm415_vm1, %v1129_v30, 0.0 }
 0xa3d   : > { %1131 = vadd.xlane.f32.xlu1 %v1130_v31 }
 0xaca   : > { %v1132_v32 = vpop.xlane.xlu1 %1131 }
 0xacb   : > { %v1134_v33 = vmul.f32 0.03125, %v1132_v32 }
 0xacd   : > { %v1135_v34 = vsub.f32 %v1129_v30, %v1134_v33 }
 0xacf   : > { %v1136_v35 = vmul.f32 %v1135_v34, %v1135_v34 }
 0xad1   : > { %v1137_v36 = vsel %vm415_vm1, %v1136_v35, 0.0 }
 0xad2   : > { %1138 = vadd.xlane.f32.xlu1 %v1137_v36 }
 0xae3   : > { %1163 = vperm.xlu1 %1439, %v1160_v3  }
 0xb5f   : > { %v1139_v37 = vpop.xlane.xlu1 %1138 }
 0xb60   : > { %v1140_v38 = vmul.f32 0.03125, %v1139_v37 }
 0xb62   : > { %v1141_v39 = vadd.f32 1e-05, %v1140_v38 }
 0xb63   : > { %v1164_v45 = vpop.permute.xlu1 %1163 }
 0xb64   : > { %1459 = vrsqrt.f32 %v1141_v39 }
 0xb6e   : > { %v1460_v40 = vpop.eup %1459 }
 0xb6f   : > { %v1143_v42 = vmul.f32 %v1460_v40, %v1135_v34 }
 0xb71   : > { %v1151_v44 = vmul.f32 %v1290_v41, %v1143_v42 }
 0xb73   : > { %v1159_v46 = vadd.f32 %v1291_v43, %v1151_v44 }
 0xb75   : > { %v1166_v47 = vmul.f32 %v1164_v45, %v1159_v46 }
 0xb77   : > { %v1167_v48 = vpack.c.bf16 %v1166_v47, %v1166_v47 }
 0xb79   : > { %1169 = vst.msk [vmem:[%s389_s25] sm:$0xf] %vm1168_vm8, %v1167_v48 }
 0xb7a PF: > { %s19_s11 = sadd.s32 1, %s1483_s11   ;;  %s1747_s30 = smov %s1479_s10 }
 0xb7b   : > { %p16_p5 = scmp.ge.s32.totalorder %s19_s11, 4   ;;  %s1748_s10 = smov %s1750_s12 }
 0xb7d   :  { %18 = sbr.rel (!%p16_p5) target bundleno = 2 (0x2), region = 92 }

// kernel: forward.47
= control target key start
LH: loop header
LB: loop body
LE: loop exit
PB: predicated region body
PF: predicated region fallthrough
CT: control target
= control target key end

     0   :  { %s851_s27 = smov 0   ;;  %s853_s28 = smov 0   ;;  %s940_s0 = inlined_call_operand.vmem [shape: bf16[2,8,32], index: 0, kind: input, shape index: {}]   ;;  %s941_s1 = inlined_call_operand.vmem [shape: f32[2,8,1], index: 1, kind: input, shape index: {}]   ;;  %s942_s2 = inlined_call_operand.vmem [shape: bf16[32,128], index: 2, kind: input, shape index: {}]   ;;  %s943_s3 = inlined_call_operand.vmem [shape: f32[1,128], index: 3, kind: input, shape index: {}]   ;;  %s944_s4 = inlined_call_operand.vmem [shape: bf16[128,32], index: 4, kind: input, shape index: {}]   ;;  %s945_s5 = inlined_call_operand.vmem [shape: f32[1,32], index: 5, kind: input, shape index: {}]   ;;  %s946_s6 = inlined_call_operand.vmem [shape: f32[1,32], index: 6, kind: input, shape index: {}]   ;;  %s947_s7 = inlined_call_operand.vmem [shape: f32[1,32], index: 7, kind: input, shape index: {}]   ;;  %s948_s8 = inlined_call_operand.vmem [shape: bf16[2,8,32], index: 8, kind: output, shape index: {}]  }
   0x1   :  { %s855_s29 = smov 0  }
   0x2 LB: > { %s30_s30 = sadd.s32 1, %s797_s28  ;;  %p677_p0 = scmp.ge.s32.totalorder %s801_s29, 1  ;;  %s801_s29 = sphi %s855_s29, %s18_s29   ;;  %s797_s28 = sphi %s853_s28, %s950_s28   ;;  %s793_s27 = sphi %s851_s27, %s949_s27  }
   0x3   : > { %p32_p1 = scmp.ge.s32.totalorder %s30_s30, 2  ;;  %p294_p2 = scmp.lt.s32.totalorder %s801_s29, 3 }
   0x5   : > { %s952_s30 = smov (%p32_p1, %s30_s30), 0  ;;  %p295_p3 = pnand %p677_p0, %p294_p2 }
   0x6   : > { %v767_v0 = vld [vmem:[%s942_s2] sm:$0xff] (!%p295_p3)   ;;  %v803_v1 = vmov (!%p295_p3), 0.0   ;;  %v768_v2 = vld [vmem:[%s942_s2 + $0x8] sm:$0xff] (!%p295_p3)   ;;  %vm804_vm0 = vmmov (!%p295_p3), 0   ;;  %p339_p4 = scmp.lt.s32.totalorder (!%p295_p3), %s793_s27, 1  ;;  %vm385_vm1 = vcmask (!%p295_p3), 261120  }
   0x7   : > { %298 = sbr.rel (%p295_p3) target bundleno = 770 (0x302), region = 52  ;;  %710 = vmatprep.subr.bf16.mxu0 (!%p295_p3), %v803_v1  ;;  %718 = vmatprep.subr.bf16.mxu1 (!%p295_p3), %v803_v1  ;;  %v769_v3 = vld [vmem:[%s944_s4] sm:$0xff] (!%p295_p3)   ;;  %v770_v4 = vld [vmem:[%s944_s4 + $0x8] sm:$0xff] (!%p295_p3)   ;;  %v771_v6 = vld [vmem:[%s944_s4 + $0x10] sm:$0xff] (!%p295_p3)   ;;  %v805_v29 = vmov (!%p295_p3), 0   ;;  %vm582_vm2 = vcmask (!%p295_p3), 257024  }
   0x8   : > { %711 = vmatpush3.bf16.msra.mxu0 (!%p295_p3), %v767_v0  ;;  %714 = vmatprep.mubr.msk.bf16.mxu0 (!%p295_p3), %vm804_vm0, %v803_v1  ;;  %v772_v7 = vld [vmem:[%s944_s4 + $0x18] sm:$0xff] (!%p295_p3)   ;;  %v773_v8 = vld [vmem:[%s944_s4 + $0x20] sm:$0xff] (!%p295_p3)   ;;  %v774_v9 = vld [vmem:[%s944_s4 + $0x28] sm:$0xff] (!%p295_p3)  }
   0x9   : > { %712 = vmatprep.subr.bf16.mxu0 (!%p295_p3), %v803_v1  ;;  %734 = vmatprep.mubr.msk.bf16.mxu1 (!%p295_p3), %vm804_vm0, %v803_v1  ;;  %v775_v10 = vld [vmem:[%s944_s4 + $0x30] sm:$0xff] (!%p295_p3)   ;;  %v776_v11 = vld [vmem:[%s944_s4 + $0x38] sm:$0xff] (!%p295_p3)   ;;  %v681_v12 = vld [vmem:[%s943_s3] ss:$0 sm:$0xff] (!%p295_p3) }
   0xa   : > { %719 = vmatpush3.bf16.msra.mxu1 (!%p295_p3), %v769_v3  ;;  %v685_v20 = vld [vmem:[%s945_s5] ss:$0 sm:$0xff] (!%p295_p3)  ;;  %765 = vset.pattern.permute.xlu1 (!%p295_p3), %v805_v29 }
   0xb   : > { %720 = vmatprep.subr.bf16.mxu1 (!%p295_p3), %v803_v1  ;;  %766 = vset.pattern.permute.xlu0 (!%p295_p3), %v805_v29  ;;  %v694_v40 = vld [vmem:[%s946_s6] ss:$0 sm:$0xff] (!%p295_p3) }
   0xc   : > { %713 = vmatpush3.bf16.msra.mxu0 (!%p295_p3), %v768_v2  ;;  %v695_v42 = vld [vmem:[%s947_s7] ss:$0 sm:$0xff] (!%p295_p3) }
   0xe   : > { %s954_s27 = smov (!%p339_p4, %s793_s27), 1  ;;  %721 = vmatpush3.bf16.msra.mxu1 %v770_v4 }
   0xf   : > { %s678_s17 = sshll.u32 %s954_s27, 2  ;;  %722 = vmatprep.subr.bf16.mxu1 %v803_v1 }
  0x10   : > { %s345_s20 = scalar_lea.vmem %s940_s0, %s678_s17  ;;  %s359_s12 = scalar_lea.vmem %s948_s8, %s678_s17 }
  0x11   : > { %v361_v5 = vld [vmem:[%s345_s20] sm:$0xf]  ;;  %s679_s20 = sshll.u32 %s954_s27, 3 }
  0x12   : > { %715 = vmatmul.mubr.msk.bf16.vlgmr.msra.gmra.mrb[0].mxu0 %vm385_vm1, %v361_v5  ;;  %723 = vmatpush3.bf16.msra.mxu1 %v771_v6  ;;  %v542_v21 = vunpack.c.l.bf16 %v361_v5  ;;  %s352_s23 = scalar_lea.vmem %s941_s1, %s679_s20 }
  0x13   : > { %724 = vmatprep.subr.bf16.mxu1 %v803_v1  ;;  %v574_v30 = vld [vmem:[%s352_s23] sm:$0xff] }
  0x14   : > { %577 = vperm.xlu1 %765, %v574_v30  }
  0x16   : > { %725 = vmatpush3.bf16.msra.mxu1 %v772_v7 }
  0x17   : > { %726 = vmatprep.subr.bf16.mxu1 %v803_v1 }
  0x1a   : > { %727 = vmatpush3.bf16.msra.mxu1 %v773_v8 }
  0x1b   : > { %728 = vmatprep.subr.bf16.mxu1 %v803_v1 }
  0x1e   : > { %729 = vmatpush3.bf16.msra.mxu1 %v774_v9 }
  0x1f   : > { %730 = vmatprep.subr.bf16.mxu1 %v803_v1 }
  0x22   : > { %731 = vmatpush3.bf16.msra.mxu1 %v775_v10 }
  0x23   : > { %732 = vmatprep.subr.bf16.mxu1 %v803_v1 }
  0x26   : > { %733 = vmatpush3.bf16.msra.mxu1 %v776_v11 }
  0x93   : > { %v578_v44 = vpop.permute.xlu1 %577 }
  0xe5   : > { %v423_v13 = vpop.f32.mrb[0].mxu0 }
  0xe6   : > { %v424_v14 = vadd.f32 %v681_v12, %v423_v13  ;;  %v716_v15 = vpop.f32.mrb[1].mxu0 }
  0xe7   : > { %v426_v16 = vpop.f32.mrb[2].mxu0 }
  0xe8   : > { %v429_v17 = vmax.f32 %v424_v14, 0.0  ;;  %v717_v18 = vpop.f32.mrb[3].mxu0 }
  0xea   : > { %v430_v19 = vpack.c.bf16 %v429_v17, %v429_v17 }
  0xec   : > { %735 = vmatmul.mubr.bf16.vlgmr.msra.gmra.mrb[0].mxu1 %v430_v19 }
 0x1bf   : > { %v536_v22 = vpop.f32.mrb[0].mxu1 }
 0x1c0   : > { %v537_v23 = vadd.f32 %v685_v20, %v536_v22  ;;  %v736_v24 = vpop.f32.mrb[1].mxu1 }
 0x1c1   : > { %v539_v25 = vpop.f32.mrb[2].mxu1 }
 0x1c2   : > { %v737_v26 = vpop.f32.mrb[3].mxu1  ;;  %v543_v27 = vadd.f32 %v542_v21, %v537_v23 }
 0x1c4   : > { %v544_v28 = vsel %vm385_vm1, %v543_v27, 0.0 }
 0x1c5   : > { %545 = vadd.xlane.f32.xlu0 %v544_v28 }
 0x252   : > { %v546_v31 = vpop.xlane.xlu0 %545 }
 0x253   : > { %v548_v32 = vmul.f32 0.03125, %v546_v31 }
 0x255   : > { %v549_v33 = vsub.f32 %v543_v27, %v548_v32 }
 0x257   : > { %v550_v34 = vmul.f32 %v549_v33, %v549_v33 }
 0x259   : > { %v551_v35 = vsel %vm385_vm1, %v550_v34, 0.0 }
 0x25a   : > { %552 = vadd.xlane.f32.xlu0 %v551_v35 }
 0x2e7   : > { %v553_v36 = vpop.xlane.xlu0 %552 }
 0x2e8   : > { %v554_v37 = vmul.f32 0.03125, %v553_v36 }
 0x2ea   : > { %v555_v38 = vadd.f32 1e-05, %v554_v37 }
 0x2ec   : > { %777 = vrsqrt.f32 %v555_v38 }
 0x2f6   : > { %v778_v39 = vpop.eup %777 }
 0x2f7   : > { %v557_v41 = vmul.f32 %v778_v39, %v549_v33 }
 0x2f9   : > { %v565_v43 = vmul.f32 %v694_v40, %v557_v41 }
 0x2fb   : > { %v573_v45 = vadd.f32 %v695_v42, %v565_v43 }
 0x2fd   : > { %v580_v46 = vmul.f32 %v578_v44, %v573_v45 }
 0x2ff   : > { %v581_v47 = vpack.c.bf16 %v580_v46, %v580_v46 }
 0x301   : > { %583 = vst.msk [vmem:[%s359_s12] sm:$0xf] %vm582_vm2, %v581_v47 }
 0x302 PF: > { %s18_s29 = sadd.s32 1, %s801_s29   ;;  %s949_s27 = smov %s797_s28 }
 0x303   : > { %p15_p5 = scmp.ge.s32.totalorder %s18_s29, 4   ;;  %s950_s28 = smov %s952_s30 }
 0x305   :  { %17 = sbr.rel (!%p15_p5) target bundleno = 2 (0x2), region = 85 }

// kernel: forward.63
= control target key start
LH: loop header
LB: loop body
LE: loop exit
PB: predicated region body
PF: predicated region fallthrough
CT: control target
= control target key end

     0   :  { %s608_s23 = smov 0   ;;  %s648_s0 = inlined_call_operand.vmem [shape: s32[2,1,10], index: 0, kind: input, shape index: {}]   ;;  %s649_s1 = inlined_call_operand.vmem [shape: bf16[2,8,32], index: 1, kind: input, shape index: {}]   ;;  %s650_s2 = inlined_call_operand.vmem [shape: bf16[2,10,32], index: 2, kind: input, shape index: {}]   ;;  %s651_s3 = inlined_call_operand.vmem [shape: f32[1,32], index: 3, kind: input, shape index: {}]   ;;  %s652_s4 = inlined_call_operand.<no memory space> [shape: f32[1,1], index: 4, kind: input, shape index: {}]   ;;  %s653_s5 = inlined_call_operand.vmem [shape: f32[2,8,10], index: 5, kind: output, shape index: {0}]   ;;  %s654_s6 = inlined_call_operand.vmem [shape: f32[2,8,1], index: 6, kind: output, shape index: {1}]  }
   0x1   :  { %v12_v0 = vstv %s652_s4 }
   0x2   :  { %13 = vst [vmem:[#allocation2] sm:$0x1] %v12_v0 }
   0x3 LB: > { %s511_s24 = sadd.s32 4294967295, %s565_s23   ;;  %p515_p0 = scmp.ge.s32.totalorder %s565_s23, 1  ;;  %s565_s23 = sphi %s608_s23, %s19_s23  }
   0x4   : > { %p234_p1 = scmp.lt.s32.totalorder %s565_s23, 3 }
   0x6   : > { %p235_p2 = pnand %p515_p0, %p234_p1 }
   0x7   : > { %p274_p3 = scmp.lt.s32.totalorder (!%p235_p2), %s511_s24, 1  ;;  %v567_v1 = vmov (!%p235_p2), 0.0   ;;  %vm568_vm0 = vmmov (!%p235_p2), 0   ;;  %vm307_vm1 = vcmask (!%p235_p2), 261120   ;;  %v569_v6 = vmov (!%p235_p2), 0  }
   0x8   : > { %238 = sbr.rel (%p235_p2) target bundleno = 557 (0x22d), region = 40  ;;  %531 = vmatprep.subr.bf16.mxu0 (!%p235_p2), %v567_v1  ;;  %533 = vmatprep.mubr.msk.bf16.mxu0 (!%p235_p2), %vm568_vm0, %v567_v1  ;;  %v379_v8 = vlaneseq (!%p235_p2)  ;;  %v521_v13 = vld [vmem:[%s651_s3] ss:$0 sm:$0xff] (!%p235_p2)  ;;  %vm385_vm4 = vcmask (!%p235_p2), 80896   ;;  %vm404_vm5 = vcmask (!%p235_p2), 7168  }
   0x9   : > { %548 = vset.pattern.permute.xlu1 (!%p235_p2), %v569_v6  ;;  %549 = vset.pattern.permute.xlu0 (!%p235_p2), %v569_v6  ;;  %v522_v24 = vld [vmem:[#allocation2] ss:$0 sm:$0xff] (!%p235_p2) }
   0xa   : > { %v380_v9 = vshrl.u32 (!%p235_p2), %v379_v8, 7 }
   0xc   : > { %v381_v10 = vsub.s32 (!%p235_p2), 0, %v380_v9 }
   0xf   : > { %s656_s24 = smov (!%p274_p3, %s511_s24), 1 }
  0x10   : > { %s616_s4 = sshll.u32 %s656_s24, 3  ;;  %s516_s28 = sshll.u32 %s656_s24, 2 }
  0x11   : > { %s285_s27 = scalar_lea.vmem %s650_s2, %s616_s4  ;;  %s280_s7 = scalar_lea.vmem %s649_s1, %s516_s28 }
  0x12   : > { %v550_v2 = vld [vmem:[%s285_s27] sm:$0x1f]   ;;  %s276_s10 = scalar_lea.vmem %s648_s0, %s656_s24  ;;  %s293_s15 = scalar_lea.vmem %s654_s6, %s616_s4 }
  0x13   : > { %v334_v3 = vsel %vm307_vm1, %v550_v2, 0  ;;  %v295_v4 = vld [vmem:[%s280_s7] sm:$0xf]  ;;  %s289_s18 = scalar_lea.vmem %s653_s5, %s616_s4 }
  0x14   : > { %532 = vmatpush3.bf16.xpose.msra.mxu0 %v334_v3  ;;  %v376_v5 = vld [vmem:[%s276_s10] sm:$0x1]  ;;  %v298_v12 = vunpack.c.l.bf16 %v295_v4 }
  0x15   : > { %vm377_vm2 = vcmp.gt.s32.totalorder %v376_v5, 0 }
  0x16   : > { %v378_v7 = vsel %vm377_vm2, 1, %v569_v6  ;;  %v306_v15 = vmul.f32 %v521_v13, %v298_v12 }
  0x17   : > { %v382_v11 = vrot.slane %v378_v7, %v381_v10 }
  0x18   : > { %v308_v21 = vsel %vm307_vm1, %v306_v15, 0.0 }
  0x19   : > { %vm383_vm3 = vcmp.eq.s32.totalorder %v382_v11, 1 }
  0x1b   : > { %534 = vmatmul.mubr.msk.bf16.vlgmr.msra.gmra.mrb[0].mxu0 %vm307_vm1, %v295_v4 }
  0xee   : > { %v370_v14 = vpop.f32.mrb[0].mxu0 }
  0xef   : > { %v384_v16 = vsel %vm383_vm3, -1e+09, %v370_v14  ;;  %v535_v17 = vpop.f32.mrb[1].mxu0 }
  0xf0   : > { %v373_v18 = vpop.f32.mrb[2].mxu0  ;;  %v386_v19 = vsel %vm385_vm4, %v384_v16, -inf }
  0xf1   : > { %v536_v20 = vpop.f32.mrb[3].mxu0  ;;  %387 = vmax.xlane.f32.xlu0 %v386_v19 }
  0xf5   : > { %309 = vadd.xlane.f32.xlu0 %v308_v21 }
 0x17e   : > { %v388_v22 = vpop.xlane.xlu0 %387 }
 0x17f   : > { %v389_v23 = vsub.f32 %v384_v16, %v388_v22 }
 0x181   : > { %v390_v25 = vmul.f32 1.442695, %v389_v23 }
 0x182   : > { %v310_v26 = vpop.xlane.xlu0 %309 }
 0x183   : > { %551 = vpow2.f32 %v390_v25  ;;  %v318_v27 = vadd.f32 %v522_v24, %v310_v26 }
 0x185   : > { %v523_v28 = vmul.f32 -1.442695, %v318_v27 }
 0x187   : > { %553 = vpow2.f32 %v523_v28 }
 0x18d   : > { %v552_v29 = vpop.eup %551 }
 0x18e   : > { %v392_v30 = vsel %vm385_vm4, %v552_v29, 0.0 }
 0x18f   : > { %393 = vadd.xlane.f32.xlu1 %v392_v30 }
 0x191   : > { %v554_v31 = vpop.eup %553 }
 0x192   : > { %v322_v32 = vadd.f32 1.0, %v554_v31 }
 0x194   : > { %555 = vrcp.f32 %v322_v32 }
 0x19e   : > { %v556_v33 = vpop.eup %555 }
 0x19f   : > { %405 = vst.msk [vmem:[%s293_s15] sm:$0xff] %vm404_vm5, %v556_v33 }
 0x1a0   : > { %399 = vperm.xlu1 %548, %v556_v33  }
 0x21c   : > { %v394_v34 = vpop.xlane.xlu1 %393 }
 0x21d   : > { %557 = vrcp.f32 %v394_v34 }
 0x220   : > { %v400_v36 = vpop.permute.xlu1 %399 }
 0x227   : > { %v558_v35 = vpop.eup %557 }
 0x228   : > { %v396_v37 = vmul.f32 %v558_v35, %v552_v29 }
 0x22a   : > { %v402_v38 = vmul.f32 %v400_v36, %v396_v37 }
 0x22c   : > { %403 = vst.msk [vmem:[%s289_s18] sm:$0xff] %vm385_vm4, %v402_v38 }
 0x22d PF: > { %s19_s23 = sadd.s32 1, %s565_s23  }
 0x22e   : > { %p16_p4 = scmp.ge.s32.totalorder %s19_s23, 4  }
 0x230   :  { %18 = sbr.rel (!%p16_p4) target bundleno = 3 (0x3), region = 88 }

// kernel: forward.64
= control target key start
LH: loop header
LB: loop body
LE: loop exit
PB: predicated region body
PF: predicated region fallthrough
CT: control target
= control target key end

     0   :  { %s517_s12 = smov 0   ;;  %s519_s13 = smov 0   ;;  %s568_s0 = inlined_call_operand.vmem [shape: bf16[2,8,32], index: 0, kind: input, shape index: {}]   ;;  %s569_s1 = inlined_call_operand.vmem [shape: bf16[32,128], index: 1, kind: input, shape index: {}]   ;;  %s570_s2 = inlined_call_operand.vmem [shape: f32[1,128], index: 2, kind: input, shape index: {}]   ;;  %s571_s3 = inlined_call_operand.vmem [shape: f32[2,8,1], index: 3, kind: output, shape index: {}]  }
   0x1   :  { %s521_s14 = smov 0  }
   0x2 LB: > { %s25_s15 = sadd.s32 1, %s487_s13  ;;  %p412_p0 = scmp.ge.s32.totalorder %s491_s14, 1  ;;  %s491_s14 = sphi %s521_s14, %s13_s14   ;;  %s487_s13 = sphi %s519_s13, %s573_s13   ;;  %s483_s12 = sphi %s517_s12, %s572_s12  }
   0x3   : > { %p27_p1 = scmp.ge.s32.totalorder %s25_s15, 2  ;;  %p165_p2 = scmp.lt.s32.totalorder %s491_s14, 3 }
   0x5   : > { %s575_s15 = smov (%p27_p1, %s25_s15), 0  ;;  %p166_p3 = pnand %p412_p0, %p165_p2 }
   0x6   : > { %vm214_vm0 = vcmask (!%p166_p3), 7168   ;;  %v493_v0 = vmov (!%p166_p3), 0.0   ;;  %v461_v1 = vld [vmem:[%s569_s1] sm:$0xff] (!%p166_p3)   ;;  %vm494_vm1 = vmmov (!%p166_p3), 0   ;;  %p194_p4 = scmp.lt.s32.totalorder (!%p166_p3), %s483_s12, 1  ;;  %v462_v2 = vld [vmem:[%s569_s1 + $0x8] sm:$0xff] (!%p166_p3)  }
   0x7   : > { %169 = sbr.rel (%p166_p3) target bundleno = 687 (0x2af), region = 32  ;;  %216 = vst.msk [vmem:[#allocation3] sm:$0xff] (!%p166_p3), %vm214_vm0, %v493_v0  ;;  %424 = vmatprep.subr.bf16.mxu0 (!%p166_p3), %v493_v0  ;;  %428 = vmatprep.mubr.msk.bf16.mxu0 (!%p166_p3), %vm494_vm1, %v493_v0  ;;  %vm241_vm2 = vcmask (!%p166_p3), 261120   ;;  %v495_v4 = vmov (!%p166_p3), -1e+30   ;;  %v496_v11 = vmov (!%p166_p3), 0  }
   0x8   : > { %425 = vmatpush3.bf16.msra.mxu0 (!%p166_p3), %v461_v1  ;;  %215 = vst.msk [vmem:[#allocation2] sm:$0xff] (!%p166_p3), %vm214_vm0, %v495_v4  ;;  %v415_v5 = vld [vmem:[%s570_s2] ss:$0 sm:$0xff] (!%p166_p3)  ;;  %460 = vset.pattern.permute.xlu0 (!%p166_p3), %v496_v11 }
   0x9   : > { %426 = vmatprep.subr.bf16.mxu0 (!%p166_p3), %v493_v0 }
   0xc   : > { %427 = vmatpush3.bf16.msra.mxu0 (!%p166_p3), %v462_v2 }
   0xe   : > { %s577_s12 = smov (!%p194_p4, %s483_s12), 1  ;;  %v289_v22 = vld [vmem:[#allocation3] sm:$0xff] }
   0xf   : > { %s413_s20 = sshll.u32 %s577_s12, 2  ;;  %v285_v12 = vld [vmem:[#allocation2] sm:$0xff]  ;;  %s414_s26 = sshll.u32 %s577_s12, 3 }
  0x10   : > { %s197_s23 = scalar_lea.vmem %s568_s0, %s413_s20  ;;  %s208_s29 = scalar_lea.vmem %s571_s3, %s414_s26 }
  0x11   : > { %v217_v3 = vld [vmem:[%s197_s23] sm:$0xf] }
  0x12   : > { %429 = vmatmul.mubr.msk.bf16.vlgmr.msra.gmra.mrb[0].mxu0 %vm241_vm2, %v217_v3 }
  0xe5   : > { %v279_v6 = vpop.f32.mrb[0].mxu0 }
  0xe6   : > { %v280_v7 = vadd.f32 %v415_v5, %v279_v6  ;;  %v430_v8 = vpop.f32.mrb[1].mxu0 }
  0xe7   : > { %v282_v9 = vpop.f32.mrb[2].mxu0 }
  0xe8   : > { %286 = vmax.xlane.f32.xlu0 %v280_v7  ;;  %v431_v10 = vpop.f32.mrb[3].mxu0 }
 0x175   : > { %v287_v13 = vpop.xlane.xlu0 %286 }
 0x176   : > { %v288_v14 = vmax.f32 %v285_v12, %v287_v13 }
 0x178   : > { %v290_v15 = vsub.f32 %v285_v12, %v288_v14  ;;  %307 = vst.msk [vmem:[#allocation2] sm:$0xff] %vm214_vm0, %v288_v14  ;;  %296 = vperm.xlu0 %460, %v288_v14  }
 0x17a   : > { %v291_v20 = vmul.f32 1.442695, %v290_v15 }
 0x17f   : > { %v311_v29 = vld [vmem:[#allocation2] sm:$0xff] }
 0x1f7   : > { %v297_v16 = vpop.permute.xlu0 %296 }
 0x1f8   : > { %v299_v17 = vsub.f32 %v280_v7, %v297_v16 }
 0x1fa   : > { %v300_v18 = vmul.f32 1.442695, %v299_v17 }
 0x1fc   : > { %463 = vpow2.f32 %v300_v18 }
 0x1fd   : > { %465 = vpow2.f32 %v291_v20 }
 0x206   : > { %v464_v19 = vpop.eup %463 }
 0x207   : > { %302 = vadd.xlane.f32.xlu1 %v464_v19  ;;  %v466_v21 = vpop.eup %465 }
 0x208   : > { %v293_v23 = vmul.f32 %v466_v21, %v289_v22 }
 0x294   : > { %v303_v24 = vpop.xlane.xlu1 %302 }
 0x295   : > { %v304_v25 = vadd.f32 %v303_v24, %v293_v23 }
 0x297   : > { %306 = vst.msk [vmem:[#allocation3] sm:$0xff] %vm214_vm0, %v304_v25 }
 0x29e   : > { %v312_v26 = vld [vmem:[#allocation3] sm:$0xff] }
 0x29f   : > { %467 = vlog2.f32 %v312_v26 }
 0x2a9   : > { %v468_v27 = vpop.eup %467 }
 0x2aa   : > { %v314_v28 = vmul.f32 0.6931472, %v468_v27 }
 0x2ac   : > { %v315_v30 = vadd.f32 %v314_v28, %v311_v29 }
 0x2ae   : > { %316 = vst.msk [vmem:[%s208_s29] sm:$0xff] %vm214_vm0, %v315_v30 }
 0x2af PF: > { %s13_s14 = sadd.s32 1, %s491_s14   ;;  %s572_s12 = smov %s487_s13 }
 0x2b0   : > { %p10_p5 = scmp.ge.s32.totalorder %s13_s14, 4   ;;  %s573_s13 = smov %s575_s15 }
 0x2b2   :  { %12 = sbr.rel (!%p10_p5) target bundleno = 2 (0x2), region = 76 }

// kernel: forward.65
= control target key start
LH: loop header
LB: loop body
LE: loop exit
PB: predicated region body
PF: predicated region fallthrough
CT: control target
= control target key end

     0   :  { %12 = vsyncpa [#allocation3], 0  ;;  %s1117_s0 = inlined_call_operand.vmem [shape: s32[2,10,1], index: 0, kind: input, shape index: {}]   ;;  %s1118_s1 = inlined_call_operand.vmem [shape: bf16[2,8,32], index: 1, kind: input, shape index: {}]   ;;  %s1119_s2 = inlined_call_operand.vmem [shape: f32[2,8,1], index: 2, kind: input, shape index: {}]   ;;  %s1120_s3 = inlined_call_operand.vmem [shape: f32[2,8,1], index: 3, kind: input, shape index: {}]   ;;  %s1121_s4 = inlined_call_operand.vmem [shape: f32[2,8,10], index: 4, kind: input, shape index: {}]   ;;  %s1122_s5 = inlined_call_operand.vmem [shape: bf16[32,128], index: 5, kind: input, shape index: {}]   ;;  %s1123_s6 = inlined_call_operand.vmem [shape: f32[1,128], index: 6, kind: input, shape index: {}]   ;;  %s1124_s7 = inlined_call_operand.hbm [shape: f32[2,8,128], index: 7, kind: output, shape index: {}]  }
   0x1   :  { %14 = vsyncpa [#allocation3 + $0x1], 0  ;;  %s984_s24 = smov 0   ;;  %s986_s25 = smov 0  }
   0x2   :  { %s988_s26 = smov 0   ;;  %s990_s27 = smov 0  }
   0x3   :  { %s992_s28 = smov 0   ;;  %s994_s29 = smov 0  }
   0x4 LB: > { %s737_s30 = sadd.s32 4294967295, %s936_s29   ;;  %s738_s8 = sadd.s32 4294967294, %s936_s29   ;;  %s936_s29 = sphi %s994_s29, %s20_s29   ;;  %s932_s28 = sphi %s992_s28, %s1131_s28   ;;  %s928_s27 = sphi %s990_s27, %s1130_s27   ;;  %s924_s26 = sphi %s988_s26, %s1129_s26   ;;  %s920_s25 = sphi %s986_s25, %s1128_s25   ;;  %s916_s24 = sphi %s984_s24, %s1127_s24  }
   0x5   : > { %s32_s9 = sadd.s32 1, %s932_s28  ;;  %s223_s10 = sadd.s32 1, %s924_s26 }
   0x6   : > { %p34_p0 = scmp.ge.s32.totalorder %s32_s9, 2  ;;  %p233_p1 = scmp.ne.s32.totalorder %s924_s26, %s920_s25 }
   0x7   : > { %p234_p2 = scmp.eq.s32.totalorder %s737_s30, 1  ;;  %p239_p3 = scmp.ne.s32.totalorder %s920_s25, %s916_s24 }
   0x8   : > { %s1133_s9 = smov (%p34_p0, %s32_s9), 0  ;;  %p240_p5 = scmp.eq.s32.totalorder %s738_s8, 1 }
   0x9   : > { %p1024_p4 = por %p234_p2, %p233_p1  ;;  %s218_s12 = ssub.s32 %s932_s28, %s1133_s9 }
   0xa   : > { %p743_p6 = scmp.ge.s32.totalorder %s936_s29, 1  ;;  %p221_p7 = scmp.eq.s32.totalorder %s218_s12, 0 }
   0xb   : > { %p1031_p8 = por %p240_p5, %p239_p3  ;;  %p307_p9 = scmp.lt.s32.totalorder %s936_s29, 3 }
   0xc   : > { %s1037_s14 = scalar_select %p221_p7, %s924_s26, %s223_s10  }
   0xd   : > { %p308_p10 = pnand %p743_p6, %p307_p9 }
   0xe   : > { %p362_p11 = scmp.lt.s32.totalorder (!%p308_p10), %s928_s27, 1  ;;  %v852_v0 = vld [vmem:[%s1122_s5] sm:$0xff] (!%p308_p10)   ;;  %v938_v1 = vmov (!%p308_p10), 0   ;;  %v939_v2 = vmov (!%p308_p10), 0.0   ;;  %v853_v3 = vld [vmem:[%s1122_s5 + $0x8] sm:$0xff] (!%p308_p10)   ;;  %vm940_vm0 = vmmov (!%p308_p10), 0   ;;  %v471_v11 = vlaneseq (!%p308_p10) }
   0xf   : > { %311 = sbr.rel (%p308_p10) target bundleno = 407 (0x197), region = 48  ;;  %850 = vset.pattern.permute.xlu0 (!%p308_p10), %v938_v1  ;;  %771 = vmatprep.subr.bf16.mxu0 (!%p308_p10), %v939_v2  ;;  %vm415_vm1 = vcmask (!%p308_p10), 261120   ;;  %v941_v7 = vmov (!%p308_p10), 0.0|0.0   ;;  %vm492_vm3 = vcmask (!%p308_p10), 1041408   ;;  %v942_v16 = vmov (!%p308_p10), 1.0   ;;  %s761_s16 = sshll.u32 (!%p308_p10), %s928_s27, 7 }
  0x10   : > { %772 = vmatpush3.bf16.msra.mxu0 (!%p308_p10), %v852_v0  ;;  %851 = vset.pattern.permute.xlu1 (!%p308_p10), %v938_v1  ;;  %v472_v12 = vand.u32 (!%p308_p10), 127, %v471_v11  ;;  %vm488_vm6 = vcmask (!%p308_p10), 80896   ;;  %v751_v23 = vld [vmem:[%s1123_s6] ss:$0 sm:$0xff] (!%p308_p10) }
  0x11   : > { %773 = vmatprep.subr.bf16.mxu0 (!%p308_p10), %v939_v2  ;;  %775 = vmatprep.mubr.msk.bf16.mxu0 (!%p308_p10), %vm940_vm0, %v939_v2 }
  0x12   : > { %783 = vmatprep.mubr.msk.f32.mxu1 (!%p308_p10), %vm940_vm0, %v939_v2  ;;  %786 = vmatprep.subr.bf16.mxu1 (!%p308_p10), %v941_v7 }
  0x14   : > { %774 = vmatpush3.bf16.msra.mxu0 (!%p308_p10), %v853_v3 }
  0x16   : > { %s363_s17 = scalar_select %p362_p11, %s928_s27, 1 }
  0x17   : > { %s943_s27 = smov [#allocation2]  }
  0x18   : > { %s764_s20 = sshll.u32 %s363_s17, 4  ;;  %s747_s21 = sshll.u32 %s363_s17, 2 }
  0x19   : > { %s366_s30 = scalar_lea.vmem %s1117_s0, %s764_s20  ;;  %s370_s12 = scalar_lea.vmem %s1118_s1, %s747_s21 }
  0x1a   : > { %v470_v4 = vld [vmem:[%s366_s30 + $0x8] sm:$0x3]  ;;  %v391_v5 = vld [vmem:[%s370_s12] sm:$0xf]  ;;  %s748_s15 = sshll.u32 %s363_s17, 3  ;;  %s359_s12 = sand.u32 1, %s920_s25  }
  0x1b   : > { %479 = vperm.xlu0 %850, %v470_v4   ;;  %v469_v6 = vld [vmem:[%s366_s30] sm:$0xff]  ;;  %776 = vmatmul.mubr.msk.bf16.vlgmr.msra.gmra.mrb[0].mxu0 %vm415_vm1, %v391_v5  ;;  %s374_s19 = scalar_lea.vmem %s1119_s2, %s748_s15  ;;  %s378_s23 = scalar_lea.vmem %s1120_s3, %s748_s15 }
  0x1c   : > { %v459_v8 = vld [vmem:[%s374_s19] sm:$0xff]  ;;  %s382_s30 = scalar_lea.vmem %s1121_s4, %s748_s15  ;;  %s744_s15 = sshll.u32 %s359_s12, 3 }
  0x1d   : > { %v566_v9 = vld [vmem:[%s378_s23] sm:$0xff]  ;;  %462 = vperm.xlu1 %851, %v459_v8   ;;  %s361_s18 = scalar_lea.vmem [#allocation2], %s744_s15  ;;  %s1070_s23 = scalar_lea.hbm %s1124_s7, %s761_s16 }
  0x1e   : > { %v567_v10 = vsub.f32 1.0, %v566_v9  ;;  %v487_v18 = vld [vmem:[%s382_s30] sm:$0xff]  ;;  %s594_s19 = sshll.u32 %s361_s18, 4  ;;  %s580_s17 = scalar_lea.sflag [#allocation3], %s359_s12  ;;  %s1072_s19 = int_to_ptr.vmem [resolvable:$true] %s594_s19 }
  0x1f   : > { %476 = vperm.xlu0 %850, %v469_v6   ;;  %s858_s21 = scalar_lea.vmem %s1072_s19, 128  ;;  %s862_s30 = sshll.u32 %s943_s27, 4  ;;  %s863_s30 = int_to_ptr.vmem [resolvable:$false] %s862_s30 }
  0x20   : > { %p859_p12 = scmp.ne.s32.totalorder %s1072_s19, %s858_s21  ;;  %s864_s8 = scalar_lea.vmem %s863_s30, 256 }
  0x21   : > { %570 = vperm.xlu1 %851, %v567_v10   ;;  %p865_p1 = scmp.lt.s32.totalorder %s1072_s19, %s863_s30  ;;  %p866_p2 = scmp.lt.s32.totalorder %s864_s8, %s858_s21 }
  0x22   : > { %p860_p13 = pnand %p859_p12, %p1024_p4 }
  0x23   : > { %p867_p3 = por %p866_p2, %p865_p1 }
  0x24   : > { %p861_p0 = pneg %p860_p13 }
  0x26   : > { %p868_p5 = pnand %p867_p3, %p861_p0 }
  0x9a   : > { %v480_v13 = vpop.permute.xlu0 %479 }
  0x9b   : > { %vm482_vm2 = vcmp.eq.s32.totalorder %v480_v13, %v472_v12 }
  0x9c   : > { %v756_v14 = vsel %vm482_vm2, 1.0, %v939_v2  ;;  %v463_v25 = vpop.permute.xlu1 %462 }
  0x9d   : > { %v787_v17 = vpack.c.bf16 %v756_v14, %v942_v16 }
  0x9e   : > { %v477_v15 = vpop.permute.xlu0 %476 }
  0x9f   : > { %vm481_vm4 = vcmp.eq.s32.totalorder %v477_v15, %v472_v12 }
  0xa0   : > { %vm788_vm5 = vmpackc.low %vm492_vm3, %vm481_vm4  ;;  %v571_v29 = vpop.permute.xlu1 %570 }
  0xa1   : > { %789 = vmatpush3.bf16.msk.msra.mxu1 %vm788_vm5, %v787_v17 }
  0xa4   : > { %784 = vmatmul.mubr.msk.f32.vlgmr.msra.gmra.mrb[0].mxu1 %vm488_vm6, %v487_v18 }
  0xee   : > { %v453_v19 = vpop.f32.mrb[0].mxu0 }
  0xef   : > { %v777_v20 = vpop.f32.mrb[1].mxu0  ;;  %v454_v24 = vadd.f32 %v751_v23, %v453_v19 }
  0xf0   : > { %v456_v21 = vpop.f32.mrb[2].mxu0 }
  0xf1   : > { %v778_v22 = vpop.f32.mrb[3].mxu0  ;;  %v465_v26 = vsub.f32 %v454_v24, %v463_v25 }
  0xf3   : > { %v466_v27 = vmul.f32 1.442695, %v465_v26 }
  0xf5   : > { %854 = vpow2.f32 %v466_v27 }
  0xff   : > { %v855_v28 = vpop.eup %854 }
 0x100   : > { %v573_v30 = vmul.f32 %v855_v28, %v571_v29 }
 0x177   : > { %v562_v31 = vpop.f32.mrb[0].mxu1 }
 0x178   : > { %v574_v32 = vadd.f32 %v573_v30, %v562_v31  ;;  %v785_v33 = vpop.f32.mrb[1].mxu1 }
 0x17a   : > { %v575_v34 = vadd.f32 1e-08, %v574_v32 }
 0x17c   : > { %856 = vlog2.f32 %v575_v34 }
 0x186   : > { %v857_v35 = vpop.eup %856 }
 0x187   : > { %v577_v36 = vmul.f32 0.6931472, %v857_v35 }
 0x189   : > { %578 = vst [vmem:[%s361_s18] sm:$0xff] %v577_v36 }
 0x18a   : > { %871 = shalt.err (!%p868_p5)
}
 0x18b   : > { %s872_s10 = scalar_lea.hbm %s1070_s23, 128  ;;  %s876_s16 = scalar_lea.hbm %s1124_s7, 256 }
 0x18c   : > { %p873_p6 = scmp.ne.s32.totalorder %s1070_s23, %s872_s10  ;;  %p877_p10 = scmp.lt.u32.totalorder %s1070_s23, %s1124_s7 }
 0x18d   : > { %p878_p11 = scmp.lt.u32.totalorder %s876_s16, %s872_s10  ;;  %p880_p13 = scmp.lt.u32.totalorder %s872_s10, %s1070_s23 }
 0x18e   : > { %p874_p7 = pnand %p873_p6, %p1024_p4 }
 0x18f   : > { %p879_p12 = por %p878_p11, %p877_p10 }
 0x190   : > { %p875_p9 = pneg %p874_p7 }
 0x191   : > { %p881_p0 = por %p880_p13, %p879_p12 }
 0x193   : > { %p882_p1 = pnand %p881_p0, %p875_p9 }
 0x195   : > { %885 = shalt.err (!%p882_p1)
}
 0x196   : > { %790 = dma.vmem_to_hbm [thread:$0]  (%p1024_p4), %s1072_s19, 128, %s1070_s23, %s580_s17  }
 0x197 PF: > { %p796_p2 = scmp.ge.s32.totalorder %s936_s29, 2  ;;  %s606_s22 = sand.u32 1, %s916_s24  }
 0x198   : > { %s607_s21 = scalar_lea.sflag [#allocation3], %s606_s22 }
 0x199   : > { %p793_p3 = pnand %p796_p2, %p1031_p8 }
 0x19b   : > { %911 = dma.done.wait (!%p793_p3), %s607_s21, 128  }
 0x19c   : > { %913 = vsyncadd (!%p793_p3), %s607_s21, 4294967168  ;;  %s20_s29 = sadd.s32 1, %s936_s29   ;;  %s1127_s24 = smov %s920_s25 }
 0x19d   : > { %p17_p5 = scmp.ge.s32.totalorder %s20_s29, 4   ;;  %s1128_s25 = smov %s924_s26 }
 0x19e   : > { %s1129_s26 = smov %s1037_s14  ;;  %s1130_s27 = smov %s932_s28 }
 0x19f   : > { %s1131_s28 = smov %s1133_s9  ;;  %19 = sbr.rel (!%p17_p5) target bundleno = 4 (0x4), region = 101 }
 0x1a6   :  { %612 = vsyncpa [#allocation3], 1 }
 0x1a7   :  { %614 = vsyncpa [#allocation3 + $0x1], 1 }

</bundles_post_ra>
